<compile_context>
chip_gen: v6e
topology: v6e:2x2x1
jax: 0.10.0
libtpu: 0.0.40
codegen_flags: <defaults>
</compile_context>

<pallas_src>
import jax
import jax.numpy as jnp
from jax import lax
from jax.experimental import pallas as pl
from jax.experimental.pallas import tpu as pltpu

H = 128            # embedding / GRU hidden size
NGATE = 3 * H      # GRU gates (r, z, n) concatenated
NOUT = 90          # q-value output size
NOUT_PAD = 128     # lane-dense padded head output width
INIT_RANGE = 0.08

# bf16 MXU inputs halve MXU pushes + weight-load traffic on every generation;
# accumulation (preferred_element_type) and gate math remain float32.
MXU_DTYPE = jnp.bfloat16


def cnet_gru_head_kernel(z_ref, h0_ref,
                         wih0_ref, whh0_ref, bih0_ref, bhhn0_ref,
                         wih1_ref, whh1_ref, bih1_ref, bhhn1_ref,
                         w1_ref, b1_ref, w2_ref, b2_ref,
                         h_out_ref, q_out_ref,
                         gx_ref, hseq_ref):
    """2-layer GRU over T steps (batch=1) + MLP head, all in VMEM.

    z_ref:    (T, 128)   summed embeddings (MXU_DTYPE)
    h0_ref:   (2, 128)   initial hidden state, one row per GRU layer (f32)
    wih*_ref: (128, 384) input->gates weights (transposed), gate order r|z|n
    whh*_ref: (128, 384) hidden->gates weights (transposed)
    bih*_ref: (1, 384)   bih with bhh_{r,z} pre-folded in (f32)
    bhhn*_ref:(1, 128)   bhh_n (kept separate: multiplied by r) (f32)
    w1_ref:   (128, 128) head layer 1 (transposed), b1_ref (1, 128)
    w2_ref:   (128, 128) head layer 2 (transposed, zero-padded from 90),
              b2_ref (1, 128) zero-padded
    h_out_ref:(2, 128)   final hidden state (f32)
    q_out_ref:(T, 128)   q-values per step, first 90 lanes valid (f32)
    gx_ref:   (T, 384)   scratch: batched input-projection for current layer
    hseq_ref: (T, 128)   scratch: per-step hidden outputs of current layer
    """
    T = z_ref.shape[0]
    cdt = wih0_ref.dtype  # MXU input dtype

    def recurrence(whh_ref, bhhn_ref, h_init):
        # Hoist weight / bias loads out of the unrolled loop.
        whh = whh_ref[...]
        bhh_n = bhhn_ref[...]

        def step(t, h_prev):
            # PyTorch GRU cell, gate order (r, z, n); input projection (incl.
            # bih and folded bhh_{r,z}) was precomputed into gx_ref.
            gx = gx_ref[pl.ds(t, 1), :]                              # (1, 3H)
            gh = jnp.dot(h_prev.astype(cdt), whh,
                         preferred_element_type=jnp.float32)         # (1, 3H)
            r = jax.nn.sigmoid(gx[:, 0:H] + gh[:, 0:H])
            zg = jax.nn.sigmoid(gx[:, H:2 * H] + gh[:, H:2 * H])
            n = jnp.tanh(gx[:, 2 * H:3 * H] + r * (gh[:, 2 * H:3 * H] + bhh_n))
            h_new = (1.0 - zg) * n + zg * h_prev
            hseq_ref[pl.ds(t, 1), :] = h_new
            return h_new

        # T is static; full unroll gives the scheduler cross-step visibility.
        return lax.fori_loop(0, T, step, h_init, unroll=True)

    # ---- Layer 0: hoisted batched input projection, then recurrence --------
    gx_ref[...] = (jnp.dot(z_ref[...], wih0_ref[...],
                           preferred_element_type=jnp.float32)
                   + bih0_ref[...])
    h0_fin = recurrence(whh0_ref, bhhn0_ref, h0_ref[0:1, :])

    # ---- Layer 1: batched input projection from layer-0 output sequence ----
    gx_ref[...] = (jnp.dot(hseq_ref[...].astype(cdt), wih1_ref[...],
                           preferred_element_type=jnp.float32)
                   + bih1_ref[...])
    h1_fin = recurrence(whh1_ref, bhhn1_ref, h0_ref[1:2, :])

    h_out_ref[0:1, :] = h0_fin
    h_out_ref[1:2, :] = h1_fin

    # ---- Output head, batched over T, lane-dense (T, 128) store ------------
    hid = jnp.maximum(
        jnp.dot(hseq_ref[...].astype(cdt), w1_ref[...],
                preferred_element_type=jnp.float32) + b1_ref[...],
        0.0)
    q_out_ref[...] = (jnp.dot(hid.astype(cdt), w2_ref[...],
                              preferred_element_type=jnp.float32)
                      + b2_ref[...])


def init_cnet_params(key):
    """Deterministic synthetic parameters matching CNet.__init__ shapes."""
    keys = jax.random.split(key, 32)
    k = iter(keys)

    def emb(rows):
        # nn.Embedding default init ~ N(0, 1); scaled down for numeric sanity
        return jax.random.normal(next(k), (rows, H), jnp.float32) * 0.1

    def unif(shape):
        return jax.random.uniform(next(k), shape, jnp.float32,
                                  -INIT_RANGE, INIT_RANGE)

    params = {
        "action_lookup": emb(3),
        "own_c_lookup": emb(129),
        "own_s_lookup": emb(129),
        "th_1_lookup": emb(115),
        "th_2_lookup": emb(115),
        "th_3_lookup": emb(115),
        "f_1_lookup": emb(96),
        "f_2_lookup": emb(96),
        "f_3_lookup": emb(96),
        "f_4_lookup": emb(96),
        "bu_msg_lookup": emb(5),
        "i_t_lookup": emb(24),
        "lives_lookup": emb(10),
        "prev_action_lookup": emb(91),
        # GRU layer 0 / 1 (weights stored transposed: (in, 3H)), gate order r|z|n
        "wih0": unif((H, NGATE)), "whh0": unif((H, NGATE)),
        "bih0": unif((1, NGATE)), "bhh0": unif((1, NGATE)),
        "wih1": unif((H, NGATE)), "whh1": unif((H, NGATE)),
        "bih1": unif((1, NGATE)), "bhh1": unif((1, NGATE)),
        # output head: Linear(128,128) -> ReLU -> Linear(128,90) (transposed)
        "w1": unif((H, H)), "b1": unif((1, H)),
        "w2": unif((H, NOUT)), "b2": unif((1, NOUT)),
    }
    return params


def _prep_gru_layer(wih, whh, bih, bhh):
    """Fold bhh_{r,z} into bih_{r,z}; keep bhh_n separate (scaled by r)."""
    bih_comb = jnp.concatenate(
        [bih[:, :2 * H] + bhh[:, :2 * H], bih[:, 2 * H:]], axis=1)
    bhh_n = bhh[:, 2 * H:]
    return (wih.astype(MXU_DTYPE), whh.astype(MXU_DTYPE),
            bih_comb.astype(jnp.float32), bhh_n.astype(jnp.float32))


def cnet_forward(params, own_c, own_s, th_1, th_2, th_3,
                 f_1, f_2, f_3, f_4, b_u, i_t, lives,
                 hidden, prev_action, agent):
    """Matches CNet.forward: returns (h, out).

    Integer index inputs have shape (T,) (PyTorch seq_len with batch=1);
    hidden has shape (2, 1, 128). Returns h of shape (2, 1, 128) and q-values
    of shape (T, 90) (the head applied to rnn_out[:, -1, :].squeeze(), i.e.
    the top-layer GRU output at every step since batch=1).
    """
    # Embedding gathers + sum stay in XLA glue (pure gathers).
    # TODO(synk): optionally fuse the 14 gathers via scalar-prefetch indices +
    # VMEM-resident tables to save one HBM roundtrip for z and one dispatch.
    take = lambda name, idx: jnp.take(params[name], idx, axis=0)

    z_a = take("action_lookup", agent)
    z_own_c = take("own_c_lookup", own_c)
    z_own_s = take("own_s_lookup", own_s)
    z_th_1 = take("th_1_lookup", th_1)
    z_th_2 = take("th_2_lookup", th_2)
    z_th_3 = take("th_3_lookup", th_3)
    z_f_1 = take("f_1_lookup", f_1)
    z_f_2 = take("f_2_lookup", f_2)
    z_f_3 = take("f_3_lookup", f_3)
    z_f_4 = take("f_4_lookup", f_4)
    z_b_u = take("bu_msg_lookup", b_u)
    z_i_t = take("i_t_lookup", i_t)
    z_lives = take("lives_lookup", lives)
    z_u = take("prev_action_lookup", prev_action)

    z_o_d = (z_own_c + z_own_s + z_th_1 + z_th_2 + z_th_3
             + z_f_1 + z_f_2 + z_f_3 + z_f_4)
    z_o_t = z_i_t + z_lives
    z = (z_a + z_o_d + z_o_t + z_u + z_b_u).astype(jnp.float32)  # (T, 128)

    T = z.shape[0]
    h0 = hidden.reshape(2, H).astype(jnp.float32)  # GRU batch = 1, squeezed

    # Stage weights for the kernel (bf16 MXU inputs, folded biases, padded head)
    wih0, whh0, bih0, bhhn0 = _prep_gru_layer(
        params["wih0"], params["whh0"], params["bih0"], params["bhh0"])
    wih1, whh1, bih1, bhhn1 = _prep_gru_layer(
        params["wih1"], params["whh1"], params["bih1"], params["bhh1"])
    w1 = params["w1"].astype(MXU_DTYPE)
    b1 = params["b1"].astype(jnp.float32)
    # Pad the 90-wide head to 128 lanes so the kernel's output store is
    # lane-dense; the extra lanes are exact zeros and sliced off below.
    w2 = jnp.zeros((H, NOUT_PAD), MXU_DTYPE).at[:, :NOUT].set(
        params["w2"].astype(MXU_DTYPE))
    b2 = jnp.zeros((1, NOUT_PAD), jnp.float32).at[:, :NOUT].set(
        params["b2"].astype(jnp.float32))

    vmem = pl.BlockSpec(memory_space=pltpu.MemorySpace.VMEM)
    h_out, q_pad = pl.pallas_call(
        cnet_gru_head_kernel,
        out_shape=(jax.ShapeDtypeStruct((2, H), jnp.float32),
                   jax.ShapeDtypeStruct((T, NOUT_PAD), jnp.float32)),
        in_specs=[vmem] * 14,
        out_specs=(vmem, vmem),
        scratch_shapes=[pltpu.VMEM((T, NGATE), jnp.float32),   # gx_ref
                        pltpu.VMEM((T, H), jnp.float32)],      # hseq_ref
    )(z.astype(MXU_DTYPE), h0,
      wih0, whh0, bih0, bhhn0,
      wih1, whh1, bih1, bhhn1,
      w1, b1, w2, b2)

    return h_out.reshape(2, 1, H), q_pad[:, :NOUT]


if __name__ == "__main__":
    key = jax.random.PRNGKey(0)
    params = init_cnet_params(jax.random.PRNGKey(42))

    T = 8  # sequence length (GRU seq_len, batch=1)
    ks = jax.random.split(key, 16)
    ri = lambda k, hi: jax.random.randint(k, (T,), 0, hi, dtype=jnp.int32)

    own_c = ri(ks[0], 129)
    own_s = ri(ks[1], 129)
    th_1 = ri(ks[2], 115)
    th_2 = ri(ks[3], 115)
    th_3 = ri(ks[4], 115)
    f_1 = ri(ks[5], 96)
    f_2 = ri(ks[6], 96)
    f_3 = ri(ks[7], 96)
    f_4 = ri(ks[8], 96)
    b_u = ri(ks[9], 5)
    i_t = ri(ks[10], 24)
    lives = ri(ks[11], 10)
    prev_action = ri(ks[12], 91)
    agent = ri(ks[13], 3)
    hidden = jax.random.normal(ks[14], (2, 1, H), jnp.float32) * 0.1

    h, out = cnet_forward(params, own_c, own_s, th_1, th_2, th_3,
                          f_1, f_2, f_3, f_4, b_u, i_t, lives,
                          hidden, prev_action, agent)
    jax.block_until_ready((h, out))
    assert h.shape == (2, 1, H) and out.shape == (T, NOUT)
    assert bool(jnp.all(jnp.isfinite(h))) and bool(jnp.all(jnp.isfinite(out)))
    print("KERNEL_OK")
</pallas_src>

<mosaic_0001>
module attributes {stable_mosaic.version = 11 : i64} {
  func.func @cnet_gru_head_kernel(%arg0: memref<8x128xbf16, #tpu.memory_space<vmem>>, %arg1: memref<2x128xf32, #tpu.memory_space<vmem>>, %arg2: memref<128x384xbf16, #tpu.memory_space<vmem>>, %arg3: memref<128x384xbf16, #tpu.memory_space<vmem>>, %arg4: memref<1x384xf32, #tpu.memory_space<vmem>>, %arg5: memref<1x128xf32, #tpu.memory_space<vmem>>, %arg6: memref<128x384xbf16, #tpu.memory_space<vmem>>, %arg7: memref<128x384xbf16, #tpu.memory_space<vmem>>, %arg8: memref<1x384xf32, #tpu.memory_space<vmem>>, %arg9: memref<1x128xf32, #tpu.memory_space<vmem>>, %arg10: memref<128x128xbf16, #tpu.memory_space<vmem>>, %arg11: memref<1x128xf32, #tpu.memory_space<vmem>>, %arg12: memref<128x128xbf16, #tpu.memory_space<vmem>>, %arg13: memref<1x128xf32, #tpu.memory_space<vmem>>, %arg14: memref<2x128xf32, #tpu.memory_space<vmem>>, %arg15: memref<8x128xf32, #tpu.memory_space<vmem>>, %arg16: memref<8x384xf32, #tpu.memory_space<vmem>>, %arg17: memref<8x128xf32, #tpu.memory_space<vmem>>) attributes {dimension_semantics = [], scalar_prefetch = 0 : i64, scratch_operands = 2 : i64, tpu.core_type = #tpu.core_type<tc>} {
    %c0 = arith.constant 0 : index
    %c0_0 = arith.constant 0 : index
    %0 = vector.load %arg0[%c0, %c0_0] : memref<8x128xbf16, #tpu.memory_space<vmem>>, vector<8x128xbf16>
    %c0_1 = arith.constant 0 : index
    %c0_2 = arith.constant 0 : index
    %1 = vector.load %arg2[%c0_1, %c0_2] : memref<128x384xbf16, #tpu.memory_space<vmem>>, vector<128x384xbf16>
    %cst = arith.constant dense<0.000000e+00> : vector<8x384xf32>
    %2 = tpu.matmul %0, %1, %cst {dimension_numbers = #tpu.dot_dimension_numbers<[1], [0], [0], [1], [0, 0, 1, 1], [], []>} : vector<8x128xbf16>, vector<128x384xbf16>, vector<8x384xf32> -> vector<8x384xf32>
    %c0_3 = arith.constant 0 : index
    %c0_4 = arith.constant 0 : index
    %3 = vector.load %arg4[%c0_3, %c0_4] : memref<1x384xf32, #tpu.memory_space<vmem>>, vector<1x384xf32>
    %4 = vector.broadcast %3 : vector<1x384xf32> to vector<8x384xf32>
    %5 = arith.addf %2, %4 : vector<8x384xf32>
    %c0_5 = arith.constant 0 : index
    %c0_6 = arith.constant 0 : index
    %6 = vector.load %arg16[%c0_5, %c0_6] : memref<8x384xf32, #tpu.memory_space<vmem>>, vector<8x384xf32>
    tpu.vector_store %arg16[%c0_5, %c0_6], %5 {strides = array<i32>} : memref<8x384xf32, #tpu.memory_space<vmem>>, vector<8x384xf32>,
    %c0_7 = arith.constant 0 : index
    %c0_8 = arith.constant 0 : index
    %7 = vector.load %arg1[%c0_7, %c0_8] : memref<2x128xf32, #tpu.memory_space<vmem>>, vector<1x128xf32>
    %c0_9 = arith.constant 0 : index
    %c0_10 = arith.constant 0 : index
    %8 = vector.load %arg3[%c0_9, %c0_10] : memref<128x384xbf16, #tpu.memory_space<vmem>>, vector<128x384xbf16>
    %c0_11 = arith.constant 0 : index
    %c0_12 = arith.constant 0 : index
    %9 = vector.load %arg5[%c0_11, %c0_12] : memref<1x128xf32, #tpu.memory_space<vmem>>, vector<1x128xf32>
    %c0_i32 = arith.constant 0 : i32
    %10 = arith.index_cast %c0_i32 : i32 to index
    %c0_13 = arith.constant 0 : index
    %11 = vector.load %arg16[%10, %c0_13] : memref<8x384xf32, #tpu.memory_space<vmem>>, vector<1x384xf32>
    %12 = arith.truncf %7 : vector<1x128xf32> to vector<1x128xbf16>
    %cst_14 = arith.constant dense<0.000000e+00> : vector<1x384xf32>
    %13 = tpu.matmul %12, %8, %cst_14 {dimension_numbers = #tpu.dot_dimension_numbers<[1], [0], [0], [1], [0, 0, 1, 1], [], []>} : vector<1x128xbf16>, vector<128x384xbf16>, vector<1x384xf32> -> vector<1x384xf32>
    %14 = vector.extract_strided_slice %11 {offsets = [0, 0], sizes = [1, 128], strides = [1, 1]} : vector<1x384xf32> to vector<1x128xf32>
    %15 = vector.extract_strided_slice %13 {offsets = [0, 0], sizes = [1, 128], strides = [1, 1]} : vector<1x384xf32> to vector<1x128xf32>
    %16 = arith.addf %14, %15 : vector<1x128xf32>
    %17 = arith.negf %16 : vector<1x128xf32>
    %18 = math.exp %17 : vector<1x128xf32>
    %cst_15 = arith.constant 1.000000e+00 : f32
    %19 = vector.broadcast %cst_15 : f32 to vector<1x128xf32>
    %20 = arith.addf %19, %18 : vector<1x128xf32>
    %21 = arith.divf %19, %20 : vector<1x128xf32>
    %22 = vector.extract_strided_slice %11 {offsets = [0, 128], sizes = [1, 128], strides = [1, 1]} : vector<1x384xf32> to vector<1x128xf32>
    %23 = vector.extract_strided_slice %13 {offsets = [0, 128], sizes = [1, 128], strides = [1, 1]} : vector<1x384xf32> to vector<1x128xf32>
    %24 = arith.addf %22, %23 : vector<1x128xf32>
    %25 = arith.negf %24 : vector<1x128xf32>
    %26 = math.exp %25 : vector<1x128xf32>
    %cst_16 = arith.constant 1.000000e+00 : f32
    %27 = vector.broadcast %cst_16 : f32 to vector<1x128xf32>
    %28 = arith.addf %27, %26 : vector<1x128xf32>
    %29 = arith.divf %27, %28 : vector<1x128xf32>
    %30 = vector.extract_strided_slice %11 {offsets = [0, 256], sizes = [1, 128], strides = [1, 1]} : vector<1x384xf32> to vector<1x128xf32>
    %31 = vector.extract_strided_slice %13 {offsets = [0, 256], sizes = [1, 128], strides = [1, 1]} : vector<1x384xf32> to vector<1x128xf32>
    %32 = arith.addf %31, %9 : vector<1x128xf32>
    %33 = arith.mulf %21, %32 : vector<1x128xf32>
    %34 = arith.addf %30, %33 : vector<1x128xf32>
    %35 = math.tanh %34 : vector<1x128xf32>
    %cst_17 = arith.constant 1.000000e+00 : f32
    %36 = vector.broadcast %cst_17 : f32 to vector<1x128xf32>
    %37 = arith.subf %36, %29 : vector<1x128xf32>
    %38 = arith.mulf %37, %35 : vector<1x128xf32>
    %39 = arith.mulf %29, %7 : vector<1x128xf32>
    %40 = arith.addf %38, %39 : vector<1x128xf32>
    %41 = arith.index_cast %c0_i32 : i32 to index
    %c0_18 = arith.constant 0 : index
    %42 = vector.load %arg17[%41, %c0_18] : memref<8x128xf32, #tpu.memory_space<vmem>>, vector<1x128xf32>
    tpu.vector_store %arg17[%41, %c0_18], %40 {strides = array<i32>} : memref<8x128xf32, #tpu.memory_space<vmem>>, vector<1x128xf32>,
    %c1_i32 = arith.constant 1 : i32
    %43 = arith.index_cast %c1_i32 : i32 to index
    %c0_19 = arith.constant 0 : index
    %44 = vector.load %arg16[%43, %c0_19] : memref<8x384xf32, #tpu.memory_space<vmem>>, vector<1x384xf32>
    %45 = arith.truncf %40 : vector<1x128xf32> to vector<1x128xbf16>
    %cst_20 = arith.constant dense<0.000000e+00> : vector<1x384xf32>
    %46 = tpu.matmul %45, %8, %cst_20 {dimension_numbers = #tpu.dot_dimension_numbers<[1], [0], [0], [1], [0, 0, 1, 1], [], []>} : vector<1x128xbf16>, vector<128x384xbf16>, vector<1x384xf32> -> vector<1x384xf32>
    %47 = vector.extract_strided_slice %44 {offsets = [0, 0], sizes = [1, 128], strides = [1, 1]} : vector<1x384xf32> to vector<1x128xf32>
    %48 = vector.extract_strided_slice %46 {offsets = [0, 0], sizes = [1, 128], strides = [1, 1]} : vector<1x384xf32> to vector<1x128xf32>
    %49 = arith.addf %47, %48 : vector<1x128xf32>
    %50 = arith.negf %49 : vector<1x128xf32>
    %51 = math.exp %50 : vector<1x128xf32>
    %cst_21 = arith.constant 1.000000e+00 : f32
    %52 = vector.broadcast %cst_21 : f32 to vector<1x128xf32>
    %53 = arith.addf %52, %51 : vector<1x128xf32>
    %54 = arith.divf %52, %53 : vector<1x128xf32>
    %55 = vector.extract_strided_slice %44 {offsets = [0, 128], sizes = [1, 128], strides = [1, 1]} : vector<1x384xf32> to vector<1x128xf32>
    %56 = vector.extract_strided_slice %46 {offsets = [0, 128], sizes = [1, 128], strides = [1, 1]} : vector<1x384xf32> to vector<1x128xf32>
    %57 = arith.addf %55, %56 : vector<1x128xf32>
    %58 = arith.negf %57 : vector<1x128xf32>
    %59 = math.exp %58 : vector<1x128xf32>
    %cst_22 = arith.constant 1.000000e+00 : f32
    %60 = vector.broadcast %cst_22 : f32 to vector<1x128xf32>
    %61 = arith.addf %60, %59 : vector<1x128xf32>
    %62 = arith.divf %60, %61 : vector<1x128xf32>
    %63 = vector.extract_strided_slice %44 {offsets = [0, 256], sizes = [1, 128], strides = [1, 1]} : vector<1x384xf32> to vector<1x128xf32>
    %64 = vector.extract_strided_slice %46 {offsets = [0, 256], sizes = [1, 128], strides = [1, 1]} : vector<1x384xf32> to vector<1x128xf32>
    %65 = arith.addf %64, %9 : vector<1x128xf32>
    %66 = arith.mulf %54, %65 : vector<1x128xf32>
    %67 = arith.addf %63, %66 : vector<1x128xf32>
    %68 = math.tanh %67 : vector<1x128xf32>
    %cst_23 = arith.constant 1.000000e+00 : f32
    %69 = vector.broadcast %cst_23 : f32 to vector<1x128xf32>
    %70 = arith.subf %69, %62 : vector<1x128xf32>
    %71 = arith.mulf %70, %68 : vector<1x128xf32>
    %72 = arith.mulf %62, %40 : vector<1x128xf32>
    %73 = arith.addf %71, %72 : vector<1x128xf32>
    %74 = arith.index_cast %c1_i32 : i32 to index
    %c0_24 = arith.constant 0 : index
    %75 = vector.load %arg17[%74, %c0_24] : memref<8x128xf32, #tpu.memory_space<vmem>>, vector<1x128xf32>
    tpu.vector_store %arg17[%74, %c0_24], %73 {strides = array<i32>} : memref<8x128xf32, #tpu.memory_space<vmem>>, vector<1x128xf32>,
    %c2_i32 = arith.constant 2 : i32
    %76 = arith.index_cast %c2_i32 : i32 to index
    %c0_25 = arith.constant 0 : index
    %77 = vector.load %arg16[%76, %c0_25] : memref<8x384xf32, #tpu.memory_space<vmem>>, vector<1x384xf32>
    %78 = arith.truncf %73 : vector<1x128xf32> to vector<1x128xbf16>
    %cst_26 = arith.constant dense<0.000000e+00> : vector<1x384xf32>
    %79 = tpu.matmul %78, %8, %cst_26 {dimension_numbers = #tpu.dot_dimension_numbers<[1], [0], [0], [1], [0, 0, 1, 1], [], []>} : vector<1x128xbf16>, vector<128x384xbf16>, vector<1x384xf32> -> vector<1x384xf32>
    %80 = vector.extract_strided_slice %77 {offsets = [0, 0], sizes = [1, 128], strides = [1, 1]} : vector<1x384xf32> to vector<1x128xf32>
    %81 = vector.extract_strided_slice %79 {offsets = [0, 0], sizes = [1, 128], strides = [1, 1]} : vector<1x384xf32> to vector<1x128xf32>
    %82 = arith.addf %80, %81 : vector<1x128xf32>
    %83 = arith.negf %82 : vector<1x128xf32>
    %84 = math.exp %83 : vector<1x128xf32>
    %cst_27 = arith.constant 1.000000e+00 : f32
    %85 = vector.broadcast %cst_27 : f32 to vector<1x128xf32>
    %86 = arith.addf %85, %84 : vector<1x128xf32>
    %87 = arith.divf %85, %86 : vector<1x128xf32>
    %88 = vector.extract_strided_slice %77 {offsets = [0, 128], sizes = [1, 128], strides = [1, 1]} : vector<1x384xf32> to vector<1x128xf32>
    %89 = vector.extract_strided_slice %79 {offsets = [0, 128], sizes = [1, 128], strides = [1, 1]} : vector<1x384xf32> to vector<1x128xf32>
    %90 = arith.addf %88, %89 : vector<1x128xf32>
    %91 = arith.negf %90 : vector<1x128xf32>
    %92 = math.exp %91 : vector<1x128xf32>
    %cst_28 = arith.constant 1.000000e+00 : f32
    %93 = vector.broadcast %cst_28 : f32 to vector<1x128xf32>
    %94 = arith.addf %93, %92 : vector<1x128xf32>
    %95 = arith.divf %93, %94 : vector<1x128xf32>
    %96 = vector.extract_strided_slice %77 {offsets = [0, 256], sizes = [1, 128], strides = [1, 1]} : vector<1x384xf32> to vector<1x128xf32>
    %97 = vector.extract_strided_slice %79 {offsets = [0, 256], sizes = [1, 128], strides = [1, 1]} : vector<1x384xf32> to vector<1x128xf32>
    %98 = arith.addf %97, %9 : vector<1x128xf32>
    %99 = arith.mulf %87, %98 : vector<1x128xf32>
    %100 = arith.addf %96, %99 : vector<1x128xf32>
    %101 = math.tanh %100 : vector<1x128xf32>
    %cst_29 = arith.constant 1.000000e+00 : f32
    %102 = vector.broadcast %cst_29 : f32 to vector<1x128xf32>
    %103 = arith.subf %102, %95 : vector<1x128xf32>
    %104 = arith.mulf %103, %101 : vector<1x128xf32>
    %105 = arith.mulf %95, %73 : vector<1x128xf32>
    %106 = arith.addf %104, %105 : vector<1x128xf32>
    %107 = arith.index_cast %c2_i32 : i32 to index
    %c0_30 = arith.constant 0 : index
    %108 = vector.load %arg17[%107, %c0_30] : memref<8x128xf32, #tpu.memory_space<vmem>>, vector<1x128xf32>
    tpu.vector_store %arg17[%107, %c0_30], %106 {strides = array<i32>} : memref<8x128xf32, #tpu.memory_space<vmem>>, vector<1x128xf32>,
    %c3_i32 = arith.constant 3 : i32
    %109 = arith.index_cast %c3_i32 : i32 to index
    %c0_31 = arith.constant 0 : index
    %110 = vector.load %arg16[%109, %c0_31] : memref<8x384xf32, #tpu.memory_space<vmem>>, vector<1x384xf32>
    %111 = arith.truncf %106 : vector<1x128xf32> to vector<1x128xbf16>
    %cst_32 = arith.constant dense<0.000000e+00> : vector<1x384xf32>
    %112 = tpu.matmul %111, %8, %cst_32 {dimension_numbers = #tpu.dot_dimension_numbers<[1], [0], [0], [1], [0, 0, 1, 1], [], []>} : vector<1x128xbf16>, vector<128x384xbf16>, vector<1x384xf32> -> vector<1x384xf32>
    %113 = vector.extract_strided_slice %110 {offsets = [0, 0], sizes = [1, 128], strides = [1, 1]} : vector<1x384xf32> to vector<1x128xf32>
    %114 = vector.extract_strided_slice %112 {offsets = [0, 0], sizes = [1, 128], strides = [1, 1]} : vector<1x384xf32> to vector<1x128xf32>
    %115 = arith.addf %113, %114 : vector<1x128xf32>
    %116 = arith.negf %115 : vector<1x128xf32>
    %117 = math.exp %116 : vector<1x128xf32>
    %cst_33 = arith.constant 1.000000e+00 : f32
    %118 = vector.broadcast %cst_33 : f32 to vector<1x128xf32>
    %119 = arith.addf %118, %117 : vector<1x128xf32>
    %120 = arith.divf %118, %119 : vector<1x128xf32>
    %121 = vector.extract_strided_slice %110 {offsets = [0, 128], sizes = [1, 128], strides = [1, 1]} : vector<1x384xf32> to vector<1x128xf32>
    %122 = vector.extract_strided_slice %112 {offsets = [0, 128], sizes = [1, 128], strides = [1, 1]} : vector<1x384xf32> to vector<1x128xf32>
    %123 = arith.addf %121, %122 : vector<1x128xf32>
    %124 = arith.negf %123 : vector<1x128xf32>
    %125 = math.exp %124 : vector<1x128xf32>
    %cst_34 = arith.constant 1.000000e+00 : f32
    %126 = vector.broadcast %cst_34 : f32 to vector<1x128xf32>
    %127 = arith.addf %126, %125 : vector<1x128xf32>
    %128 = arith.divf %126, %127 : vector<1x128xf32>
    %129 = vector.extract_strided_slice %110 {offsets = [0, 256], sizes = [1, 128], strides = [1, 1]} : vector<1x384xf32> to vector<1x128xf32>
    %130 = vector.extract_strided_slice %112 {offsets = [0, 256], sizes = [1, 128], strides = [1, 1]} : vector<1x384xf32> to vector<1x128xf32>
    %131 = arith.addf %130, %9 : vector<1x128xf32>
    %132 = arith.mulf %120, %131 : vector<1x128xf32>
    %133 = arith.addf %129, %132 : vector<1x128xf32>
    %134 = math.tanh %133 : vector<1x128xf32>
    %cst_35 = arith.constant 1.000000e+00 : f32
    %135 = vector.broadcast %cst_35 : f32 to vector<1x128xf32>
    %136 = arith.subf %135, %128 : vector<1x128xf32>
    %137 = arith.mulf %136, %134 : vector<1x128xf32>
    %138 = arith.mulf %128, %106 : vector<1x128xf32>
    %139 = arith.addf %137, %138 : vector<1x128xf32>
    %140 = arith.index_cast %c3_i32 : i32 to index
    %c0_36 = arith.constant 0 : index
    %141 = vector.load %arg17[%140, %c0_36] : memref<8x128xf32, #tpu.memory_space<vmem>>, vector<1x128xf32>
    tpu.vector_store %arg17[%140, %c0_36], %139 {strides = array<i32>} : memref<8x128xf32, #tpu.memory_space<vmem>>, vector<1x128xf32>,
    %c4_i32 = arith.constant 4 : i32
    %142 = arith.index_cast %c4_i32 : i32 to index
    %c0_37 = arith.constant 0 : index
    %143 = vector.load %arg16[%142, %c0_37] : memref<8x384xf32, #tpu.memory_space<vmem>>, vector<1x384xf32>
    %144 = arith.truncf %139 : vector<1x128xf32> to vector<1x128xbf16>
    %cst_38 = arith.constant dense<0.000000e+00> : vector<1x384xf32>
    %145 = tpu.matmul %144, %8, %cst_38 {dimension_numbers = #tpu.dot_dimension_numbers<[1], [0], [0], [1], [0, 0, 1, 1], [], []>} : vector<1x128xbf16>, vector<128x384xbf16>, vector<1x384xf32> -> vector<1x384xf32>
    %146 = vector.extract_strided_slice %143 {offsets = [0, 0], sizes = [1, 128], strides = [1, 1]} : vector<1x384xf32> to vector<1x128xf32>
    %147 = vector.extract_strided_slice %145 {offsets = [0, 0], sizes = [1, 128], strides = [1, 1]} : vector<1x384xf32> to vector<1x128xf32>
    %148 = arith.addf %146, %147 : vector<1x128xf32>
    %149 = arith.negf %148 : vector<1x128xf32>
    %150 = math.exp %149 : vector<1x128xf32>
    %cst_39 = arith.constant 1.000000e+00 : f32
    %151 = vector.broadcast %cst_39 : f32 to vector<1x128xf32>
    %152 = arith.addf %151, %150 : vector<1x128xf32>
    %153 = arith.divf %151, %152 : vector<1x128xf32>
    %154 = vector.extract_strided_slice %143 {offsets = [0, 128], sizes = [1, 128], strides = [1, 1]} : vector<1x384xf32> to vector<1x128xf32>
    %155 = vector.extract_strided_slice %145 {offsets = [0, 128], sizes = [1, 128], strides = [1, 1]} : vector<1x384xf32> to vector<1x128xf32>
    %156 = arith.addf %154, %155 : vector<1x128xf32>
    %157 = arith.negf %156 : vector<1x128xf32>
    %158 = math.exp %157 : vector<1x128xf32>
    %cst_40 = arith.constant 1.000000e+00 : f32
    %159 = vector.broadcast %cst_40 : f32 to vector<1x128xf32>
    %160 = arith.addf %159, %158 : vector<1x128xf32>
    %161 = arith.divf %159, %160 : vector<1x128xf32>
    %162 = vector.extract_strided_slice %143 {offsets = [0, 256], sizes = [1, 128], strides = [1, 1]} : vector<1x384xf32> to vector<1x128xf32>
    %163 = vector.extract_strided_slice %145 {offsets = [0, 256], sizes = [1, 128], strides = [1, 1]} : vector<1x384xf32> to vector<1x128xf32>
    %164 = arith.addf %163, %9 : vector<1x128xf32>
    %165 = arith.mulf %153, %164 : vector<1x128xf32>
    %166 = arith.addf %162, %165 : vector<1x128xf32>
    %167 = math.tanh %166 : vector<1x128xf32>
    %cst_41 = arith.constant 1.000000e+00 : f32
    %168 = vector.broadcast %cst_41 : f32 to vector<1x128xf32>
    %169 = arith.subf %168, %161 : vector<1x128xf32>
    %170 = arith.mulf %169, %167 : vector<1x128xf32>
    %171 = arith.mulf %161, %139 : vector<1x128xf32>
    %172 = arith.addf %170, %171 : vector<1x128xf32>
    %173 = arith.index_cast %c4_i32 : i32 to index
    %c0_42 = arith.constant 0 : index
    %174 = vector.load %arg17[%173, %c0_42] : memref<8x128xf32, #tpu.memory_space<vmem>>, vector<1x128xf32>
    tpu.vector_store %arg17[%173, %c0_42], %172 {strides = array<i32>} : memref<8x128xf32, #tpu.memory_space<vmem>>, vector<1x128xf32>,
    %c5_i32 = arith.constant 5 : i32
    %175 = arith.index_cast %c5_i32 : i32 to index
    %c0_43 = arith.constant 0 : index
    %176 = vector.load %arg16[%175, %c0_43] : memref<8x384xf32, #tpu.memory_space<vmem>>, vector<1x384xf32>
    %177 = arith.truncf %172 : vector<1x128xf32> to vector<1x128xbf16>
    %cst_44 = arith.constant dense<0.000000e+00> : vector<1x384xf32>
    %178 = tpu.matmul %177, %8, %cst_44 {dimension_numbers = #tpu.dot_dimension_numbers<[1], [0], [0], [1], [0, 0, 1, 1], [], []>} : vector<1x128xbf16>, vector<128x384xbf16>, vector<1x384xf32> -> vector<1x384xf32>
    %179 = vector.extract_strided_slice %176 {offsets = [0, 0], sizes = [1, 128], strides = [1, 1]} : vector<1x384xf32> to vector<1x128xf32>
    %180 = vector.extract_strided_slice %178 {offsets = [0, 0], sizes = [1, 128], strides = [1, 1]} : vector<1x384xf32> to vector<1x128xf32>
    %181 = arith.addf %179, %180 : vector<1x128xf32>
    %182 = arith.negf %181 : vector<1x128xf32>
    %183 = math.exp %182 : vector<1x128xf32>
    %cst_45 = arith.constant 1.000000e+00 : f32
    %184 = vector.broadcast %cst_45 : f32 to vector<1x128xf32>
    %185 = arith.addf %184, %183 : vector<1x128xf32>
    %186 = arith.divf %184, %185 : vector<1x128xf32>
    %187 = vector.extract_strided_slice %176 {offsets = [0, 128], sizes = [1, 128], strides = [1, 1]} : vector<1x384xf32> to vector<1x128xf32>
    %188 = vector.extract_strided_slice %178 {offsets = [0, 128], sizes = [1, 128], strides = [1, 1]} : vector<1x384xf32> to vector<1x128xf32>
    %189 = arith.addf %187, %188 : vector<1x128xf32>
    %190 = arith.negf %189 : vector<1x128xf32>
    %191 = math.exp %190 : vector<1x128xf32>
    %cst_46 = arith.constant 1.000000e+00 : f32
    %192 = vector.broadcast %cst_46 : f32 to vector<1x128xf32>
    %193 = arith.addf %192, %191 : vector<1x128xf32>
    %194 = arith.divf %192, %193 : vector<1x128xf32>
    %195 = vector.extract_strided_slice %176 {offsets = [0, 256], sizes = [1, 128], strides = [1, 1]} : vector<1x384xf32> to vector<1x128xf32>
    %196 = vector.extract_strided_slice %178 {offsets = [0, 256], sizes = [1, 128], strides = [1, 1]} : vector<1x384xf32> to vector<1x128xf32>
    %197 = arith.addf %196, %9 : vector<1x128xf32>
    %198 = arith.mulf %186, %197 : vector<1x128xf32>
    %199 = arith.addf %195, %198 : vector<1x128xf32>
    %200 = math.tanh %199 : vector<1x128xf32>
    %cst_47 = arith.constant 1.000000e+00 : f32
    %201 = vector.broadcast %cst_47 : f32 to vector<1x128xf32>
    %202 = arith.subf %201, %194 : vector<1x128xf32>
    %203 = arith.mulf %202, %200 : vector<1x128xf32>
    %204 = arith.mulf %194, %172 : vector<1x128xf32>
    %205 = arith.addf %203, %204 : vector<1x128xf32>
    %206 = arith.index_cast %c5_i32 : i32 to index
    %c0_48 = arith.constant 0 : index
    %207 = vector.load %arg17[%206, %c0_48] : memref<8x128xf32, #tpu.memory_space<vmem>>, vector<1x128xf32>
    tpu.vector_store %arg17[%206, %c0_48], %205 {strides = array<i32>} : memref<8x128xf32, #tpu.memory_space<vmem>>, vector<1x128xf32>,
    %c6_i32 = arith.constant 6 : i32
    %208 = arith.index_cast %c6_i32 : i32 to index
    %c0_49 = arith.constant 0 : index
    %209 = vector.load %arg16[%208, %c0_49] : memref<8x384xf32, #tpu.memory_space<vmem>>, vector<1x384xf32>
    %210 = arith.truncf %205 : vector<1x128xf32> to vector<1x128xbf16>
    %cst_50 = arith.constant dense<0.000000e+00> : vector<1x384xf32>
    %211 = tpu.matmul %210, %8, %cst_50 {dimension_numbers = #tpu.dot_dimension_numbers<[1], [0], [0], [1], [0, 0, 1, 1], [], []>} : vector<1x128xbf16>, vector<128x384xbf16>, vector<1x384xf32> -> vector<1x384xf32>
    %212 = vector.extract_strided_slice %209 {offsets = [0, 0], sizes = [1, 128], strides = [1, 1]} : vector<1x384xf32> to vector<1x128xf32>
    %213 = vector.extract_strided_slice %211 {offsets = [0, 0], sizes = [1, 128], strides = [1, 1]} : vector<1x384xf32> to vector<1x128xf32>
    %214 = arith.addf %212, %213 : vector<1x128xf32>
    %215 = arith.negf %214 : vector<1x128xf32>
    %216 = math.exp %215 : vector<1x128xf32>
    %cst_51 = arith.constant 1.000000e+00 : f32
    %217 = vector.broadcast %cst_51 : f32 to vector<1x128xf32>
    %218 = arith.addf %217, %216 : vector<1x128xf32>
    %219 = arith.divf %217, %218 : vector<1x128xf32>
    %220 = vector.extract_strided_slice %209 {offsets = [0, 128], sizes = [1, 128], strides = [1, 1]} : vector<1x384xf32> to vector<1x128xf32>
    %221 = vector.extract_strided_slice %211 {offsets = [0, 128], sizes = [1, 128], strides = [1, 1]} : vector<1x384xf32> to vector<1x128xf32>
    %222 = arith.addf %220, %221 : vector<1x128xf32>
    %223 = arith.negf %222 : vector<1x128xf32>
    %224 = math.exp %223 : vector<1x128xf32>
    %cst_52 = arith.constant 1.000000e+00 : f32
    %225 = vector.broadcast %cst_52 : f32 to vector<1x128xf32>
    %226 = arith.addf %225, %224 : vector<1x128xf32>
    %227 = arith.divf %225, %226 : vector<1x128xf32>
    %228 = vector.extract_strided_slice %209 {offsets = [0, 256], sizes = [1, 128], strides = [1, 1]} : vector<1x384xf32> to vector<1x128xf32>
    %229 = vector.extract_strided_slice %211 {offsets = [0, 256], sizes = [1, 128], strides = [1, 1]} : vector<1x384xf32> to vector<1x128xf32>
    %230 = arith.addf %229, %9 : vector<1x128xf32>
    %231 = arith.mulf %219, %230 : vector<1x128xf32>
    %232 = arith.addf %228, %231 : vector<1x128xf32>
    %233 = math.tanh %232 : vector<1x128xf32>
    %cst_53 = arith.constant 1.000000e+00 : f32
    %234 = vector.broadcast %cst_53 : f32 to vector<1x128xf32>
    %235 = arith.subf %234, %227 : vector<1x128xf32>
    %236 = arith.mulf %235, %233 : vector<1x128xf32>
    %237 = arith.mulf %227, %205 : vector<1x128xf32>
    %238 = arith.addf %236, %237 : vector<1x128xf32>
    %239 = arith.index_cast %c6_i32 : i32 to index
    %c0_54 = arith.constant 0 : index
    %240 = vector.load %arg17[%239, %c0_54] : memref<8x128xf32, #tpu.memory_space<vmem>>, vector<1x128xf32>
    tpu.vector_store %arg17[%239, %c0_54], %238 {strides = array<i32>} : memref<8x128xf32, #tpu.memory_space<vmem>>, vector<1x128xf32>,
    %c7_i32 = arith.constant 7 : i32
    %241 = arith.index_cast %c7_i32 : i32 to index
    %c0_55 = arith.constant 0 : index
    %242 = vector.load %arg16[%241, %c0_55] : memref<8x384xf32, #tpu.memory_space<vmem>>, vector<1x384xf32>
    %243 = arith.truncf %238 : vector<1x128xf32> to vector<1x128xbf16>
    %cst_56 = arith.constant dense<0.000000e+00> : vector<1x384xf32>
    %244 = tpu.matmul %243, %8, %cst_56 {dimension_numbers = #tpu.dot_dimension_numbers<[1], [0], [0], [1], [0, 0, 1, 1], [], []>} : vector<1x128xbf16>, vector<128x384xbf16>, vector<1x384xf32> -> vector<1x384xf32>
    %245 = vector.extract_strided_slice %242 {offsets = [0, 0], sizes = [1, 128], strides = [1, 1]} : vector<1x384xf32> to vector<1x128xf32>
    %246 = vector.extract_strided_slice %244 {offsets = [0, 0], sizes = [1, 128], strides = [1, 1]} : vector<1x384xf32> to vector<1x128xf32>
    %247 = arith.addf %245, %246 : vector<1x128xf32>
    %248 = arith.negf %247 : vector<1x128xf32>
    %249 = math.exp %248 : vector<1x128xf32>
    %cst_57 = arith.constant 1.000000e+00 : f32
    %250 = vector.broadcast %cst_57 : f32 to vector<1x128xf32>
    %251 = arith.addf %250, %249 : vector<1x128xf32>
    %252 = arith.divf %250, %251 : vector<1x128xf32>
    %253 = vector.extract_strided_slice %242 {offsets = [0, 128], sizes = [1, 128], strides = [1, 1]} : vector<1x384xf32> to vector<1x128xf32>
    %254 = vector.extract_strided_slice %244 {offsets = [0, 128], sizes = [1, 128], strides = [1, 1]} : vector<1x384xf32> to vector<1x128xf32>
    %255 = arith.addf %253, %254 : vector<1x128xf32>
    %256 = arith.negf %255 : vector<1x128xf32>
    %257 = math.exp %256 : vector<1x128xf32>
    %cst_58 = arith.constant 1.000000e+00 : f32
    %258 = vector.broadcast %cst_58 : f32 to vector<1x128xf32>
    %259 = arith.addf %258, %257 : vector<1x128xf32>
    %260 = arith.divf %258, %259 : vector<1x128xf32>
    %261 = vector.extract_strided_slice %242 {offsets = [0, 256], sizes = [1, 128], strides = [1, 1]} : vector<1x384xf32> to vector<1x128xf32>
    %262 = vector.extract_strided_slice %244 {offsets = [0, 256], sizes = [1, 128], strides = [1, 1]} : vector<1x384xf32> to vector<1x128xf32>
    %263 = arith.addf %262, %9 : vector<1x128xf32>
    %264 = arith.mulf %252, %263 : vector<1x128xf32>
    %265 = arith.addf %261, %264 : vector<1x128xf32>
    %266 = math.tanh %265 : vector<1x128xf32>
    %cst_59 = arith.constant 1.000000e+00 : f32
    %267 = vector.broadcast %cst_59 : f32 to vector<1x128xf32>
    %268 = arith.subf %267, %260 : vector<1x128xf32>
    %269 = arith.mulf %268, %266 : vector<1x128xf32>
    %270 = arith.mulf %260, %238 : vector<1x128xf32>
    %271 = arith.addf %269, %270 : vector<1x128xf32>
    %272 = arith.index_cast %c7_i32 : i32 to index
    %c0_60 = arith.constant 0 : index
    %273 = vector.load %arg17[%272, %c0_60] : memref<8x128xf32, #tpu.memory_space<vmem>>, vector<1x128xf32>
    tpu.vector_store %arg17[%272, %c0_60], %271 {strides = array<i32>} : memref<8x128xf32, #tpu.memory_space<vmem>>, vector<1x128xf32>,
    %c8_i32 = arith.constant 8 : i32
    %c0_61 = arith.constant 0 : index
    %c0_62 = arith.constant 0 : index
    %274 = vector.load %arg17[%c0_61, %c0_62] : memref<8x128xf32, #tpu.memory_space<vmem>>, vector<8x128xf32>
    %275 = arith.truncf %274 : vector<8x128xf32> to vector<8x128xbf16>
    %c0_63 = arith.constant 0 : index
    %c0_64 = arith.constant 0 : index
    %276 = vector.load %arg6[%c0_63, %c0_64] : memref<128x384xbf16, #tpu.memory_space<vmem>>, vector<128x384xbf16>
    %cst_65 = arith.constant dense<0.000000e+00> : vector<8x384xf32>
    %277 = tpu.matmul %275, %276, %cst_65 {dimension_numbers = #tpu.dot_dimension_numbers<[1], [0], [0], [1], [0, 0, 1, 1], [], []>} : vector<8x128xbf16>, vector<128x384xbf16>, vector<8x384xf32> -> vector<8x384xf32>
    %c0_66 = arith.constant 0 : index
    %c0_67 = arith.constant 0 : index
    %278 = vector.load %arg8[%c0_66, %c0_67] : memref<1x384xf32, #tpu.memory_space<vmem>>, vector<1x384xf32>
    %279 = vector.broadcast %278 : vector<1x384xf32> to vector<8x384xf32>
    %280 = arith.addf %277, %279 : vector<8x384xf32>
    %c0_68 = arith.constant 0 : index
    %c0_69 = arith.constant 0 : index
    %281 = vector.load %arg16[%c0_68, %c0_69] : memref<8x384xf32, #tpu.memory_space<vmem>>, vector<8x384xf32>
    tpu.vector_store %arg16[%c0_68, %c0_69], %280 {strides = array<i32>} : memref<8x384xf32, #tpu.memory_space<vmem>>, vector<8x384xf32>,
    %c1 = arith.constant 1 : index
    %c0_70 = arith.constant 0 : index
    %282 = vector.load %arg1[%c1, %c0_70] : memref<2x128xf32, #tpu.memory_space<vmem>>, vector<1x128xf32>
    %c0_71 = arith.constant 0 : index
    %c0_72 = arith.constant 0 : index
    %283 = vector.load %arg7[%c0_71, %c0_72] : memref<128x384xbf16, #tpu.memory_space<vmem>>, vector<128x384xbf16>
    %c0_73 = arith.constant 0 : index
    %c0_74 = arith.constant 0 : index
    %284 = vector.load %arg9[%c0_73, %c0_74] : memref<1x128xf32, #tpu.memory_space<vmem>>, vector<1x128xf32>
    %c0_i32_75 = arith.constant 0 : i32
    %285 = arith.index_cast %c0_i32_75 : i32 to index
    %c0_76 = arith.constant 0 : index
    %286 = vector.load %arg16[%285, %c0_76] : memref<8x384xf32, #tpu.memory_space<vmem>>, vector<1x384xf32>
    %287 = arith.truncf %282 : vector<1x128xf32> to vector<1x128xbf16>
    %cst_77 = arith.constant dense<0.000000e+00> : vector<1x384xf32>
    %288 = tpu.matmul %287, %283, %cst_77 {dimension_numbers = #tpu.dot_dimension_numbers<[1], [0], [0], [1], [0, 0, 1, 1], [], []>} : vector<1x128xbf16>, vector<128x384xbf16>, vector<1x384xf32> -> vector<1x384xf32>
    %289 = vector.extract_strided_slice %286 {offsets = [0, 0], sizes = [1, 128], strides = [1, 1]} : vector<1x384xf32> to vector<1x128xf32>
    %290 = vector.extract_strided_slice %288 {offsets = [0, 0], sizes = [1, 128], strides = [1, 1]} : vector<1x384xf32> to vector<1x128xf32>
    %291 = arith.addf %289, %290 : vector<1x128xf32>
    %292 = arith.negf %291 : vector<1x128xf32>
    %293 = math.exp %292 : vector<1x128xf32>
    %cst_78 = arith.constant 1.000000e+00 : f32
    %294 = vector.broadcast %cst_78 : f32 to vector<1x128xf32>
    %295 = arith.addf %294, %293 : vector<1x128xf32>
    %296 = arith.divf %294, %295 : vector<1x128xf32>
    %297 = vector.extract_strided_slice %286 {offsets = [0, 128], sizes = [1, 128], strides = [1, 1]} : vector<1x384xf32> to vector<1x128xf32>
    %298 = vector.extract_strided_slice %288 {offsets = [0, 128], sizes = [1, 128], strides = [1, 1]} : vector<1x384xf32> to vector<1x128xf32>
    %299 = arith.addf %297, %298 : vector<1x128xf32>
    %300 = arith.negf %299 : vector<1x128xf32>
    %301 = math.exp %300 : vector<1x128xf32>
    %cst_79 = arith.constant 1.000000e+00 : f32
    %302 = vector.broadcast %cst_79 : f32 to vector<1x128xf32>
    %303 = arith.addf %302, %301 : vector<1x128xf32>
    %304 = arith.divf %302, %303 : vector<1x128xf32>
    %305 = vector.extract_strided_slice %286 {offsets = [0, 256], sizes = [1, 128], strides = [1, 1]} : vector<1x384xf32> to vector<1x128xf32>
    %306 = vector.extract_strided_slice %288 {offsets = [0, 256], sizes = [1, 128], strides = [1, 1]} : vector<1x384xf32> to vector<1x128xf32>
    %307 = arith.addf %306, %284 : vector<1x128xf32>
    %308 = arith.mulf %296, %307 : vector<1x128xf32>
    %309 = arith.addf %305, %308 : vector<1x128xf32>
    %310 = math.tanh %309 : vector<1x128xf32>
    %cst_80 = arith.constant 1.000000e+00 : f32
    %311 = vector.broadcast %cst_80 : f32 to vector<1x128xf32>
    %312 = arith.subf %311, %304 : vector<1x128xf32>
    %313 = arith.mulf %312, %310 : vector<1x128xf32>
    %314 = arith.mulf %304, %282 : vector<1x128xf32>
    %315 = arith.addf %313, %314 : vector<1x128xf32>
    %316 = arith.index_cast %c0_i32_75 : i32 to index
    %c0_81 = arith.constant 0 : index
    %317 = vector.load %arg17[%316, %c0_81] : memref<8x128xf32, #tpu.memory_space<vmem>>, vector<1x128xf32>
    tpu.vector_store %arg17[%316, %c0_81], %315 {strides = array<i32>} : memref<8x128xf32, #tpu.memory_space<vmem>>, vector<1x128xf32>,
    %c1_i32_82 = arith.constant 1 : i32
    %318 = arith.index_cast %c1_i32_82 : i32 to index
    %c0_83 = arith.constant 0 : index
    %319 = vector.load %arg16[%318, %c0_83] : memref<8x384xf32, #tpu.memory_space<vmem>>, vector<1x384xf32>
    %320 = arith.truncf %315 : vector<1x128xf32> to vector<1x128xbf16>
    %cst_84 = arith.constant dense<0.000000e+00> : vector<1x384xf32>
    %321 = tpu.matmul %320, %283, %cst_84 {dimension_numbers = #tpu.dot_dimension_numbers<[1], [0], [0], [1], [0, 0, 1, 1], [], []>} : vector<1x128xbf16>, vector<128x384xbf16>, vector<1x384xf32> -> vector<1x384xf32>
    %322 = vector.extract_strided_slice %319 {offsets = [0, 0], sizes = [1, 128], strides = [1, 1]} : vector<1x384xf32> to vector<1x128xf32>
    %323 = vector.extract_strided_slice %321 {offsets = [0, 0], sizes = [1, 128], strides = [1, 1]} : vector<1x384xf32> to vector<1x128xf32>
    %324 = arith.addf %322, %323 : vector<1x128xf32>
    %325 = arith.negf %324 : vector<1x128xf32>
    %326 = math.exp %325 : vector<1x128xf32>
    %cst_85 = arith.constant 1.000000e+00 : f32
    %327 = vector.broadcast %cst_85 : f32 to vector<1x128xf32>
    %328 = arith.addf %327, %326 : vector<1x128xf32>
    %329 = arith.divf %327, %328 : vector<1x128xf32>
    %330 = vector.extract_strided_slice %319 {offsets = [0, 128], sizes = [1, 128], strides = [1, 1]} : vector<1x384xf32> to vector<1x128xf32>
    %331 = vector.extract_strided_slice %321 {offsets = [0, 128], sizes = [1, 128], strides = [1, 1]} : vector<1x384xf32> to vector<1x128xf32>
    %332 = arith.addf %330, %331 : vector<1x128xf32>
    %333 = arith.negf %332 : vector<1x128xf32>
    %334 = math.exp %333 : vector<1x128xf32>
    %cst_86 = arith.constant 1.000000e+00 : f32
    %335 = vector.broadcast %cst_86 : f32 to vector<1x128xf32>
    %336 = arith.addf %335, %334 : vector<1x128xf32>
    %337 = arith.divf %335, %336 : vector<1x128xf32>
    %338 = vector.extract_strided_slice %319 {offsets = [0, 256], sizes = [1, 128], strides = [1, 1]} : vector<1x384xf32> to vector<1x128xf32>
    %339 = vector.extract_strided_slice %321 {offsets = [0, 256], sizes = [1, 128], strides = [1, 1]} : vector<1x384xf32> to vector<1x128xf32>
    %340 = arith.addf %339, %284 : vector<1x128xf32>
    %341 = arith.mulf %329, %340 : vector<1x128xf32>
    %342 = arith.addf %338, %341 : vector<1x128xf32>
    %343 = math.tanh %342 : vector<1x128xf32>
    %cst_87 = arith.constant 1.000000e+00 : f32
    %344 = vector.broadcast %cst_87 : f32 to vector<1x128xf32>
    %345 = arith.subf %344, %337 : vector<1x128xf32>
    %346 = arith.mulf %345, %343 : vector<1x128xf32>
    %347 = arith.mulf %337, %315 : vector<1x128xf32>
    %348 = arith.addf %346, %347 : vector<1x128xf32>
    %349 = arith.index_cast %c1_i32_82 : i32 to index
    %c0_88 = arith.constant 0 : index
    %350 = vector.load %arg17[%349, %c0_88] : memref<8x128xf32, #tpu.memory_space<vmem>>, vector<1x128xf32>
    tpu.vector_store %arg17[%349, %c0_88], %348 {strides = array<i32>} : memref<8x128xf32, #tpu.memory_space<vmem>>, vector<1x128xf32>,
    %c2_i32_89 = arith.constant 2 : i32
    %351 = arith.index_cast %c2_i32_89 : i32 to index
    %c0_90 = arith.constant 0 : index
    %352 = vector.load %arg16[%351, %c0_90] : memref<8x384xf32, #tpu.memory_space<vmem>>, vector<1x384xf32>
    %353 = arith.truncf %348 : vector<1x128xf32> to vector<1x128xbf16>
    %cst_91 = arith.constant dense<0.000000e+00> : vector<1x384xf32>
    %354 = tpu.matmul %353, %283, %cst_91 {dimension_numbers = #tpu.dot_dimension_numbers<[1], [0], [0], [1], [0, 0, 1, 1], [], []>} : vector<1x128xbf16>, vector<128x384xbf16>, vector<1x384xf32> -> vector<1x384xf32>
    %355 = vector.extract_strided_slice %352 {offsets = [0, 0], sizes = [1, 128], strides = [1, 1]} : vector<1x384xf32> to vector<1x128xf32>
    %356 = vector.extract_strided_slice %354 {offsets = [0, 0], sizes = [1, 128], strides = [1, 1]} : vector<1x384xf32> to vector<1x128xf32>
    %357 = arith.addf %355, %356 : vector<1x128xf32>
    %358 = arith.negf %357 : vector<1x128xf32>
    %359 = math.exp %358 : vector<1x128xf32>
    %cst_92 = arith.constant 1.000000e+00 : f32
    %360 = vector.broadcast %cst_92 : f32 to vector<1x128xf32>
    %361 = arith.addf %360, %359 : vector<1x128xf32>
    %362 = arith.divf %360, %361 : vector<1x128xf32>
    %363 = vector.extract_strided_slice %352 {offsets = [0, 128], sizes = [1, 128], strides = [1, 1]} : vector<1x384xf32> to vector<1x128xf32>
    %364 = vector.extract_strided_slice %354 {offsets = [0, 128], sizes = [1, 128], strides = [1, 1]} : vector<1x384xf32> to vector<1x128xf32>
    %365 = arith.addf %363, %364 : vector<1x128xf32>
    %366 = arith.negf %365 : vector<1x128xf32>
    %367 = math.exp %366 : vector<1x128xf32>
    %cst_93 = arith.constant 1.000000e+00 : f32
    %368 = vector.broadcast %cst_93 : f32 to vector<1x128xf32>
    %369 = arith.addf %368, %367 : vector<1x128xf32>
    %370 = arith.divf %368, %369 : vector<1x128xf32>
    %371 = vector.extract_strided_slice %352 {offsets = [0, 256], sizes = [1, 128], strides = [1, 1]} : vector<1x384xf32> to vector<1x128xf32>
    %372 = vector.extract_strided_slice %354 {offsets = [0, 256], sizes = [1, 128], strides = [1, 1]} : vector<1x384xf32> to vector<1x128xf32>
    %373 = arith.addf %372, %284 : vector<1x128xf32>
    %374 = arith.mulf %362, %373 : vector<1x128xf32>
    %375 = arith.addf %371, %374 : vector<1x128xf32>
    %376 = math.tanh %375 : vector<1x128xf32>
    %cst_94 = arith.constant 1.000000e+00 : f32
    %377 = vector.broadcast %cst_94 : f32 to vector<1x128xf32>
    %378 = arith.subf %377, %370 : vector<1x128xf32>
    %379 = arith.mulf %378, %376 : vector<1x128xf32>
    %380 = arith.mulf %370, %348 : vector<1x128xf32>
    %381 = arith.addf %379, %380 : vector<1x128xf32>
    %382 = arith.index_cast %c2_i32_89 : i32 to index
    %c0_95 = arith.constant 0 : index
    %383 = vector.load %arg17[%382, %c0_95] : memref<8x128xf32, #tpu.memory_space<vmem>>, vector<1x128xf32>
    tpu.vector_store %arg17[%382, %c0_95], %381 {strides = array<i32>} : memref<8x128xf32, #tpu.memory_space<vmem>>, vector<1x128xf32>,
    %c3_i32_96 = arith.constant 3 : i32
    %384 = arith.index_cast %c3_i32_96 : i32 to index
    %c0_97 = arith.constant 0 : index
    %385 = vector.load %arg16[%384, %c0_97] : memref<8x384xf32, #tpu.memory_space<vmem>>, vector<1x384xf32>
    %386 = arith.truncf %381 : vector<1x128xf32> to vector<1x128xbf16>
    %cst_98 = arith.constant dense<0.000000e+00> : vector<1x384xf32>
    %387 = tpu.matmul %386, %283, %cst_98 {dimension_numbers = #tpu.dot_dimension_numbers<[1], [0], [0], [1], [0, 0, 1, 1], [], []>} : vector<1x128xbf16>, vector<128x384xbf16>, vector<1x384xf32> -> vector<1x384xf32>
    %388 = vector.extract_strided_slice %385 {offsets = [0, 0], sizes = [1, 128], strides = [1, 1]} : vector<1x384xf32> to vector<1x128xf32>
    %389 = vector.extract_strided_slice %387 {offsets = [0, 0], sizes = [1, 128], strides = [1, 1]} : vector<1x384xf32> to vector<1x128xf32>
    %390 = arith.addf %388, %389 : vector<1x128xf32>
    %391 = arith.negf %390 : vector<1x128xf32>
    %392 = math.exp %391 : vector<1x128xf32>
    %cst_99 = arith.constant 1.000000e+00 : f32
    %393 = vector.broadcast %cst_99 : f32 to vector<1x128xf32>
    %394 = arith.addf %393, %392 : vector<1x128xf32>
    %395 = arith.divf %393, %394 : vector<1x128xf32>
    %396 = vector.extract_strided_slice %385 {offsets = [0, 128], sizes = [1, 128], strides = [1, 1]} : vector<1x384xf32> to vector<1x128xf32>
    %397 = vector.extract_strided_slice %387 {offsets = [0, 128], sizes = [1, 128], strides = [1, 1]} : vector<1x384xf32> to vector<1x128xf32>
    %398 = arith.addf %396, %397 : vector<1x128xf32>
    %399 = arith.negf %398 : vector<1x128xf32>
    %400 = math.exp %399 : vector<1x128xf32>
    %cst_100 = arith.constant 1.000000e+00 : f32
    %401 = vector.broadcast %cst_100 : f32 to vector<1x128xf32>
    %402 = arith.addf %401, %400 : vector<1x128xf32>
    %403 = arith.divf %401, %402 : vector<1x128xf32>
    %404 = vector.extract_strided_slice %385 {offsets = [0, 256], sizes = [1, 128], strides = [1, 1]} : vector<1x384xf32> to vector<1x128xf32>
    %405 = vector.extract_strided_slice %387 {offsets = [0, 256], sizes = [1, 128], strides = [1, 1]} : vector<1x384xf32> to vector<1x128xf32>
    %406 = arith.addf %405, %284 : vector<1x128xf32>
    %407 = arith.mulf %395, %406 : vector<1x128xf32>
    %408 = arith.addf %404, %407 : vector<1x128xf32>
    %409 = math.tanh %408 : vector<1x128xf32>
    %cst_101 = arith.constant 1.000000e+00 : f32
    %410 = vector.broadcast %cst_101 : f32 to vector<1x128xf32>
    %411 = arith.subf %410, %403 : vector<1x128xf32>
    %412 = arith.mulf %411, %409 : vector<1x128xf32>
    %413 = arith.mulf %403, %381 : vector<1x128xf32>
    %414 = arith.addf %412, %413 : vector<1x128xf32>
    %415 = arith.index_cast %c3_i32_96 : i32 to index
    %c0_102 = arith.constant 0 : index
    %416 = vector.load %arg17[%415, %c0_102] : memref<8x128xf32, #tpu.memory_space<vmem>>, vector<1x128xf32>
    tpu.vector_store %arg17[%415, %c0_102], %414 {strides = array<i32>} : memref<8x128xf32, #tpu.memory_space<vmem>>, vector<1x128xf32>,
    %c4_i32_103 = arith.constant 4 : i32
    %417 = arith.index_cast %c4_i32_103 : i32 to index
    %c0_104 = arith.constant 0 : index
    %418 = vector.load %arg16[%417, %c0_104] : memref<8x384xf32, #tpu.memory_space<vmem>>, vector<1x384xf32>
    %419 = arith.truncf %414 : vector<1x128xf32> to vector<1x128xbf16>
    %cst_105 = arith.constant dense<0.000000e+00> : vector<1x384xf32>
    %420 = tpu.matmul %419, %283, %cst_105 {dimension_numbers = #tpu.dot_dimension_numbers<[1], [0], [0], [1], [0, 0, 1, 1], [], []>} : vector<1x128xbf16>, vector<128x384xbf16>, vector<1x384xf32> -> vector<1x384xf32>
    %421 = vector.extract_strided_slice %418 {offsets = [0, 0], sizes = [1, 128], strides = [1, 1]} : vector<1x384xf32> to vector<1x128xf32>
    %422 = vector.extract_strided_slice %420 {offsets = [0, 0], sizes = [1, 128], strides = [1, 1]} : vector<1x384xf32> to vector<1x128xf32>
    %423 = arith.addf %421, %422 : vector<1x128xf32>
    %424 = arith.negf %423 : vector<1x128xf32>
    %425 = math.exp %424 : vector<1x128xf32>
    %cst_106 = arith.constant 1.000000e+00 : f32
    %426 = vector.broadcast %cst_106 : f32 to vector<1x128xf32>
    %427 = arith.addf %426, %425 : vector<1x128xf32>
    %428 = arith.divf %426, %427 : vector<1x128xf32>
    %429 = vector.extract_strided_slice %418 {offsets = [0, 128], sizes = [1, 128], strides = [1, 1]} : vector<1x384xf32> to vector<1x128xf32>
    %430 = vector.extract_strided_slice %420 {offsets = [0, 128], sizes = [1, 128], strides = [1, 1]} : vector<1x384xf32> to vector<1x128xf32>
    %431 = arith.addf %429, %430 : vector<1x128xf32>
    %432 = arith.negf %431 : vector<1x128xf32>
    %433 = math.exp %432 : vector<1x128xf32>
    %cst_107 = arith.constant 1.000000e+00 : f32
    %434 = vector.broadcast %cst_107 : f32 to vector<1x128xf32>
    %435 = arith.addf %434, %433 : vector<1x128xf32>
    %436 = arith.divf %434, %435 : vector<1x128xf32>
    %437 = vector.extract_strided_slice %418 {offsets = [0, 256], sizes = [1, 128], strides = [1, 1]} : vector<1x384xf32> to vector<1x128xf32>
    %438 = vector.extract_strided_slice %420 {offsets = [0, 256], sizes = [1, 128], strides = [1, 1]} : vector<1x384xf32> to vector<1x128xf32>
    %439 = arith.addf %438, %284 : vector<1x128xf32>
    %440 = arith.mulf %428, %439 : vector<1x128xf32>
    %441 = arith.addf %437, %440 : vector<1x128xf32>
    %442 = math.tanh %441 : vector<1x128xf32>
    %cst_108 = arith.constant 1.000000e+00 : f32
    %443 = vector.broadcast %cst_108 : f32 to vector<1x128xf32>
    %444 = arith.subf %443, %436 : vector<1x128xf32>
    %445 = arith.mulf %444, %442 : vector<1x128xf32>
    %446 = arith.mulf %436, %414 : vector<1x128xf32>
    %447 = arith.addf %445, %446 : vector<1x128xf32>
    %448 = arith.index_cast %c4_i32_103 : i32 to index
    %c0_109 = arith.constant 0 : index
    %449 = vector.load %arg17[%448, %c0_109] : memref<8x128xf32, #tpu.memory_space<vmem>>, vector<1x128xf32>
    tpu.vector_store %arg17[%448, %c0_109], %447 {strides = array<i32>} : memref<8x128xf32, #tpu.memory_space<vmem>>, vector<1x128xf32>,
    %c5_i32_110 = arith.constant 5 : i32
    %450 = arith.index_cast %c5_i32_110 : i32 to index
    %c0_111 = arith.constant 0 : index
    %451 = vector.load %arg16[%450, %c0_111] : memref<8x384xf32, #tpu.memory_space<vmem>>, vector<1x384xf32>
    %452 = arith.truncf %447 : vector<1x128xf32> to vector<1x128xbf16>
    %cst_112 = arith.constant dense<0.000000e+00> : vector<1x384xf32>
    %453 = tpu.matmul %452, %283, %cst_112 {dimension_numbers = #tpu.dot_dimension_numbers<[1], [0], [0], [1], [0, 0, 1, 1], [], []>} : vector<1x128xbf16>, vector<128x384xbf16>, vector<1x384xf32> -> vector<1x384xf32>
    %454 = vector.extract_strided_slice %451 {offsets = [0, 0], sizes = [1, 128], strides = [1, 1]} : vector<1x384xf32> to vector<1x128xf32>
    %455 = vector.extract_strided_slice %453 {offsets = [0, 0], sizes = [1, 128], strides = [1, 1]} : vector<1x384xf32> to vector<1x128xf32>
    %456 = arith.addf %454, %455 : vector<1x128xf32>
    %457 = arith.negf %456 : vector<1x128xf32>
    %458 = math.exp %457 : vector<1x128xf32>
    %cst_113 = arith.constant 1.000000e+00 : f32
    %459 = vector.broadcast %cst_113 : f32 to vector<1x128xf32>
    %460 = arith.addf %459, %458 : vector<1x128xf32>
    %461 = arith.divf %459, %460 : vector<1x128xf32>
    %462 = vector.extract_strided_slice %451 {offsets = [0, 128], sizes = [1, 128], strides = [1, 1]} : vector<1x384xf32> to vector<1x128xf32>
    %463 = vector.extract_strided_slice %453 {offsets = [0, 128], sizes = [1, 128], strides = [1, 1]} : vector<1x384xf32> to vector<1x128xf32>
    %464 = arith.addf %462, %463 : vector<1x128xf32>
    %465 = arith.negf %464 : vector<1x128xf32>
    %466 = math.exp %465 : vector<1x128xf32>
    %cst_114 = arith.constant 1.000000e+00 : f32
    %467 = vector.broadcast %cst_114 : f32 to vector<1x128xf32>
    %468 = arith.addf %467, %466 : vector<1x128xf32>
    %469 = arith.divf %467, %468 : vector<1x128xf32>
    %470 = vector.extract_strided_slice %451 {offsets = [0, 256], sizes = [1, 128], strides = [1, 1]} : vector<1x384xf32> to vector<1x128xf32>
    %471 = vector.extract_strided_slice %453 {offsets = [0, 256], sizes = [1, 128], strides = [1, 1]} : vector<1x384xf32> to vector<1x128xf32>
    %472 = arith.addf %471, %284 : vector<1x128xf32>
    %473 = arith.mulf %461, %472 : vector<1x128xf32>
    %474 = arith.addf %470, %473 : vector<1x128xf32>
    %475 = math.tanh %474 : vector<1x128xf32>
    %cst_115 = arith.constant 1.000000e+00 : f32
    %476 = vector.broadcast %cst_115 : f32 to vector<1x128xf32>
    %477 = arith.subf %476, %469 : vector<1x128xf32>
    %478 = arith.mulf %477, %475 : vector<1x128xf32>
    %479 = arith.mulf %469, %447 : vector<1x128xf32>
    %480 = arith.addf %478, %479 : vector<1x128xf32>
    %481 = arith.index_cast %c5_i32_110 : i32 to index
    %c0_116 = arith.constant 0 : index
    %482 = vector.load %arg17[%481, %c0_116] : memref<8x128xf32, #tpu.memory_space<vmem>>, vector<1x128xf32>
    tpu.vector_store %arg17[%481, %c0_116], %480 {strides = array<i32>} : memref<8x128xf32, #tpu.memory_space<vmem>>, vector<1x128xf32>,
    %c6_i32_117 = arith.constant 6 : i32
    %483 = arith.index_cast %c6_i32_117 : i32 to index
    %c0_118 = arith.constant 0 : index
    %484 = vector.load %arg16[%483, %c0_118] : memref<8x384xf32, #tpu.memory_space<vmem>>, vector<1x384xf32>
    %485 = arith.truncf %480 : vector<1x128xf32> to vector<1x128xbf16>
    %cst_119 = arith.constant dense<0.000000e+00> : vector<1x384xf32>
    %486 = tpu.matmul %485, %283, %cst_119 {dimension_numbers = #tpu.dot_dimension_numbers<[1], [0], [0], [1], [0, 0, 1, 1], [], []>} : vector<1x128xbf16>, vector<128x384xbf16>, vector<1x384xf32> -> vector<1x384xf32>
    %487 = vector.extract_strided_slice %484 {offsets = [0, 0], sizes = [1, 128], strides = [1, 1]} : vector<1x384xf32> to vector<1x128xf32>
    %488 = vector.extract_strided_slice %486 {offsets = [0, 0], sizes = [1, 128], strides = [1, 1]} : vector<1x384xf32> to vector<1x128xf32>
    %489 = arith.addf %487, %488 : vector<1x128xf32>
    %490 = arith.negf %489 : vector<1x128xf32>
    %491 = math.exp %490 : vector<1x128xf32>
    %cst_120 = arith.constant 1.000000e+00 : f32
    %492 = vector.broadcast %cst_120 : f32 to vector<1x128xf32>
    %493 = arith.addf %492, %491 : vector<1x128xf32>
    %494 = arith.divf %492, %493 : vector<1x128xf32>
    %495 = vector.extract_strided_slice %484 {offsets = [0, 128], sizes = [1, 128], strides = [1, 1]} : vector<1x384xf32> to vector<1x128xf32>
    %496 = vector.extract_strided_slice %486 {offsets = [0, 128], sizes = [1, 128], strides = [1, 1]} : vector<1x384xf32> to vector<1x128xf32>
    %497 = arith.addf %495, %496 : vector<1x128xf32>
    %498 = arith.negf %497 : vector<1x128xf32>
    %499 = math.exp %498 : vector<1x128xf32>
    %cst_121 = arith.constant 1.000000e+00 : f32
    %500 = vector.broadcast %cst_121 : f32 to vector<1x128xf32>
    %501 = arith.addf %500, %499 : vector<1x128xf32>
    %502 = arith.divf %500, %501 : vector<1x128xf32>
    %503 = vector.extract_strided_slice %484 {offsets = [0, 256], sizes = [1, 128], strides = [1, 1]} : vector<1x384xf32> to vector<1x128xf32>
    %504 = vector.extract_strided_slice %486 {offsets = [0, 256], sizes = [1, 128], strides = [1, 1]} : vector<1x384xf32> to vector<1x128xf32>
    %505 = arith.addf %504, %284 : vector<1x128xf32>
    %506 = arith.mulf %494, %505 : vector<1x128xf32>
    %507 = arith.addf %503, %506 : vector<1x128xf32>
    %508 = math.tanh %507 : vector<1x128xf32>
    %cst_122 = arith.constant 1.000000e+00 : f32
    %509 = vector.broadcast %cst_122 : f32 to vector<1x128xf32>
    %510 = arith.subf %509, %502 : vector<1x128xf32>
    %511 = arith.mulf %510, %508 : vector<1x128xf32>
    %512 = arith.mulf %502, %480 : vector<1x128xf32>
    %513 = arith.addf %511, %512 : vector<1x128xf32>
    %514 = arith.index_cast %c6_i32_117 : i32 to index
    %c0_123 = arith.constant 0 : index
    %515 = vector.load %arg17[%514, %c0_123] : memref<8x128xf32, #tpu.memory_space<vmem>>, vector<1x128xf32>
    tpu.vector_store %arg17[%514, %c0_123], %513 {strides = array<i32>} : memref<8x128xf32, #tpu.memory_space<vmem>>, vector<1x128xf32>,
    %c7_i32_124 = arith.constant 7 : i32
    %516 = arith.index_cast %c7_i32_124 : i32 to index
    %c0_125 = arith.constant 0 : index
    %517 = vector.load %arg16[%516, %c0_125] : memref<8x384xf32, #tpu.memory_space<vmem>>, vector<1x384xf32>
    %518 = arith.truncf %513 : vector<1x128xf32> to vector<1x128xbf16>
    %cst_126 = arith.constant dense<0.000000e+00> : vector<1x384xf32>
    %519 = tpu.matmul %518, %283, %cst_126 {dimension_numbers = #tpu.dot_dimension_numbers<[1], [0], [0], [1], [0, 0, 1, 1], [], []>} : vector<1x128xbf16>, vector<128x384xbf16>, vector<1x384xf32> -> vector<1x384xf32>
    %520 = vector.extract_strided_slice %517 {offsets = [0, 0], sizes = [1, 128], strides = [1, 1]} : vector<1x384xf32> to vector<1x128xf32>
    %521 = vector.extract_strided_slice %519 {offsets = [0, 0], sizes = [1, 128], strides = [1, 1]} : vector<1x384xf32> to vector<1x128xf32>
    %522 = arith.addf %520, %521 : vector<1x128xf32>
    %523 = arith.negf %522 : vector<1x128xf32>
    %524 = math.exp %523 : vector<1x128xf32>
    %cst_127 = arith.constant 1.000000e+00 : f32
    %525 = vector.broadcast %cst_127 : f32 to vector<1x128xf32>
    %526 = arith.addf %525, %524 : vector<1x128xf32>
    %527 = arith.divf %525, %526 : vector<1x128xf32>
    %528 = vector.extract_strided_slice %517 {offsets = [0, 128], sizes = [1, 128], strides = [1, 1]} : vector<1x384xf32> to vector<1x128xf32>
    %529 = vector.extract_strided_slice %519 {offsets = [0, 128], sizes = [1, 128], strides = [1, 1]} : vector<1x384xf32> to vector<1x128xf32>
    %530 = arith.addf %528, %529 : vector<1x128xf32>
    %531 = arith.negf %530 : vector<1x128xf32>
    %532 = math.exp %531 : vector<1x128xf32>
    %cst_128 = arith.constant 1.000000e+00 : f32
    %533 = vector.broadcast %cst_128 : f32 to vector<1x128xf32>
    %534 = arith.addf %533, %532 : vector<1x128xf32>
    %535 = arith.divf %533, %534 : vector<1x128xf32>
    %536 = vector.extract_strided_slice %517 {offsets = [0, 256], sizes = [1, 128], strides = [1, 1]} : vector<1x384xf32> to vector<1x128xf32>
    %537 = vector.extract_strided_slice %519 {offsets = [0, 256], sizes = [1, 128], strides = [1, 1]} : vector<1x384xf32> to vector<1x128xf32>
    %538 = arith.addf %537, %284 : vector<1x128xf32>
    %539 = arith.mulf %527, %538 : vector<1x128xf32>
    %540 = arith.addf %536, %539 : vector<1x128xf32>
    %541 = math.tanh %540 : vector<1x128xf32>
    %cst_129 = arith.constant 1.000000e+00 : f32
    %542 = vector.broadcast %cst_129 : f32 to vector<1x128xf32>
    %543 = arith.subf %542, %535 : vector<1x128xf32>
    %544 = arith.mulf %543, %541 : vector<1x128xf32>
    %545 = arith.mulf %535, %513 : vector<1x128xf32>
    %546 = arith.addf %544, %545 : vector<1x128xf32>
    %547 = arith.index_cast %c7_i32_124 : i32 to index
    %c0_130 = arith.constant 0 : index
    %548 = vector.load %arg17[%547, %c0_130] : memref<8x128xf32, #tpu.memory_space<vmem>>, vector<1x128xf32>
    tpu.vector_store %arg17[%547, %c0_130], %546 {strides = array<i32>} : memref<8x128xf32, #tpu.memory_space<vmem>>, vector<1x128xf32>,
    %c8_i32_131 = arith.constant 8 : i32
    %c0_132 = arith.constant 0 : index
    %c0_133 = arith.constant 0 : index
    %549 = vector.load %arg14[%c0_132, %c0_133] : memref<2x128xf32, #tpu.memory_space<vmem>>, vector<1x128xf32>
    tpu.vector_store %arg14[%c0_132, %c0_133], %271 {strides = array<i32>} : memref<2x128xf32, #tpu.memory_space<vmem>>, vector<1x128xf32>,
    %c1_134 = arith.constant 1 : index
    %c0_135 = arith.constant 0 : index
    %550 = vector.load %arg14[%c1_134, %c0_135] : memref<2x128xf32, #tpu.memory_space<vmem>>, vector<1x128xf32>
    tpu.vector_store %arg14[%c1_134, %c0_135], %546 {strides = array<i32>} : memref<2x128xf32, #tpu.memory_space<vmem>>, vector<1x128xf32>,
    %c0_136 = arith.constant 0 : index
    %c0_137 = arith.constant 0 : index
    %551 = vector.load %arg17[%c0_136, %c0_137] : memref<8x128xf32, #tpu.memory_space<vmem>>, vector<8x128xf32>
    %552 = arith.truncf %551 : vector<8x128xf32> to vector<8x128xbf16>
    %c0_138 = arith.constant 0 : index
    %c0_139 = arith.constant 0 : index
    %553 = vector.load %arg10[%c0_138, %c0_139] : memref<128x128xbf16, #tpu.memory_space<vmem>>, vector<128x128xbf16>
    %cst_140 = arith.constant dense<0.000000e+00> : vector<8x128xf32>
    %554 = tpu.matmul %552, %553, %cst_140 {dimension_numbers = #tpu.dot_dimension_numbers<[1], [0], [0], [1], [0, 0, 1, 1], [], []>} : vector<8x128xbf16>, vector<128x128xbf16>, vector<8x128xf32> -> vector<8x128xf32>
    %c0_141 = arith.constant 0 : index
    %c0_142 = arith.constant 0 : index
    %555 = vector.load %arg11[%c0_141, %c0_142] : memref<1x128xf32, #tpu.memory_space<vmem>>, vector<1x128xf32>
    %556 = vector.broadcast %555 : vector<1x128xf32> to vector<8x128xf32>
    %557 = arith.addf %554, %556 : vector<8x128xf32>
    %cst_143 = arith.constant 0.000000e+00 : f32
    %558 = vector.broadcast %cst_143 : f32 to vector<8x128xf32>
    %559 = arith.maximumf %557, %558 : vector<8x128xf32>
    %560 = arith.truncf %559 : vector<8x128xf32> to vector<8x128xbf16>
    %c0_144 = arith.constant 0 : index
    %c0_145 = arith.constant 0 : index
    %561 = vector.load %arg12[%c0_144, %c0_145] : memref<128x128xbf16, #tpu.memory_space<vmem>>, vector<128x128xbf16>
    %cst_146 = arith.constant dense<0.000000e+00> : vector<8x128xf32>
    %562 = tpu.matmul %560, %561, %cst_146 {dimension_numbers = #tpu.dot_dimension_numbers<[1], [0], [0], [1], [0, 0, 1, 1], [], []>} : vector<8x128xbf16>, vector<128x128xbf16>, vector<8x128xf32> -> vector<8x128xf32>
    %c0_147 = arith.constant 0 : index
    %c0_148 = arith.constant 0 : index
    %563 = vector.load %arg13[%c0_147, %c0_148] : memref<1x128xf32, #tpu.memory_space<vmem>>, vector<1x128xf32>
    %564 = vector.broadcast %563 : vector<1x128xf32> to vector<8x128xf32>
    %565 = arith.addf %562, %564 : vector<8x128xf32>
    %c0_149 = arith.constant 0 : index
    %c0_150 = arith.constant 0 : index
    %566 = vector.load %arg15[%c0_149, %c0_150] : memref<8x128xf32, #tpu.memory_space<vmem>>, vector<8x128xf32>
    tpu.vector_store %arg15[%c0_149, %c0_150], %565 {strides = array<i32>} : memref<8x128xf32, #tpu.memory_space<vmem>>, vector<8x128xf32>,
    return
  }
}

</mosaic_0001>

<bundles_post_ra>
// kernel: tpu_custom_call.1
= control target key start
LH: loop header
LB: loop body
LE: loop exit
PB: predicated region body
PF: predicated region fallthrough
CT: control target
= control target key end

     0   :  { %21 = vsyncpa [#allocation5], 0  ;;  %s5346_s0 = inlined_call_operand.hbm [shape: bf16[8,128], index: 0, kind: input, shape index: {}]   ;;  %s5347_s1 = inlined_call_operand.hbm [shape: f32[2,128], index: 1, kind: input, shape index: {}]   ;;  %s5348_s2 = inlined_call_operand.hbm [shape: bf16[128,384], index: 2, kind: input, shape index: {}]   ;;  %s5349_s3 = inlined_call_operand.hbm [shape: bf16[128,384], index: 3, kind: input, shape index: {}]   ;;  %s5350_s4 = inlined_call_operand.vmem [shape: f32[1,384], index: 4, kind: input, shape index: {}]   ;;  %s5351_s5 = inlined_call_operand.vmem [shape: f32[1,128], index: 5, kind: input, shape index: {}]   ;;  %s5352_s6 = inlined_call_operand.hbm [shape: bf16[128,384], index: 6, kind: input, shape index: {}]   ;;  %s5353_s7 = inlined_call_operand.hbm [shape: bf16[128,384], index: 7, kind: input, shape index: {}]   ;;  %s5354_s8 = inlined_call_operand.vmem [shape: f32[1,384], index: 8, kind: input, shape index: {}]   ;;  %s5355_s9 = inlined_call_operand.vmem [shape: f32[1,128], index: 9, kind: input, shape index: {}]   ;;  %s5356_s10 = inlined_call_operand.hbm [shape: bf16[128,128], index: 10, kind: input, shape index: {}]   ;;  %s5357_s11 = inlined_call_operand.vmem [shape: f32[1,128], index: 11, kind: input, shape index: {}]   ;;  %s5358_s12 = inlined_call_operand.hbm [shape: bf16[128,128], index: 12, kind: input, shape index: {}]   ;;  %s5359_s13 = inlined_call_operand.vmem [shape: f32[1,128], index: 13, kind: input, shape index: {}]   ;;  %s5360_s14 = inlined_call_operand.hbm [shape: f32[2,128], index: 14, kind: output, shape index: {0}]   ;;  %s5361_s15 = inlined_call_operand.hbm [shape: f32[8,128], index: 15, kind: output, shape index: {1}]  }
   0x1   :  { %22 = vsyncpa [#allocation8], 0 }
   0x2   :  { %23 = vsyncpa [#allocation11], 0 }
   0x3   :  { %24 = vsyncpa [#allocation14], 0 }
   0x4   :  { %25 = vsyncpa [#allocation17], 0 }
   0x5   :  { %26 = vsyncpa [#allocation6], 0 }
   0x6   :  { %27 = vsyncpa [#allocation20], 0  ;;  %s4345_s18 = smov [#allocation7]  }
   0x7   :  { %s44_s19 = sshll.u32 %s4345_s18, 4  ;;  %s45_s19 = int_to_ptr.vmem [resolvable:$true] %s44_s19 }
   0x8   :  { %s4139_s20 = scalar_lea.vmem %s45_s19, 32  ;;  %p4144_p1 = scmp.lt.s32.totalorder %s45_s19, %s45_s19 }
   0x9   :  { %p4140_p0 = scmp.ne.s32.totalorder %s45_s19, %s4139_s20  ;;  %p4145_p2 = scmp.lt.s32.totalorder %s4139_s20, %s4139_s20 }
   0xb   :  { %p4146_p3 = por %p4145_p2, %p4144_p1 }
   0xd   :  { %p4147_p4 = pnand %p4146_p3, %p4140_p0 }
   0xf   :  { %4150 = shalt.err (!%p4147_p4)
}
  0x10   :  { %47 = dma.hbm_to_vmem [thread:$0]  %s5347_s1, 32, %s45_s19, [#allocation8]  }
  0x11   :  { %s4346_s23 = smov [#allocation10]   ;;  %s4347_s25 = smov [#allocation13]  }
  0x12   :  { %s65_s24 = sshll.u32 %s4346_s23, 4  ;;  %s93_s26 = sshll.u32 %s4347_s25, 4  ;;  %s66_s24 = int_to_ptr.vmem [resolvable:$true] %s65_s24  ;;  %s94_s26 = int_to_ptr.vmem [resolvable:$true] %s93_s26 }
  0x13   :  { %s4159_s27 = scalar_lea.vmem %s66_s24, 3072  ;;  %p4164_p6 = scmp.lt.s32.totalorder %s66_s24, %s66_s24 }
  0x14   :  { %p4160_p5 = scmp.ne.s32.totalorder %s66_s24, %s4159_s27  ;;  %p4165_p7 = scmp.lt.s32.totalorder %s4159_s27, %s4159_s27 }
  0x16   :  { %p4166_p8 = por %p4165_p7, %p4164_p6 }
  0x18   :  { %p4167_p9 = pnand %p4166_p8, %p4160_p5 }
  0x1a   :  { %4170 = shalt.err (!%p4167_p9)
}
  0x1b   :  { %s4348_s28 = smov 192   ;;  %s4349_s29 = smov 12  }
  0x1c   :  { %71 = dma.hbm_to_vmem [thread:$0]  %s5349_s3, 3072, %s66_s24, [#allocation11], %s4348_s28, %s4348_s28, %s4349_s29  }
  0x1d   :  { %s4179_s1 = scalar_lea.vmem %s94_s26, 3072  ;;  %p4184_p11 = scmp.lt.s32.totalorder %s94_s26, %s94_s26 }
  0x1e   :  { %p4180_p10 = scmp.ne.s32.totalorder %s94_s26, %s4179_s1  ;;  %p4185_p12 = scmp.lt.s32.totalorder %s4179_s1, %s4179_s1 }
  0x20   :  { %p4186_p13 = por %p4185_p12, %p4184_p11 }
  0x22   :  { %p4187_p0 = pnand %p4186_p13, %p4180_p10 }
  0x24   :  { %4190 = shalt.err (!%p4187_p0)
}
  0x25   :  { %99 = dma.hbm_to_vmem [thread:$0]  %s5353_s7, 3072, %s94_s26, [#allocation14], %s4348_s28, %s4348_s28, %s4349_s29  }
  0x26   :  { %s4350_s19 = smov [#allocation4]   ;;  %s4351_s21 = smov [#allocation9]  }
  0x27   :  { %s34_s20 = sshll.u32 %s4350_s19, 4  ;;  %s53_s3 = sshll.u32 %s4351_s21, 4  ;;  %s35_s20 = int_to_ptr.vmem [resolvable:$true] %s34_s20  ;;  %s54_s3 = int_to_ptr.vmem [resolvable:$true] %s53_s3 }
  0x28   :  { %s4199_s22 = scalar_lea.vmem %s35_s20, 64  ;;  %p4204_p2 = scmp.lt.s32.totalorder %s35_s20, %s35_s20 }
  0x29   :  { %p4200_p1 = scmp.ne.s32.totalorder %s35_s20, %s4199_s22  ;;  %p4205_p3 = scmp.lt.s32.totalorder %s4199_s22, %s4199_s22 }
  0x2b   :  { %p4206_p4 = por %p4205_p3, %p4204_p2 }
  0x2d   :  { %p4207_p5 = pnand %p4206_p4, %p4200_p1 }
  0x2f   :  { %4210 = shalt.err (!%p4207_p5)
}
  0x30   :  { %37 = dma.hbm_to_vmem [thread:$0]  %s5346_s0, 64, %s35_s20, [#allocation5]  }
  0x31   :  { %s4219_s25 = scalar_lea.vmem %s54_s3, 3072  ;;  %p4224_p7 = scmp.lt.s32.totalorder %s54_s3, %s54_s3 }
  0x32   :  { %p4220_p6 = scmp.ne.s32.totalorder %s54_s3, %s4219_s25  ;;  %p4225_p8 = scmp.lt.s32.totalorder %s4219_s25, %s4219_s25 }
  0x34   :  { %p4226_p9 = por %p4225_p8, %p4224_p7 }
  0x36   :  { %p4227_p10 = pnand %p4226_p9, %p4220_p6 }
  0x38   :  { %4230 = shalt.err (!%p4227_p10)
}
  0x39   :  { %59 = dma.hbm_to_vmem [thread:$0]  %s5348_s2, 3072, %s54_s3, [#allocation8], %s4348_s28, %s4348_s28, %s4349_s29  }
  0x3a   :  { %s4352_s27 = smov [#allocation12]   ;;  %s4353_s16 = smov [#allocation15]  }
  0x3b   :  { %s81_s30 = sshll.u32 %s4352_s27, 4  ;;  %s109_s0 = sshll.u32 %s4353_s16, 4  ;;  %s82_s30 = int_to_ptr.vmem [resolvable:$true] %s81_s30  ;;  %s110_s0 = int_to_ptr.vmem [resolvable:$true] %s109_s0 }
  0x3c   :  { %s4239_s1 = scalar_lea.vmem %s82_s30, 3072  ;;  %p4244_p12 = scmp.lt.s32.totalorder %s82_s30, %s82_s30 }
  0x3d   :  { %p4240_p11 = scmp.ne.s32.totalorder %s82_s30, %s4239_s1  ;;  %p4245_p13 = scmp.lt.s32.totalorder %s4239_s1, %s4239_s1 }
  0x3f   :  { %p4246_p0 = por %p4245_p13, %p4244_p12 }
  0x41   :  { %p4247_p1 = pnand %p4246_p0, %p4240_p11 }
  0x43   :  { %4250 = shalt.err (!%p4247_p1)
}
  0x44   :  { %87 = dma.hbm_to_vmem [thread:$0]  %s5352_s6, 3072, %s82_s30, [#allocation11], %s4348_s28, %s4348_s28, %s4349_s29  }
  0x45   :  { %s4259_s2 = scalar_lea.vmem %s110_s0, 1024  ;;  %p4264_p3 = scmp.lt.s32.totalorder %s110_s0, %s110_s0 }
  0x46   :  { %p4260_p2 = scmp.ne.s32.totalorder %s110_s0, %s4259_s2  ;;  %p4265_p4 = scmp.lt.s32.totalorder %s4259_s2, %s4259_s2 }
  0x48   :  { %p4266_p5 = por %p4265_p4, %p4264_p3 }
  0x4a   :  { %p4267_p6 = pnand %p4266_p5, %p4260_p2 }
  0x4c   :  { %4270 = shalt.err (!%p4267_p6)
}
  0x4d   :  { %s4354_s19 = smov 64   ;;  %s4355_s20 = smov 4  }
  0x4e   :  { %115 = dma.hbm_to_vmem [thread:$0]  %s5356_s10, 1024, %s110_s0, [#allocation14], %s4354_s19, %s4354_s19, %s4355_s20  }
  0x4f   :  { %s4356_s22 = smov [#allocation16]  }
  0x50   :  { %s123_s23 = sshll.u32 %s4356_s22, 4  ;;  %s124_s23 = int_to_ptr.vmem [resolvable:$true] %s123_s23 }
  0x51   :  { %s4279_s24 = scalar_lea.vmem %s124_s23, 1024  ;;  %p4284_p8 = scmp.lt.s32.totalorder %s124_s23, %s124_s23 }
  0x52   :  { %p4280_p7 = scmp.ne.s32.totalorder %s124_s23, %s4279_s24  ;;  %p4285_p9 = scmp.lt.s32.totalorder %s4279_s24, %s4279_s24 }
  0x54   :  { %p4286_p10 = por %p4285_p9, %p4284_p8 }
  0x56   :  { %p4287_p11 = pnand %p4286_p10, %p4280_p7 }
  0x58   :  { %4290 = shalt.err (!%p4287_p11)
}
  0x59   :  { %129 = dma.hbm_to_vmem [thread:$0]  %s5358_s12, 1024, %s124_s23, [#allocation17], %s4354_s19, %s4354_s19, %s4355_s20  }
  0x5a   :  { %4331 = dma.done.wait [#allocation5], 64  }
  0x5b   :  { %4332 = vsyncadd [#allocation5], 4294967232 }
  0x5c   :  { %4333 = dma.done.wait [#allocation8], 3104  }
  0x5d   :  { %4334 = vsyncadd [#allocation8], 4294964192 }
  0x5e   :  { %4335 = dma.done.wait [#allocation11], 6144  }
  0x5f   :  { %4336 = vsyncadd [#allocation11], 4294961152 }
  0x60   :  { %4337 = dma.done.wait [#allocation14], 4096  }
  0x61   :  { %4338 = vsyncadd [#allocation14], 4294963200 }
  0x62   :  { %4339 = dma.done.wait [#allocation17], 1024  }
  0x63   :  { %4340 = vsyncadd [#allocation17], 4294966272  ;;  %v4357_v0 = vmov 0.0   ;;  %v4358_v1 = vmov 0   ;;  %vm4359_vm0 = vmmov 0   ;;  %v192_v53 = vlaneseq  ;;  %s4360_s1 = smov [#allocation18]  }
  0x64   :  { %3377 = vmatprep.subr.bf16.mxu1 %v4357_v0  ;;  %367 = vmatprep.mubr.bf16.mxu0 %v4358_v1  ;;  %v3794_v2 = vld [vmem:[#allocation9 + $0xac] ss:$12 sps:$4 sm:$0xff]   ;;  %v3796_v3 = vld [vmem:[#allocation9 + $0xa8] ss:$12 sps:$4 sm:$0xff]   ;;  %v3797_v4 = vld [vmem:[#allocation9 + $0xb0] ss:$12 sps:$4 sm:$0xff]  }
  0x65   :  { %3393 = vmatprep.mubr.msk.bf16.mxu1 %vm4359_vm0, %v4357_v0  ;;  %335 = vmatprep.subr.bf16.mxu0 %v3794_v2  ;;  %v3798_v5 = vld [vmem:[#allocation9 + $0x94] ss:$12 sps:$4 sm:$0xff]   ;;  %v3800_v6 = vld [vmem:[#allocation9 + $0x90] ss:$12 sps:$4 sm:$0xff]   ;;  %v3801_v7 = vld [vmem:[#allocation9 + $0x98] ss:$12 sps:$4 sm:$0xff]  }
  0x66   :  { %336 = vmatpush1.bf16.msra.mxu0 %v3796_v3  ;;  %3378 = vmatpush3.bf16.msra.mxu1 %v3797_v4  ;;  %v3802_v8 = vld [vmem:[#allocation9 + $0x7c] ss:$12 sps:$4 sm:$0xff]   ;;  %v3804_v9 = vld [vmem:[#allocation9 + $0x78] ss:$12 sps:$4 sm:$0xff]   ;;  %v3805_v10 = vld [vmem:[#allocation9 + $0x80] ss:$12 sps:$4 sm:$0xff]  }
  0x67   :  { %337 = vmatprep.subr.bf16.mxu0 %v3798_v5  ;;  %3379 = vmatprep.subr.bf16.mxu1 %v4357_v0  ;;  %v3806_v11 = vld [vmem:[#allocation9 + $0x64] ss:$12 sps:$4 sm:$0xff]   ;;  %v3808_v12 = vld [vmem:[#allocation9 + $0x60] ss:$12 sps:$4 sm:$0xff]   ;;  %v3809_v13 = vld [vmem:[#allocation9 + $0x68] ss:$12 sps:$4 sm:$0xff]  }
  0x68   :  { %v3810_v14 = vld [vmem:[#allocation9 + $0x4c] ss:$12 sps:$4 sm:$0xff]   ;;  %v3812_v15 = vld [vmem:[#allocation9 + $0x48] ss:$12 sps:$4 sm:$0xff]   ;;  %v3813_v16 = vld [vmem:[#allocation9 + $0x50] ss:$12 sps:$4 sm:$0xff]  }
  0x69   :  { %v3814_v17 = vld [vmem:[#allocation9 + $0x34] ss:$12 sps:$4 sm:$0xff]   ;;  %v3816_v18 = vld [vmem:[#allocation9 + $0x30] ss:$12 sps:$4 sm:$0xff]   ;;  %v3817_v19 = vld [vmem:[#allocation9 + $0x38] ss:$12 sps:$4 sm:$0xff]  }
  0x6a   :  { %338 = vmatpush1.bf16.msra.mxu0 %v3800_v6  ;;  %3380 = vmatpush3.bf16.msra.mxu1 %v3801_v7  ;;  %v3818_v20 = vld [vmem:[#allocation9 + $0x1c] ss:$12 sps:$4 sm:$0xff]   ;;  %v3820_v21 = vld [vmem:[#allocation9 + $0x18] ss:$12 sps:$4 sm:$0xff]   ;;  %v3821_v22 = vld [vmem:[#allocation9 + $0x20] ss:$12 sps:$4 sm:$0xff]  }
  0x6b   :  { %339 = vmatprep.subr.bf16.mxu0 %v3802_v8  ;;  %3381 = vmatprep.subr.bf16.mxu1 %v4357_v0  ;;  %v3822_v23 = vld [vmem:[#allocation9 + $0x4] ss:$12 sps:$4 sm:$0xff]   ;;  %v3824_v24 = vld [vmem:[#allocation9] ss:$12 sps:$4 sm:$0xff]   ;;  %v3825_v25 = vld [vmem:[#allocation9 + $0x8] ss:$12 sps:$4 sm:$0xff]  }
  0x6c   :  { %v4488_v26 = vld [vmem:[#allocation10 + $0xac] ss:$12 sps:$4 sm:$0xff]   ;;  %v4491_v28 = vld [vmem:[#allocation10 + $0xa8] ss:$12 sps:$4 sm:$0xff]   ;;  %v4496_v30 = vld [vmem:[#allocation10 + $0xb0] ss:$12 sps:$4 sm:$0xff]  }
  0x6d   :  { %v157_v27 = vld [vmem:[#allocation4] sm:$0xf]  ;;  %v4493_v29 = vld [vmem:[#allocation10 + $0x94] ss:$12 sps:$4 sm:$0xff]   ;;  %v4512_v35 = vld [vmem:[#allocation10 + $0x64] ss:$12 sps:$4 sm:$0xff]  }
  0x6e   :  { %340 = vmatpush1.bf16.msra.mxu0 %v3804_v9  ;;  %3382 = vmatpush3.bf16.msra.mxu1 %v3805_v10  ;;  %v4499_v31 = vld [vmem:[#allocation10 + $0x90] ss:$12 sps:$4 sm:$0xff]   ;;  %v4506_v33 = vld [vmem:[#allocation10 + $0x98] ss:$12 sps:$4 sm:$0xff]   ;;  %v4514_v36 = vld [vmem:[#allocation10 + $0x80] ss:$12 sps:$4 sm:$0xff]  }
  0x6f   :  { %341 = vmatprep.subr.bf16.mxu0 %v3806_v11  ;;  %3383 = vmatprep.subr.bf16.mxu1 %v4357_v0  ;;  %v4502_v32 = vld [vmem:[#allocation10 + $0x7c] ss:$12 sps:$4 sm:$0xff]   ;;  %v4508_v34 = vld [vmem:[#allocation10 + $0x78] ss:$12 sps:$4 sm:$0xff]   ;;  %v4521_v37 = vld [vmem:[#allocation10 + $0x60] ss:$12 sps:$4 sm:$0xff]  }
  0x70   :  { %v4524_v38 = vld [vmem:[#allocation10 + $0x4c] ss:$12 sps:$4 sm:$0xff]   ;;  %v4526_v39 = vld [vmem:[#allocation10 + $0x68] ss:$12 sps:$4 sm:$0xff]   ;;  %v4536_v42 = vld [vmem:[#allocation10 + $0x50] ss:$12 sps:$4 sm:$0xff]  }
  0x71   :  { %v4531_v40 = vld [vmem:[#allocation10 + $0x48] ss:$12 sps:$4 sm:$0xff]   ;;  %v4541_v43 = vld [vmem:[#allocation10 + $0x30] ss:$12 sps:$4 sm:$0xff]   ;;  %v4546_v45 = vld [vmem:[#allocation10 + $0x38] ss:$12 sps:$4 sm:$0xff]  }
  0x72   :  { %342 = vmatpush1.bf16.msra.mxu0 %v3808_v12  ;;  %3384 = vmatpush3.bf16.msra.mxu1 %v3809_v13  ;;  %v4534_v41 = vld [vmem:[#allocation10 + $0x34] ss:$12 sps:$4 sm:$0xff]   ;;  %v4544_v44 = vld [vmem:[#allocation10 + $0x1c] ss:$12 sps:$4 sm:$0xff]   ;;  %v4551_v46 = vld [vmem:[#allocation10 + $0x18] ss:$12 sps:$4 sm:$0xff]  }
  0x73   :  { %343 = vmatprep.subr.bf16.mxu0 %v3810_v14  ;;  %3385 = vmatprep.subr.bf16.mxu1 %v4357_v0  ;;  %v4554_v47 = vld [vmem:[#allocation10 + $0x4] ss:$12 sps:$4 sm:$0xff]   ;;  %v4556_v48 = vld [vmem:[#allocation10 + $0x20] ss:$12 sps:$4 sm:$0xff]   ;;  %v4563_v50 = vld [vmem:[#allocation7] sm:$0x1] }
  0x74   :  { %v4561_v49 = vld [vmem:[#allocation10] ss:$12 sps:$4 sm:$0xff]   ;;  %v4566_v51 = vld [vmem:[#allocation10 + $0x8] ss:$12 sps:$4 sm:$0xff]   ;;  %v454_v52 = vpack.c.bf16 %v4563_v50, %v4563_v50  ;;  %v4613_v54 = vshrl.u32 %v192_v53, 7  ;;  %s3024_s17 = sshll.u32 %s4360_s1, 4  ;;  %s3025_s17 = int_to_ptr.vmem [resolvable:$true] %s3024_s17 }
  0x75   :  { %v190_v56 = vld [vmem:[%s5350_s4] sm:$0x7]  ;;  %s4291_s18 = scalar_lea.vmem %s3025_s17, 32  ;;  %p4296_p13 = scmp.lt.s32.totalorder %s3025_s17, %s3025_s17 }
  0x76   :  { %344 = vmatpush1.bf16.msra.mxu0 %v3812_v15  ;;  %3386 = vmatpush3.bf16.msra.mxu1 %v3813_v16  ;;  %v194_v55 = vsub.s32 0, %v4613_v54  ;;  %v202_v57 = vsub.s32 2, %v4613_v54  ;;  %v198_v58 = vsub.s32 1, %v4613_v54  ;;  %v4630_v53 = vld [vmem:[%s5351_s5] sm:$0x1]  ;;  %p4292_p12 = scmp.ne.s32.totalorder %s3025_s17, %s4291_s18  ;;  %p4297_p0 = scmp.lt.s32.totalorder %s4291_s18, %s4291_s18 }
  0x77   :  { %345 = vmatprep.subr.bf16.mxu0 %v3814_v17  ;;  %3387 = vmatprep.subr.bf16.mxu1 %v4357_v0 }
  0x78   :  { %v195_v59 = vrot.slane %v190_v56, %v194_v55  ;;  %v203_v60 = vrot.slane %v190_v56, %v202_v57  ;;  %v199_v61 = vrot.slane %v190_v56, %v198_v58  ;;  %p4298_p1 = por %p4297_p0, %p4296_p13 }
  0x7a   :  { %346 = vmatpush1.bf16.msra.mxu0 %v3816_v18  ;;  %3388 = vmatpush3.bf16.msra.mxu1 %v3817_v19  ;;  %p4299_p2 = pnand %p4298_p1, %p4292_p12 }
  0x7b   :  { %347 = vmatprep.subr.bf16.mxu0 %v3818_v20  ;;  %3389 = vmatprep.subr.bf16.mxu1 %v4357_v0 }
  0x7e   :  { %348 = vmatpush1.bf16.msra.mxu0 %v3820_v21  ;;  %3390 = vmatpush3.bf16.msra.mxu1 %v3821_v22 }
  0x7f   :  { %349 = vmatprep.subr.bf16.mxu0 %v3822_v23  ;;  %3391 = vmatprep.subr.bf16.mxu1 %v4357_v0 }
  0x82   :  { %350 = vmatpush1.bf16.msra.mxu0 %v3824_v24  ;;  %3392 = vmatpush3.bf16.msra.mxu1 %v3825_v25 }
  0x83   :  { %583 = vmatprep.subr.bf16.mxu0 %v4488_v26  ;;  %3397 = vmatprep.subr.bf16.mxu1 %v4357_v0 }
  0x85   :  { %368 = vmatmul.mubr.bf16.vlgmr.msra.gmra.mxu0 %v157_v27  ;;  %3394 = vmatmul.mubr.bf16.vlgmr.msra.gmra.mxu1 %v157_v27 }
  0x86   :  { %584 = vmatpush1.bf16.msra.mxu0 %v4491_v28  ;;  %3398 = vmatpush3.bf16.msra.mxu1 %v4496_v30 }
  0x87   :  { %585 = vmatprep.subr.bf16.mxu0 %v4493_v29  ;;  %3399 = vmatprep.subr.bf16.mxu1 %v4357_v0 }
  0x88   :  { %615 = vmatprep.mubr.bf16.mxu0 %v4358_v1  ;;  %3413 = vmatprep.mubr.msk.bf16.mxu1 %vm4359_vm0, %v4357_v0 }
  0x8a   :  { %586 = vmatpush1.bf16.msra.mxu0 %v4499_v31  ;;  %3400 = vmatpush3.bf16.msra.mxu1 %v4506_v33 }
  0x8b   :  { %587 = vmatprep.subr.bf16.mxu0 %v4502_v32  ;;  %3401 = vmatprep.subr.bf16.mxu1 %v4357_v0 }
  0x8e   :  { %588 = vmatpush1.bf16.msra.mxu0 %v4508_v34  ;;  %3402 = vmatpush3.bf16.msra.mxu1 %v4514_v36 }
  0x8f   :  { %589 = vmatprep.subr.bf16.mxu0 %v4512_v35  ;;  %3403 = vmatprep.subr.bf16.mxu1 %v4357_v0 }
  0x92   :  { %590 = vmatpush1.bf16.msra.mxu0 %v4521_v37  ;;  %3404 = vmatpush3.bf16.msra.mxu1 %v4526_v39 }
  0x93   :  { %591 = vmatprep.subr.bf16.mxu0 %v4524_v38  ;;  %3405 = vmatprep.subr.bf16.mxu1 %v4357_v0 }
  0x96   :  { %592 = vmatpush1.bf16.msra.mxu0 %v4531_v40  ;;  %3406 = vmatpush3.bf16.msra.mxu1 %v4536_v42 }
  0x97   :  { %593 = vmatprep.subr.bf16.mxu0 %v4534_v41  ;;  %3407 = vmatprep.subr.bf16.mxu1 %v4357_v0 }
  0x9a   :  { %594 = vmatpush1.bf16.msra.mxu0 %v4541_v43  ;;  %3408 = vmatpush3.bf16.msra.mxu1 %v4546_v45 }
  0x9b   :  { %595 = vmatprep.subr.bf16.mxu0 %v4544_v44  ;;  %3409 = vmatprep.subr.bf16.mxu1 %v4357_v0 }
  0x9e   :  { %596 = vmatpush1.bf16.msra.mxu0 %v4551_v46  ;;  %3410 = vmatpush3.bf16.msra.mxu1 %v4556_v48 }
  0x9f   :  { %597 = vmatprep.subr.bf16.mxu0 %v4554_v47  ;;  %3411 = vmatprep.subr.bf16.mxu1 %v4357_v0 }
  0xa2   :  { %598 = vmatpush1.bf16.msra.mxu0 %v4561_v49  ;;  %3412 = vmatpush3.bf16.msra.mxu1 %v4566_v51 }
  0xa3   :  { %695 = vmatprep.subr.bf16.mxu0 %v4488_v26  ;;  %3417 = vmatprep.subr.bf16.mxu1 %v4357_v0 }
  0xa5   :  { %616 = vmatmul.mubr.bf16.vlgmr.msra.gmra.mxu0 %v454_v52  ;;  %3414 = vmatmul.mubr.bf16.vlgmr.msra.gmra.mxu1 %v454_v52 }
  0xa6   :  { %696 = vmatpush1.bf16.msra.mxu0 %v4491_v28  ;;  %3418 = vmatpush3.bf16.msra.mxu1 %v4496_v30 }
  0xa7   :  { %697 = vmatprep.subr.bf16.mxu0 %v4493_v29  ;;  %3419 = vmatprep.subr.bf16.mxu1 %v4357_v0 }
  0xa8   :  { %727 = vmatprep.mubr.bf16.mxu0 %v4358_v1  ;;  %3433 = vmatprep.mubr.msk.bf16.mxu1 %vm4359_vm0, %v4357_v0 }
  0xaa   :  { %698 = vmatpush1.bf16.msra.mxu0 %v4499_v31  ;;  %3420 = vmatpush3.bf16.msra.mxu1 %v4506_v33 }
  0xab   :  { %699 = vmatprep.subr.bf16.mxu0 %v4502_v32  ;;  %3421 = vmatprep.subr.bf16.mxu1 %v4357_v0 }
  0xae   :  { %700 = vmatpush1.bf16.msra.mxu0 %v4508_v34  ;;  %3422 = vmatpush3.bf16.msra.mxu1 %v4514_v36 }
  0xaf   :  { %701 = vmatprep.subr.bf16.mxu0 %v4512_v35  ;;  %3423 = vmatprep.subr.bf16.mxu1 %v4357_v0 }
  0xb2   :  { %702 = vmatpush1.bf16.msra.mxu0 %v4521_v37  ;;  %3424 = vmatpush3.bf16.msra.mxu1 %v4526_v39 }
  0xb3   :  { %703 = vmatprep.subr.bf16.mxu0 %v4524_v38  ;;  %3425 = vmatprep.subr.bf16.mxu1 %v4357_v0 }
  0xb6   :  { %704 = vmatpush1.bf16.msra.mxu0 %v4531_v40  ;;  %3426 = vmatpush3.bf16.msra.mxu1 %v4536_v42 }
  0xb7   :  { %705 = vmatprep.subr.bf16.mxu0 %v4534_v41  ;;  %3427 = vmatprep.subr.bf16.mxu1 %v4357_v0 }
  0xba   :  { %706 = vmatpush1.bf16.msra.mxu0 %v4541_v43  ;;  %3428 = vmatpush3.bf16.msra.mxu1 %v4546_v45 }
  0xbb   :  { %707 = vmatprep.subr.bf16.mxu0 %v4544_v44  ;;  %3429 = vmatprep.subr.bf16.mxu1 %v4357_v0 }
  0xbe   :  { %708 = vmatpush1.bf16.msra.mxu0 %v4551_v46  ;;  %3430 = vmatpush3.bf16.msra.mxu1 %v4556_v48 }
  0xbf   :  { %709 = vmatprep.subr.bf16.mxu0 %v4554_v47  ;;  %3431 = vmatprep.subr.bf16.mxu1 %v4357_v0 }
  0xc2   :  { %710 = vmatpush1.bf16.msra.mxu0 %v4561_v49  ;;  %3432 = vmatpush3.bf16.msra.mxu1 %v4566_v51 }
  0xc3   :  { %807 = vmatprep.subr.bf16.mxu0 %v4488_v26  ;;  %3437 = vmatprep.subr.bf16.mxu1 %v4357_v0 }
 0x145   :  { %v369_v62 = vpop.f32.mrf.mxu0  ;;  %v410_v2 = vpop.f32.mrf.mxu1 }
 0x146   :  { %v370_v63 = vadd.f32 %v369_v62, %v195_v59  ;;  %v411_v4 = vadd.f32 %v410_v2, %v203_v60 }
 0x147   :  { %v371_v3 = vpop.f32.mrf.mxu0  ;;  %v3395_v6 = vpop.f32.mrf.mxu1 }
 0x148   :  { %416 = vst [vmem:[#allocation2] sm:$0xff] %v370_v63  ;;  %v372_v5 = vadd.f32 %v371_v3, %v199_v61  ;;  %418 = vst [vmem:[#allocation2 + $0x10] sm:$0xff] %v411_v4 }
 0x149   :  { %v373_v7 = vpop.f32.mrf.mxu0  ;;  %v413_v8 = vpop.f32.mrf.mxu1 }
 0x14a   :  { %417 = vst [vmem:[#allocation2 + $0x8] sm:$0xff] %v372_v5 }
 0x14b   :  { %v374_v9 = vpop.f32.mrf.mxu0  ;;  %v3396_v10 = vpop.f32.mrf.mxu1 }
 0x151   :  { %v453_v11 = vld [vmem:[#allocation2] ss:$8 sm:$0x7] }
 0x152   :  { %v672_v19 = vrot.slane %v453_v11, 1  ;;  %v683_v62 = vrot.slane %v453_v11, 2 }
 0x165   :  { %v617_v12 = vpop.f32.mrf.mxu0  ;;  %v658_v14 = vpop.f32.mrf.mxu1 }
 0x166   :  { %v664_v13 = vadd.f32 %v617_v12, %v453_v11  ;;  %v681_v59 = vadd.f32 %v658_v14, %v4630_v53 }
 0x167   :  { %v619_v15 = vpop.f32.mrf.mxu0  ;;  %v3415_v17 = vpop.f32.mrf.mxu1 }
 0x168   :  { %v3099_v16 = vmul.f32 -1.442695, %v664_v13  ;;  %v674_v22 = vadd.f32 %v672_v19, %v619_v15 }
 0x169   :  { %v621_v18 = vpop.f32.mrf.mxu0  ;;  %v661_v20 = vpop.f32.mrf.mxu1 }
 0x16a   :  { %3938 = vpow2.f32 %v3099_v16  ;;  %v3100_v24 = vmul.f32 -1.442695, %v674_v22 }
 0x16b   :  { %v622_v21 = vpop.f32.mrf.mxu0  ;;  %v3416_v23 = vpop.f32.mrf.mxu1 }
 0x16c   :  { %3940 = vpow2.f32 %v3100_v24 }
 0x177   :  { %v3939_v25 = vpop.eup %3938 }
 0x178   :  { %v668_v27 = vadd.f32 1.0, %v3939_v25 }
 0x179   :  { %v3941_v52 = vpop.eup %3940 }
 0x17a   :  { %3942 = vrcp.f32 %v668_v27  ;;  %v678_v56 = vadd.f32 1.0, %v3941_v52 }
 0x17c   :  { %3944 = vrcp.f32 %v678_v56 }
 0x187   :  { %v3943_v60 = vpop.eup %3942 }
 0x188   :  { %v682_v61 = vmul.f32 %v3943_v60, %v681_v59 }
 0x189   :  { %v3945_v2 = vpop.eup %3944 }
 0x18a   :  { %v685_v63 = vadd.f32 %v683_v62, %v682_v61  ;;  %v687_v3 = vsub.f32 1.0, %v3945_v2  ;;  %v689_v6 = vmul.f32 %v3945_v2, %v4563_v50  ;;  %v693_v50 = vld [vmem:[#allocation2 + $0x1] ss:$8 sm:$0x7] }
 0x18b   :  { %v784_v17 = vrot.slane %v693_v50, 1  ;;  %v795_v59 = vrot.slane %v693_v50, 2 }
 0x18c   :  { %3946 = vtanh.f32 %v685_v63 }
 0x199   :  { %v3947_v4 = vpop.eup %3946 }
 0x19a   :  { %v688_v5 = vmul.f32 %v3947_v4, %v687_v3 }
 0x19c   :  { %v4634_v7 = vadd.f32 %v689_v6, %v688_v5  ;;  %v805_v6 = vld [vmem:[#allocation2 + $0x2] ss:$8 sm:$0x7] }
 0x19e   :  { %691 = vst [vmem:[#allocation3] sm:$0x1] %v4634_v7  ;;  %v694_v8 = vpack.c.bf16 %v4634_v7, %v4634_v7 }
 0x1a0   :  { %728 = vmatmul.mubr.bf16.vlgmr.msra.gmra.mxu0 %v694_v8  ;;  %3434 = vmatmul.mubr.bf16.vlgmr.msra.gmra.mxu1 %v694_v8 }
 0x1a1   :  { %808 = vmatpush1.bf16.msra.mxu0 %v4491_v28  ;;  %3438 = vmatpush3.bf16.msra.mxu1 %v4496_v30 }
 0x1a2   :  { %809 = vmatprep.subr.bf16.mxu0 %v4493_v29  ;;  %3439 = vmatprep.subr.bf16.mxu1 %v4357_v0 }
 0x1a3   :  { %839 = vmatprep.mubr.bf16.mxu0 %v4358_v1  ;;  %3453 = vmatprep.mubr.msk.bf16.mxu1 %vm4359_vm0, %v4357_v0 }
 0x1a5   :  { %810 = vmatpush1.bf16.msra.mxu0 %v4499_v31  ;;  %3440 = vmatpush3.bf16.msra.mxu1 %v4506_v33 }
 0x1a6   :  { %811 = vmatprep.subr.bf16.mxu0 %v4502_v32  ;;  %3441 = vmatprep.subr.bf16.mxu1 %v4357_v0 }
 0x1a9   :  { %812 = vmatpush1.bf16.msra.mxu0 %v4508_v34  ;;  %3442 = vmatpush3.bf16.msra.mxu1 %v4514_v36 }
 0x1aa   :  { %813 = vmatprep.subr.bf16.mxu0 %v4512_v35  ;;  %3443 = vmatprep.subr.bf16.mxu1 %v4357_v0 }
 0x1ad   :  { %814 = vmatpush1.bf16.msra.mxu0 %v4521_v37  ;;  %3444 = vmatpush3.bf16.msra.mxu1 %v4526_v39 }
 0x1ae   :  { %815 = vmatprep.subr.bf16.mxu0 %v4524_v38  ;;  %3445 = vmatprep.subr.bf16.mxu1 %v4357_v0 }
 0x1b1   :  { %816 = vmatpush1.bf16.msra.mxu0 %v4531_v40  ;;  %3446 = vmatpush3.bf16.msra.mxu1 %v4536_v42 }
 0x1b2   :  { %817 = vmatprep.subr.bf16.mxu0 %v4534_v41  ;;  %3447 = vmatprep.subr.bf16.mxu1 %v4357_v0 }
 0x1b5   :  { %818 = vmatpush1.bf16.msra.mxu0 %v4541_v43  ;;  %3448 = vmatpush3.bf16.msra.mxu1 %v4546_v45 }
 0x1b6   :  { %819 = vmatprep.subr.bf16.mxu0 %v4544_v44  ;;  %3449 = vmatprep.subr.bf16.mxu1 %v4357_v0 }
 0x1b9   :  { %820 = vmatpush1.bf16.msra.mxu0 %v4551_v46  ;;  %3450 = vmatpush3.bf16.msra.mxu1 %v4556_v48 }
 0x1ba   :  { %821 = vmatprep.subr.bf16.mxu0 %v4554_v47  ;;  %3451 = vmatprep.subr.bf16.mxu1 %v4357_v0 }
 0x1bd   :  { %822 = vmatpush1.bf16.msra.mxu0 %v4561_v49  ;;  %3452 = vmatpush3.bf16.msra.mxu1 %v4566_v51 }
 0x1be   :  { %919 = vmatprep.subr.bf16.mxu0 %v4488_v26  ;;  %3457 = vmatprep.subr.bf16.mxu1 %v4357_v0 }
 0x260   :  { %v729_v9 = vpop.f32.mrf.mxu0  ;;  %v770_v10 = vpop.f32.mrf.mxu1 }
 0x261   :  { %v776_v11 = vadd.f32 %v729_v9, %v693_v50  ;;  %v793_v27 = vadd.f32 %v770_v10, %v4630_v53 }
 0x262   :  { %v731_v12 = vpop.f32.mrf.mxu0  ;;  %v3435_v13 = vpop.f32.mrf.mxu1 }
 0x263   :  { %v3101_v14 = vmul.f32 -1.442695, %v776_v11  ;;  %v786_v20 = vadd.f32 %v784_v17, %v731_v12 }
 0x264   :  { %v733_v15 = vpop.f32.mrf.mxu0  ;;  %v773_v16 = vpop.f32.mrf.mxu1 }
 0x265   :  { %3948 = vpow2.f32 %v3101_v14  ;;  %v3102_v21 = vmul.f32 -1.442695, %v786_v20  ;;  %v896_v14 = vrot.slane %v805_v6, 1 }
 0x266   :  { %v734_v18 = vpop.f32.mrf.mxu0  ;;  %v3436_v19 = vpop.f32.mrf.mxu1 }
 0x267   :  { %3950 = vpow2.f32 %v3102_v21 }
 0x272   :  { %v3949_v22 = vpop.eup %3948 }
 0x273   :  { %v780_v23 = vadd.f32 1.0, %v3949_v22 }
 0x274   :  { %v3951_v24 = vpop.eup %3950 }
 0x275   :  { %3952 = vrcp.f32 %v780_v23  ;;  %v790_v25 = vadd.f32 1.0, %v3951_v24 }
 0x277   :  { %3954 = vrcp.f32 %v790_v25 }
 0x282   :  { %v3953_v52 = vpop.eup %3952 }
 0x283   :  { %v794_v56 = vmul.f32 %v3953_v52, %v793_v27  ;;  %v907_v27 = vrot.slane %v805_v6, 2 }
 0x284   :  { %v3955_v61 = vpop.eup %3954 }
 0x285   :  { %v797_v60 = vadd.f32 %v795_v59, %v794_v56  ;;  %v799_v62 = vsub.f32 1.0, %v3955_v61  ;;  %v801_v3 = vmul.f32 %v3955_v61, %v4634_v7 }
 0x287   :  { %3956 = vtanh.f32 %v797_v60 }
 0x294   :  { %v3957_v63 = vpop.eup %3956 }
 0x295   :  { %v800_v2 = vmul.f32 %v3957_v63, %v799_v62 }
 0x297   :  { %v4676_v4 = vadd.f32 %v801_v3, %v800_v2  ;;  %v917_v3 = vld [vmem:[#allocation2 + $0x3] ss:$8 sm:$0x7] }
 0x299   :  { %803 = vst [vmem:[#allocation3 + $0x1] sm:$0x1] %v4676_v4  ;;  %v806_v5 = vpack.c.bf16 %v4676_v4, %v4676_v4 }
 0x29b   :  { %840 = vmatmul.mubr.bf16.vlgmr.msra.gmra.mxu0 %v806_v5  ;;  %3454 = vmatmul.mubr.bf16.vlgmr.msra.gmra.mxu1 %v806_v5 }
 0x29c   :  { %920 = vmatpush1.bf16.msra.mxu0 %v4491_v28  ;;  %3458 = vmatpush3.bf16.msra.mxu1 %v4496_v30 }
 0x29d   :  { %921 = vmatprep.subr.bf16.mxu0 %v4493_v29  ;;  %3459 = vmatprep.subr.bf16.mxu1 %v4357_v0 }
 0x29e   :  { %951 = vmatprep.mubr.bf16.mxu0 %v4358_v1  ;;  %3473 = vmatprep.mubr.msk.bf16.mxu1 %vm4359_vm0, %v4357_v0 }
 0x2a0   :  { %922 = vmatpush1.bf16.msra.mxu0 %v4499_v31  ;;  %3460 = vmatpush3.bf16.msra.mxu1 %v4506_v33 }
 0x2a1   :  { %923 = vmatprep.subr.bf16.mxu0 %v4502_v32  ;;  %3461 = vmatprep.subr.bf16.mxu1 %v4357_v0 }
 0x2a4   :  { %924 = vmatpush1.bf16.msra.mxu0 %v4508_v34  ;;  %3462 = vmatpush3.bf16.msra.mxu1 %v4514_v36 }
 0x2a5   :  { %925 = vmatprep.subr.bf16.mxu0 %v4512_v35  ;;  %3463 = vmatprep.subr.bf16.mxu1 %v4357_v0 }
 0x2a8   :  { %926 = vmatpush1.bf16.msra.mxu0 %v4521_v37  ;;  %3464 = vmatpush3.bf16.msra.mxu1 %v4526_v39 }
 0x2a9   :  { %927 = vmatprep.subr.bf16.mxu0 %v4524_v38  ;;  %3465 = vmatprep.subr.bf16.mxu1 %v4357_v0 }
 0x2ac   :  { %928 = vmatpush1.bf16.msra.mxu0 %v4531_v40  ;;  %3466 = vmatpush3.bf16.msra.mxu1 %v4536_v42 }
 0x2ad   :  { %929 = vmatprep.subr.bf16.mxu0 %v4534_v41  ;;  %3467 = vmatprep.subr.bf16.mxu1 %v4357_v0 }
 0x2b0   :  { %930 = vmatpush1.bf16.msra.mxu0 %v4541_v43  ;;  %3468 = vmatpush3.bf16.msra.mxu1 %v4546_v45 }
 0x2b1   :  { %931 = vmatprep.subr.bf16.mxu0 %v4544_v44  ;;  %3469 = vmatprep.subr.bf16.mxu1 %v4357_v0 }
 0x2b4   :  { %932 = vmatpush1.bf16.msra.mxu0 %v4551_v46  ;;  %3470 = vmatpush3.bf16.msra.mxu1 %v4556_v48 }
 0x2b5   :  { %933 = vmatprep.subr.bf16.mxu0 %v4554_v47  ;;  %3471 = vmatprep.subr.bf16.mxu1 %v4357_v0 }
 0x2b8   :  { %934 = vmatpush1.bf16.msra.mxu0 %v4561_v49  ;;  %3472 = vmatpush3.bf16.msra.mxu1 %v4566_v51 }
 0x2b9   :  { %1031 = vmatprep.subr.bf16.mxu0 %v4488_v26  ;;  %3477 = vmatprep.subr.bf16.mxu1 %v4357_v0 }
 0x35b   :  { %v841_v7 = vpop.f32.mrf.mxu0  ;;  %v882_v8 = vpop.f32.mrf.mxu1 }
 0x35c   :  { %v888_v50 = vadd.f32 %v841_v7, %v805_v6  ;;  %v905_v23 = vadd.f32 %v882_v8, %v4630_v53 }
 0x35d   :  { %v843_v9 = vpop.f32.mrf.mxu0  ;;  %v3455_v10 = vpop.f32.mrf.mxu1 }
 0x35e   :  { %v3103_v11 = vmul.f32 -1.442695, %v888_v50  ;;  %v898_v17 = vadd.f32 %v896_v14, %v843_v9 }
 0x35f   :  { %v845_v12 = vpop.f32.mrf.mxu0  ;;  %v885_v13 = vpop.f32.mrf.mxu1 }
 0x360   :  { %3958 = vpow2.f32 %v3103_v11  ;;  %v3104_v18 = vmul.f32 -1.442695, %v898_v17  ;;  %v1008_v11 = vrot.slane %v917_v3, 1 }
 0x361   :  { %v846_v15 = vpop.f32.mrf.mxu0  ;;  %v3456_v16 = vpop.f32.mrf.mxu1 }
 0x362   :  { %3960 = vpow2.f32 %v3104_v18 }
 0x36d   :  { %v3959_v19 = vpop.eup %3958 }
 0x36e   :  { %v892_v20 = vadd.f32 1.0, %v3959_v19 }
 0x36f   :  { %v3961_v21 = vpop.eup %3960 }
 0x370   :  { %3962 = vrcp.f32 %v892_v20  ;;  %v902_v22 = vadd.f32 1.0, %v3961_v21 }
 0x372   :  { %3964 = vrcp.f32 %v902_v22  ;;  %v1019_v22 = vrot.slane %v917_v3, 2 }
 0x37d   :  { %v3963_v24 = vpop.eup %3962 }
 0x37e   :  { %v906_v25 = vmul.f32 %v3963_v24, %v905_v23 }
 0x37f   :  { %v3965_v56 = vpop.eup %3964 }
 0x380   :  { %v909_v52 = vadd.f32 %v907_v27, %v906_v25  ;;  %v911_v59 = vsub.f32 1.0, %v3965_v56  ;;  %v913_v62 = vmul.f32 %v3965_v56, %v4676_v4 }
 0x382   :  { %3966 = vtanh.f32 %v909_v52 }
 0x38f   :  { %v3967_v60 = vpop.eup %3966 }
 0x390   :  { %v912_v61 = vmul.f32 %v3967_v60, %v911_v59 }
 0x392   :  { %v4718_v63 = vadd.f32 %v913_v62, %v912_v61 }
 0x394   :  { %915 = vst [vmem:[#allocation3 + $0x2] sm:$0x1] %v4718_v63  ;;  %v918_v2 = vpack.c.bf16 %v4718_v63, %v4718_v63 }
 0x396   :  { %952 = vmatmul.mubr.bf16.vlgmr.msra.gmra.mxu0 %v918_v2  ;;  %3474 = vmatmul.mubr.bf16.vlgmr.msra.gmra.mxu1 %v918_v2 }
 0x397   :  { %1032 = vmatpush1.bf16.msra.mxu0 %v4491_v28  ;;  %3478 = vmatpush3.bf16.msra.mxu1 %v4496_v30 }
 0x398   :  { %1033 = vmatprep.subr.bf16.mxu0 %v4493_v29  ;;  %3479 = vmatprep.subr.bf16.mxu1 %v4357_v0 }
 0x399   :  { %1063 = vmatprep.mubr.bf16.mxu0 %v4358_v1  ;;  %3493 = vmatprep.mubr.msk.bf16.mxu1 %vm4359_vm0, %v4357_v0 }
 0x39b   :  { %1034 = vmatpush1.bf16.msra.mxu0 %v4499_v31  ;;  %3480 = vmatpush3.bf16.msra.mxu1 %v4506_v33 }
 0x39c   :  { %1035 = vmatprep.subr.bf16.mxu0 %v4502_v32  ;;  %3481 = vmatprep.subr.bf16.mxu1 %v4357_v0 }
 0x39f   :  { %1036 = vmatpush1.bf16.msra.mxu0 %v4508_v34  ;;  %3482 = vmatpush3.bf16.msra.mxu1 %v4514_v36 }
 0x3a0   :  { %1037 = vmatprep.subr.bf16.mxu0 %v4512_v35  ;;  %3483 = vmatprep.subr.bf16.mxu1 %v4357_v0 }
 0x3a3   :  { %1038 = vmatpush1.bf16.msra.mxu0 %v4521_v37  ;;  %3484 = vmatpush3.bf16.msra.mxu1 %v4526_v39 }
 0x3a4   :  { %1039 = vmatprep.subr.bf16.mxu0 %v4524_v38  ;;  %3485 = vmatprep.subr.bf16.mxu1 %v4357_v0 }
 0x3a7   :  { %1040 = vmatpush1.bf16.msra.mxu0 %v4531_v40  ;;  %3486 = vmatpush3.bf16.msra.mxu1 %v4536_v42 }
 0x3a8   :  { %1041 = vmatprep.subr.bf16.mxu0 %v4534_v41  ;;  %3487 = vmatprep.subr.bf16.mxu1 %v4357_v0 }
 0x3ab   :  { %1042 = vmatpush1.bf16.msra.mxu0 %v4541_v43  ;;  %3488 = vmatpush3.bf16.msra.mxu1 %v4546_v45 }
 0x3ac   :  { %1043 = vmatprep.subr.bf16.mxu0 %v4544_v44  ;;  %3489 = vmatprep.subr.bf16.mxu1 %v4357_v0 }
 0x3af   :  { %1044 = vmatpush1.bf16.msra.mxu0 %v4551_v46  ;;  %3490 = vmatpush3.bf16.msra.mxu1 %v4556_v48 }
 0x3b0   :  { %1045 = vmatprep.subr.bf16.mxu0 %v4554_v47  ;;  %3491 = vmatprep.subr.bf16.mxu1 %v4357_v0 }
 0x3b3   :  { %1046 = vmatpush1.bf16.msra.mxu0 %v4561_v49  ;;  %3492 = vmatpush3.bf16.msra.mxu1 %v4566_v51 }
 0x3b4   :  { %1143 = vmatprep.subr.bf16.mxu0 %v4488_v26  ;;  %3497 = vmatprep.subr.bf16.mxu1 %v4357_v0 }
 0x456   :  { %v953_v4 = vpop.f32.mrf.mxu0  ;;  %v994_v5 = vpop.f32.mrf.mxu1 }
 0x457   :  { %v1000_v6 = vadd.f32 %v953_v4, %v917_v3  ;;  %v1017_v19 = vadd.f32 %v994_v5, %v4630_v53 }
 0x458   :  { %v955_v7 = vpop.f32.mrf.mxu0  ;;  %v3475_v8 = vpop.f32.mrf.mxu1 }
 0x459   :  { %v3105_v50 = vmul.f32 -1.442695, %v1000_v6  ;;  %v1010_v14 = vadd.f32 %v1008_v11, %v955_v7 }
 0x45a   :  { %v957_v9 = vpop.f32.mrf.mxu0  ;;  %v997_v10 = vpop.f32.mrf.mxu1 }
 0x45b   :  { %3968 = vpow2.f32 %v3105_v50  ;;  %v3106_v15 = vmul.f32 -1.442695, %v1010_v14 }
 0x45c   :  { %v958_v12 = vpop.f32.mrf.mxu0  ;;  %v3476_v13 = vpop.f32.mrf.mxu1 }
 0x45d   :  { %3970 = vpow2.f32 %v3106_v15 }
 0x468   :  { %v3969_v16 = vpop.eup %3968 }
 0x469   :  { %v1004_v26 = vadd.f32 1.0, %v3969_v16  ;;  %v4809_v16 = vld [vmem:[#allocation10 + $0xa8] ss:$12 sps:$4 sm:$0xff]  }
 0x46a   :  { %v3971_v17 = vpop.eup %3970 }
 0x46b   :  { %3972 = vrcp.f32 %v1004_v26  ;;  %v1014_v18 = vadd.f32 1.0, %v3971_v17  ;;  %v4812_v26 = vld [vmem:[#allocation10 + $0xb0] ss:$12 sps:$4 sm:$0xff]   ;;  %v4815_v17 = vld [vmem:[#allocation10 + $0x94] ss:$12 sps:$4 sm:$0xff]  }
 0x46d   :  { %3974 = vrcp.f32 %v1014_v18  ;;  %v4822_v18 = vld [vmem:[#allocation10 + $0x90] ss:$12 sps:$4 sm:$0xff]  }
 0x478   :  { %v3973_v20 = vpop.eup %3972 }
 0x479   :  { %v1018_v21 = vmul.f32 %v3973_v20, %v1017_v19  ;;  %v4825_v19 = vld [vmem:[#allocation10 + $0x98] ss:$12 sps:$4 sm:$0xff]   ;;  %v4828_v20 = vld [vmem:[#allocation10 + $0x7c] ss:$12 sps:$4 sm:$0xff]  }
 0x47a   :  { %v3975_v24 = vpop.eup %3974 }
 0x47b   :  { %v1021_v23 = vadd.f32 %v1019_v22, %v1018_v21  ;;  %v1023_v25 = vsub.f32 1.0, %v3975_v24  ;;  %v1025_v56 = vmul.f32 %v3975_v24, %v4718_v63  ;;  %v4832_v21 = vld [vmem:[#allocation10 + $0x78] ss:$12 sps:$4 sm:$0xff]   ;;  %v4835_v22 = vld [vmem:[#allocation10 + $0x80] ss:$12 sps:$4 sm:$0xff]  }
 0x47c   :  { %v4842_v24 = vld [vmem:[#allocation10 + $0x60] ss:$12 sps:$4 sm:$0xff]  }
 0x47d   :  { %3976 = vtanh.f32 %v1021_v23  ;;  %v4838_v23 = vld [vmem:[#allocation10 + $0x64] ss:$12 sps:$4 sm:$0xff]  }
 0x48a   :  { %v3977_v27 = vpop.eup %3976 }
 0x48b   :  { %v1024_v52 = vmul.f32 %v3977_v27, %v1023_v25  ;;  %v4845_v25 = vld [vmem:[#allocation10 + $0x68] ss:$12 sps:$4 sm:$0xff]   ;;  %v4848_v27 = vld [vmem:[#allocation10 + $0x4c] ss:$12 sps:$4 sm:$0xff]  }
 0x48d   :  { %v4760_v59 = vadd.f32 %v1025_v56, %v1024_v52  ;;  %v4852_v52 = vld [vmem:[#allocation10 + $0x48] ss:$12 sps:$4 sm:$0xff]  }
 0x48f   :  { %1027 = vst [vmem:[#allocation3 + $0x3] sm:$0x1] %v4760_v59  ;;  %v1030_v60 = vpack.c.bf16 %v4760_v59, %v4760_v59 }
 0x491   :  { %1064 = vmatmul.mubr.bf16.vlgmr.msra.gmra.mxu0 %v1030_v60  ;;  %3494 = vmatmul.mubr.bf16.vlgmr.msra.gmra.mxu1 %v1030_v60 }
 0x492   :  { %1144 = vmatpush1.bf16.msra.mxu0 %v4491_v28  ;;  %3498 = vmatpush3.bf16.msra.mxu1 %v4496_v30  ;;  %v4798_v28 = vld [vmem:[#allocation10 + $0xac] ss:$12 sps:$4 sm:$0xff]  }
 0x493   :  { %1145 = vmatprep.subr.bf16.mxu0 %v4493_v29  ;;  %3499 = vmatprep.subr.bf16.mxu1 %v4357_v0  ;;  %v1029_v29 = vld [vmem:[#allocation2 + $0x4] ss:$8 sm:$0x7] }
 0x494   :  { %1175 = vmatprep.mubr.bf16.mxu0 %v4358_v1  ;;  %3513 = vmatprep.mubr.msk.bf16.mxu1 %vm4359_vm0, %v4357_v0  ;;  %v1131_v8 = vrot.slane %v1029_v29, 2 }
 0x496   :  { %1146 = vmatpush1.bf16.msra.mxu0 %v4499_v31  ;;  %3500 = vmatpush3.bf16.msra.mxu1 %v4506_v33 }
 0x497   :  { %1147 = vmatprep.subr.bf16.mxu0 %v4502_v32  ;;  %3501 = vmatprep.subr.bf16.mxu1 %v4357_v0 }
 0x49a   :  { %1148 = vmatpush1.bf16.msra.mxu0 %v4508_v34  ;;  %3502 = vmatpush3.bf16.msra.mxu1 %v4514_v36 }
 0x49b   :  { %1149 = vmatprep.subr.bf16.mxu0 %v4512_v35  ;;  %3503 = vmatprep.subr.bf16.mxu1 %v4357_v0 }
 0x49e   :  { %1150 = vmatpush1.bf16.msra.mxu0 %v4521_v37  ;;  %3504 = vmatpush3.bf16.msra.mxu1 %v4526_v39 }
 0x49f   :  { %1151 = vmatprep.subr.bf16.mxu0 %v4524_v38  ;;  %3505 = vmatprep.subr.bf16.mxu1 %v4357_v0  ;;  %v1120_v38 = vrot.slane %v1029_v29, 1 }
 0x4a2   :  { %1152 = vmatpush1.bf16.msra.mxu0 %v4531_v40  ;;  %3506 = vmatpush3.bf16.msra.mxu1 %v4536_v42 }
 0x4a3   :  { %1153 = vmatprep.subr.bf16.mxu0 %v4534_v41  ;;  %3507 = vmatprep.subr.bf16.mxu1 %v4357_v0 }
 0x4a6   :  { %1154 = vmatpush1.bf16.msra.mxu0 %v4541_v43  ;;  %3508 = vmatpush3.bf16.msra.mxu1 %v4546_v45 }
 0x4a7   :  { %1155 = vmatprep.subr.bf16.mxu0 %v4544_v44  ;;  %3509 = vmatprep.subr.bf16.mxu1 %v4357_v0 }
 0x4aa   :  { %1156 = vmatpush1.bf16.msra.mxu0 %v4551_v46  ;;  %3510 = vmatpush3.bf16.msra.mxu1 %v4556_v48 }
 0x4ab   :  { %1157 = vmatprep.subr.bf16.mxu0 %v4554_v47  ;;  %3511 = vmatprep.subr.bf16.mxu1 %v4357_v0 }
 0x4ae   :  { %1158 = vmatpush1.bf16.msra.mxu0 %v4561_v49  ;;  %3512 = vmatpush3.bf16.msra.mxu1 %v4566_v51 }
 0x4af   :  { %1255 = vmatprep.subr.bf16.mxu0 %v4798_v28  ;;  %3517 = vmatprep.subr.bf16.mxu1 %v4357_v0 }
 0x551   :  { %v1065_v30 = vpop.f32.mrf.mxu0  ;;  %v1106_v31 = vpop.f32.mrf.mxu1 }
 0x552   :  { %v1112_v32 = vadd.f32 %v1065_v30, %v1029_v29  ;;  %v1129_v5 = vadd.f32 %v1106_v31, %v4630_v53 }
 0x553   :  { %v1067_v33 = vpop.f32.mrf.mxu0  ;;  %v3495_v34 = vpop.f32.mrf.mxu1 }
 0x554   :  { %v3107_v35 = vmul.f32 -1.442695, %v1112_v32  ;;  %v1122_v61 = vadd.f32 %v1120_v38, %v1067_v33 }
 0x555   :  { %v1069_v36 = vpop.f32.mrf.mxu0  ;;  %v1109_v37 = vpop.f32.mrf.mxu1 }
 0x556   :  { %3978 = vpow2.f32 %v3107_v35  ;;  %v3108_v62 = vmul.f32 -1.442695, %v1122_v61 }
 0x557   :  { %v1070_v39 = vpop.f32.mrf.mxu0  ;;  %v3496_v40 = vpop.f32.mrf.mxu1 }
 0x558   :  { %3980 = vpow2.f32 %v3108_v62 }
 0x563   :  { %v3979_v63 = vpop.eup %3978 }
 0x564   :  { %v1116_v2 = vadd.f32 1.0, %v3979_v63 }
 0x565   :  { %v3981_v3 = vpop.eup %3980 }
 0x566   :  { %3982 = vrcp.f32 %v1116_v2  ;;  %v1126_v4 = vadd.f32 1.0, %v3981_v3  ;;  %v4112_v3 = vld [vmem:[#allocation10 + $0x50] ss:$12 sps:$4 sm:$0xff]  }
 0x568   :  { %3984 = vrcp.f32 %v1126_v4  ;;  %v4113_v4 = vld [vmem:[#allocation10 + $0x34] ss:$12 sps:$4 sm:$0xff]  }
 0x573   :  { %v3983_v6 = vpop.eup %3982 }
 0x574   :  { %v1130_v7 = vmul.f32 %v3983_v6, %v1129_v5  ;;  %v4114_v5 = vld [vmem:[#allocation10 + $0x30] ss:$12 sps:$4 sm:$0xff]   ;;  %v4115_v6 = vld [vmem:[#allocation10 + $0x38] ss:$12 sps:$4 sm:$0xff]  }
 0x575   :  { %v3985_v9 = vpop.eup %3984 }
 0x576   :  { %v1133_v50 = vadd.f32 %v1131_v8, %v1130_v7  ;;  %v1135_v10 = vsub.f32 1.0, %v3985_v9  ;;  %v1137_v13 = vmul.f32 %v3985_v9, %v4760_v59  ;;  %v4116_v7 = vld [vmem:[#allocation10 + $0x1c] ss:$12 sps:$4 sm:$0xff]   ;;  %v4117_v8 = vld [vmem:[#allocation10 + $0x18] ss:$12 sps:$4 sm:$0xff]  }
 0x577   :  { %v4119_v9 = vld [vmem:[#allocation10 + $0x4] ss:$12 sps:$4 sm:$0xff]  }
 0x578   :  { %3986 = vtanh.f32 %v1133_v50  ;;  %v4118_v50 = vld [vmem:[#allocation10 + $0x20] ss:$12 sps:$4 sm:$0xff]  }
 0x585   :  { %v3987_v11 = vpop.eup %3986 }
 0x586   :  { %v1136_v12 = vmul.f32 %v3987_v11, %v1135_v10  ;;  %v4120_v10 = vld [vmem:[#allocation10] ss:$12 sps:$4 sm:$0xff]   ;;  %v4121_v11 = vld [vmem:[#allocation10 + $0x8] ss:$12 sps:$4 sm:$0xff]  }
 0x588   :  { %v4804_v14 = vadd.f32 %v1137_v13, %v1136_v12  ;;  %v1253_v12 = vld [vmem:[#allocation2 + $0x6] ss:$8 sm:$0x7] }
 0x58a   :  { %1139 = vst [vmem:[#allocation3 + $0x4] sm:$0x1] %v4804_v14  ;;  %v1142_v15 = vpack.c.bf16 %v4804_v14, %v4804_v14 }
 0x58c   :  { %1176 = vmatmul.mubr.bf16.vlgmr.msra.gmra.mxu0 %v1142_v15  ;;  %3514 = vmatmul.mubr.bf16.vlgmr.msra.gmra.mxu1 %v1142_v15 }
 0x58d   :  { %1256 = vmatpush1.bf16.msra.mxu0 %v4809_v16  ;;  %3518 = vmatpush3.bf16.msra.mxu1 %v4812_v26 }
 0x58e   :  { %1257 = vmatprep.subr.bf16.mxu0 %v4815_v17  ;;  %3519 = vmatprep.subr.bf16.mxu1 %v4357_v0 }
 0x58f   :  { %1287 = vmatprep.mubr.bf16.mxu0 %v4358_v1  ;;  %3533 = vmatprep.mubr.msk.bf16.mxu1 %vm4359_vm0, %v4357_v0 }
 0x591   :  { %1258 = vmatpush1.bf16.msra.mxu0 %v4822_v18  ;;  %3520 = vmatpush3.bf16.msra.mxu1 %v4825_v19 }
 0x592   :  { %1259 = vmatprep.subr.bf16.mxu0 %v4828_v20  ;;  %3521 = vmatprep.subr.bf16.mxu1 %v4357_v0 }
 0x595   :  { %1260 = vmatpush1.bf16.msra.mxu0 %v4832_v21  ;;  %3522 = vmatpush3.bf16.msra.mxu1 %v4835_v22 }
 0x596   :  { %1261 = vmatprep.subr.bf16.mxu0 %v4838_v23  ;;  %3523 = vmatprep.subr.bf16.mxu1 %v4357_v0 }
 0x599   :  { %1262 = vmatpush1.bf16.msra.mxu0 %v4842_v24  ;;  %3524 = vmatpush3.bf16.msra.mxu1 %v4845_v25 }
 0x59a   :  { %1263 = vmatprep.subr.bf16.mxu0 %v4848_v27  ;;  %3525 = vmatprep.subr.bf16.mxu1 %v4357_v0 }
 0x59d   :  { %1264 = vmatpush1.bf16.msra.mxu0 %v4852_v52  ;;  %3526 = vmatpush3.bf16.msra.mxu1 %v4536_v42 }
 0x59e   :  { %1265 = vmatprep.subr.bf16.mxu0 %v4534_v41  ;;  %3527 = vmatprep.subr.bf16.mxu1 %v4357_v0  ;;  %v1141_v41 = vld [vmem:[#allocation2 + $0x5] ss:$8 sm:$0x7] }
 0x59f   :  { %v1243_v36 = vrot.slane %v1141_v41, 2 }
 0x5a1   :  { %1266 = vmatpush1.bf16.msra.mxu0 %v4541_v43  ;;  %3528 = vmatpush3.bf16.msra.mxu1 %v4546_v45 }
 0x5a2   :  { %1267 = vmatprep.subr.bf16.mxu0 %v4544_v44  ;;  %3529 = vmatprep.subr.bf16.mxu1 %v4357_v0 }
 0x5a5   :  { %1268 = vmatpush1.bf16.msra.mxu0 %v4551_v46  ;;  %3530 = vmatpush3.bf16.msra.mxu1 %v4556_v48 }
 0x5a6   :  { %1269 = vmatprep.subr.bf16.mxu0 %v4554_v47  ;;  %3531 = vmatprep.subr.bf16.mxu1 %v4357_v0  ;;  %v1232_v47 = vrot.slane %v1141_v41, 1 }
 0x5a9   :  { %1270 = vmatpush1.bf16.msra.mxu0 %v4561_v49  ;;  %3532 = vmatpush3.bf16.msra.mxu1 %v4566_v51 }
 0x5aa   :  { %1367 = vmatprep.subr.bf16.mxu0 %v4798_v28  ;;  %3537 = vmatprep.subr.bf16.mxu1 %v4357_v0 }
 0x64c   :  { %v1177_v42 = vpop.f32.mrf.mxu0  ;;  %v1218_v43 = vpop.f32.mrf.mxu1 }
 0x64d   :  { %v1224_v44 = vadd.f32 %v1177_v42, %v1141_v41  ;;  %v1241_v33 = vadd.f32 %v1218_v43, %v4630_v53 }
 0x64e   :  { %v1179_v45 = vpop.f32.mrf.mxu0  ;;  %v3515_v46 = vpop.f32.mrf.mxu1 }
 0x64f   :  { %v3109_v56 = vmul.f32 -1.442695, %v1224_v44  ;;  %v1234_v49 = vadd.f32 %v1232_v47, %v1179_v45  ;;  %v1355_v45 = vrot.slane %v1253_v12, 2 }
 0x650   :  { %v1181_v48 = vpop.f32.mrf.mxu0  ;;  %v1221_v59 = vpop.f32.mrf.mxu1 }
 0x651   :  { %3988 = vpow2.f32 %v3109_v56  ;;  %v3110_v30 = vmul.f32 -1.442695, %v1234_v49 }
 0x652   :  { %v1182_v60 = vpop.f32.mrf.mxu0  ;;  %v3516_v29 = vpop.f32.mrf.mxu1 }
 0x653   :  { %3990 = vpow2.f32 %v3110_v30  ;;  %v3858_v30 = vld [vmem:[#allocation12 + $0xa8] ss:$12 sps:$4 sm:$0xff]  }
 0x65e   :  { %v3989_v51 = vpop.eup %3988 }
 0x65f   :  { %v1228_v28 = vadd.f32 1.0, %v3989_v51  ;;  %v3861_v51 = vld [vmem:[#allocation12 + $0xb0] ss:$12 sps:$4 sm:$0xff]  }
 0x660   :  { %v3991_v31 = vpop.eup %3990 }
 0x661   :  { %3992 = vrcp.f32 %v1228_v28  ;;  %v1238_v32 = vadd.f32 1.0, %v3991_v31  ;;  %v3864_v28 = vld [vmem:[#allocation12 + $0x94] ss:$12 sps:$4 sm:$0xff]   ;;  %v3862_v31 = vld [vmem:[#allocation12 + $0x90] ss:$12 sps:$4 sm:$0xff]  }
 0x663   :  { %3994 = vrcp.f32 %v1238_v32  ;;  %v3865_v32 = vld [vmem:[#allocation12 + $0x98] ss:$12 sps:$4 sm:$0xff]  }
 0x66e   :  { %v3993_v34 = vpop.eup %3992 }
 0x66f   :  { %v1242_v35 = vmul.f32 %v3993_v34, %v1241_v33  ;;  %v3868_v33 = vld [vmem:[#allocation12 + $0x7c] ss:$12 sps:$4 sm:$0xff]   ;;  %v3866_v34 = vld [vmem:[#allocation12 + $0x78] ss:$12 sps:$4 sm:$0xff]  }
 0x670   :  { %v3995_v38 = vpop.eup %3994 }
 0x671   :  { %v1245_v37 = vadd.f32 %v1243_v36, %v1242_v35  ;;  %v1247_v39 = vsub.f32 1.0, %v3995_v38  ;;  %v1249_v62 = vmul.f32 %v3995_v38, %v4804_v14  ;;  %v3869_v35 = vld [vmem:[#allocation12 + $0x80] ss:$12 sps:$4 sm:$0xff]   ;;  %v3872_v36 = vld [vmem:[#allocation12 + $0x64] ss:$12 sps:$4 sm:$0xff]  }
 0x672   :  { %v3873_v38 = vld [vmem:[#allocation12 + $0x68] ss:$12 sps:$4 sm:$0xff]  }
 0x673   :  { %3996 = vtanh.f32 %v1245_v37  ;;  %v3870_v37 = vld [vmem:[#allocation12 + $0x60] ss:$12 sps:$4 sm:$0xff]  }
 0x680   :  { %v3997_v40 = vpop.eup %3996 }
 0x681   :  { %v1248_v61 = vmul.f32 %v3997_v40, %v1247_v39  ;;  %v3876_v39 = vld [vmem:[#allocation12 + $0x4c] ss:$12 sps:$4 sm:$0xff]   ;;  %v3874_v40 = vld [vmem:[#allocation12 + $0x48] ss:$12 sps:$4 sm:$0xff]  }
 0x683   :  { %v4872_v63 = vadd.f32 %v1249_v62, %v1248_v61  ;;  %v3877_v61 = vld [vmem:[#allocation12 + $0x50] ss:$12 sps:$4 sm:$0xff]  }
 0x684   :  { %v3878_v62 = vld [vmem:[#allocation12 + $0x30] ss:$12 sps:$4 sm:$0xff]  }
 0x685   :  { %1251 = vst [vmem:[#allocation3 + $0x5] sm:$0x1] %v4872_v63  ;;  %v1254_v2 = vpack.c.bf16 %v4872_v63, %v4872_v63 }
 0x687   :  { %1288 = vmatmul.mubr.bf16.vlgmr.msra.gmra.mxu0 %v1254_v2  ;;  %3534 = vmatmul.mubr.bf16.vlgmr.msra.gmra.mxu1 %v1254_v2  ;;  %v3881_v2 = vld [vmem:[#allocation12 + $0x38] ss:$12 sps:$4 sm:$0xff]  }
 0x688   :  { %1368 = vmatpush1.bf16.msra.mxu0 %v4809_v16  ;;  %3538 = vmatpush3.bf16.msra.mxu1 %v4812_v26 }
 0x689   :  { %1369 = vmatprep.subr.bf16.mxu0 %v4815_v17  ;;  %3539 = vmatprep.subr.bf16.mxu1 %v4357_v0 }
 0x68a   :  { %1399 = vmatprep.mubr.bf16.mxu0 %v4358_v1  ;;  %3553 = vmatprep.mubr.msk.bf16.mxu1 %vm4359_vm0, %v4357_v0 }
 0x68c   :  { %1370 = vmatpush1.bf16.msra.mxu0 %v4822_v18  ;;  %3540 = vmatpush3.bf16.msra.mxu1 %v4825_v19 }
 0x68d   :  { %1371 = vmatprep.subr.bf16.mxu0 %v4828_v20  ;;  %3541 = vmatprep.subr.bf16.mxu1 %v4357_v0  ;;  %v1344_v20 = vrot.slane %v1253_v12, 1 }
 0x690   :  { %1372 = vmatpush1.bf16.msra.mxu0 %v4832_v21  ;;  %3542 = vmatpush3.bf16.msra.mxu1 %v4835_v22 }
 0x691   :  { %1373 = vmatprep.subr.bf16.mxu0 %v4838_v23  ;;  %3543 = vmatprep.subr.bf16.mxu1 %v4357_v0 }
 0x694   :  { %1374 = vmatpush1.bf16.msra.mxu0 %v4842_v24  ;;  %3544 = vmatpush3.bf16.msra.mxu1 %v4845_v25 }
 0x695   :  { %1375 = vmatprep.subr.bf16.mxu0 %v4848_v27  ;;  %3545 = vmatprep.subr.bf16.mxu1 %v4357_v0 }
 0x698   :  { %1376 = vmatpush1.bf16.msra.mxu0 %v4852_v52  ;;  %3546 = vmatpush3.bf16.msra.mxu1 %v4112_v3  ;;  %v3884_v3 = vld [vmem:[#allocation12 + $0x1c] ss:$12 sps:$4 sm:$0xff]  }
 0x699   :  { %1377 = vmatprep.subr.bf16.mxu0 %v4113_v4  ;;  %3547 = vmatprep.subr.bf16.mxu1 %v4357_v0  ;;  %v3882_v4 = vld [vmem:[#allocation12 + $0x18] ss:$12 sps:$4 sm:$0xff]  }
 0x69c   :  { %1378 = vmatpush1.bf16.msra.mxu0 %v4114_v5  ;;  %3548 = vmatpush3.bf16.msra.mxu1 %v4115_v6  ;;  %v3885_v5 = vld [vmem:[#allocation12 + $0x20] ss:$12 sps:$4 sm:$0xff]   ;;  %v3888_v6 = vld [vmem:[#allocation12 + $0x4] ss:$12 sps:$4 sm:$0xff]  }
 0x69d   :  { %1379 = vmatprep.subr.bf16.mxu0 %v4116_v7  ;;  %3549 = vmatprep.subr.bf16.mxu1 %v4357_v0  ;;  %v3886_v7 = vld [vmem:[#allocation12] ss:$12 sps:$4 sm:$0xff]  }
 0x6a0   :  { %1380 = vmatpush1.bf16.msra.mxu0 %v4117_v8  ;;  %3550 = vmatpush3.bf16.msra.mxu1 %v4118_v50  ;;  %v3889_v8 = vld [vmem:[#allocation12 + $0x8] ss:$12 sps:$4 sm:$0xff]   ;;  %v4917_v50 = vld [vmem:[#allocation13 + $0xac] ss:$12 sps:$4 sm:$0xff]  }
 0x6a1   :  { %1381 = vmatprep.subr.bf16.mxu0 %v4119_v9  ;;  %3551 = vmatprep.subr.bf16.mxu1 %v4357_v0  ;;  %v1365_v9 = vld [vmem:[#allocation2 + $0x7] ss:$8 sm:$0x7] }
 0x6a4   :  { %1382 = vmatpush1.bf16.msra.mxu0 %v4120_v10  ;;  %3552 = vmatpush3.bf16.msra.mxu1 %v4121_v11 }
 0x6a5   :  { %3557 = vmatprep.subr.bf16.mxu1 %v4357_v0 }
 0x747   :  { %v1289_v13 = vpop.f32.mrf.mxu0  ;;  %v1330_v14 = vpop.f32.mrf.mxu1 }
 0x748   :  { %v1336_v15 = vadd.f32 %v1289_v13, %v1253_v12  ;;  %v1353_v42 = vadd.f32 %v1330_v14, %v4630_v53  ;;  %v3860_v53 = vld [vmem:[#allocation12 + $0xac] ss:$12 sps:$4 sm:$0xff]  }
 0x749   :  { %v1291_v16 = vpop.f32.mrf.mxu0  ;;  %v3535_v26 = vpop.f32.mrf.mxu1  ;;  %1655 = vmatprep.subr.bf16.mxu0 %v3860_v53  ;;  %v4928_v53 = vld [vmem:[#allocation13 + $0xb0] ss:$12 sps:$4 sm:$0xff]  }
 0x74a   :  { %v3111_v17 = vmul.f32 -1.442695, %v1336_v15  ;;  %v1346_v23 = vadd.f32 %v1344_v20, %v1291_v16 }
 0x74b   :  { %v1293_v18 = vpop.f32.mrf.mxu0  ;;  %v1333_v19 = vpop.f32.mrf.mxu1 }
 0x74c   :  { %3998 = vpow2.f32 %v3111_v17  ;;  %v3112_v24 = vmul.f32 -1.442695, %v1346_v23  ;;  %v1456_v17 = vrot.slane %v1365_v9, 1 }
 0x74d   :  { %v1294_v21 = vpop.f32.mrf.mxu0  ;;  %v3536_v22 = vpop.f32.mrf.mxu1 }
 0x74e   :  { %4000 = vpow2.f32 %v3112_v24 }
 0x759   :  { %v3999_v25 = vpop.eup %3998 }
 0x75a   :  { %v1340_v27 = vadd.f32 1.0, %v3999_v25 }
 0x75b   :  { %v4001_v52 = vpop.eup %4000 }
 0x75c   :  { %4002 = vrcp.f32 %v1340_v27  ;;  %v1350_v41 = vadd.f32 1.0, %v4001_v52  ;;  %v4122_v27 = vld [vmem:[%s5351_s5] sm:$0x1] }
 0x75e   :  { %4004 = vrcp.f32 %v1350_v41 }
 0x769   :  { %v4003_v43 = vpop.eup %4002 }
 0x76a   :  { %v1354_v44 = vmul.f32 %v4003_v43, %v1353_v42  ;;  %v1467_v43 = vrot.slane %v1365_v9, 2 }
 0x76b   :  { %v4005_v56 = vpop.eup %4004 }
 0x76c   :  { %v1357_v46 = vadd.f32 %v1355_v45, %v1354_v44  ;;  %v1359_v48 = vsub.f32 1.0, %v4005_v56  ;;  %v1361_v60 = vmul.f32 %v4005_v56, %v4872_v63  ;;  %v3880_v63 = vld [vmem:[#allocation12 + $0x34] ss:$12 sps:$4 sm:$0xff]  }
 0x76e   :  { %4006 = vtanh.f32 %v1357_v46 }
 0x77b   :  { %v4007_v59 = vpop.eup %4006 }
 0x77c   :  { %v1360_v47 = vmul.f32 %v4007_v59, %v1359_v48 }
 0x77e   :  { %v4903_v29 = vadd.f32 %v1361_v60, %v1360_v47 }
 0x780   :  { %1363 = vst [vmem:[#allocation3 + $0x6] sm:$0x1] %v4903_v29  ;;  %v1366_v49 = vpack.c.bf16 %v4903_v29, %v4903_v29 }
 0x782   :  { %1400 = vmatmul.mubr.bf16.vlgmr.msra.gmra.mxu0 %v1366_v49  ;;  %3554 = vmatmul.mubr.bf16.vlgmr.msra.gmra.mxu1 %v1366_v49  ;;  %v4926_v49 = vld [vmem:[#allocation13 + $0xa8] ss:$12 sps:$4 sm:$0xff]  }
 0x783   :  { %1687 = vmatprep.mubr.bf16.mxu0 %v4358_v1  ;;  %3573 = vmatprep.mubr.msk.bf16.mxu1 %vm4359_vm0, %v4357_v0 }
 0x784   :  { %1656 = vmatpush1.bf16.msra.mxu0 %v3858_v30  ;;  %3558 = vmatpush3.bf16.msra.mxu1 %v3861_v51  ;;  %v4930_v51 = vld [vmem:[#allocation13 + $0x94] ss:$12 sps:$4 sm:$0xff]  }
 0x785   :  { %3559 = vmatprep.subr.bf16.mxu1 %v4357_v0  ;;  %1657 = vmatprep.subr.bf16.mxu0 %v3864_v28  ;;  %v4933_v28 = vld [vmem:[#allocation13 + $0x90] ss:$12 sps:$4 sm:$0xff]  }
 0x788   :  { %1658 = vmatpush1.bf16.msra.mxu0 %v3862_v31  ;;  %3560 = vmatpush3.bf16.msra.mxu1 %v3865_v32  ;;  %v4939_v31 = vld [vmem:[#allocation13 + $0x7c] ss:$12 sps:$4 sm:$0xff]   ;;  %v4946_v32 = vld [vmem:[#allocation13 + $0x78] ss:$12 sps:$4 sm:$0xff]  }
 0x789   :  { %3561 = vmatprep.subr.bf16.mxu1 %v4357_v0  ;;  %1659 = vmatprep.subr.bf16.mxu0 %v3868_v33  ;;  %v4949_v33 = vld [vmem:[#allocation13 + $0x80] ss:$12 sps:$4 sm:$0xff]  }
 0x78c   :  { %1660 = vmatpush1.bf16.msra.mxu0 %v3866_v34  ;;  %3562 = vmatpush3.bf16.msra.mxu1 %v3869_v35  ;;  %v4952_v34 = vld [vmem:[#allocation13 + $0x64] ss:$12 sps:$4 sm:$0xff]   ;;  %v4956_v35 = vld [vmem:[#allocation13 + $0x60] ss:$12 sps:$4 sm:$0xff]  }
 0x78d   :  { %3563 = vmatprep.subr.bf16.mxu1 %v4357_v0  ;;  %1661 = vmatprep.subr.bf16.mxu0 %v3872_v36  ;;  %v4959_v36 = vld [vmem:[#allocation13 + $0x68] ss:$12 sps:$4 sm:$0xff]  }
 0x790   :  { %1662 = vmatpush1.bf16.msra.mxu0 %v3870_v37  ;;  %3564 = vmatpush3.bf16.msra.mxu1 %v3873_v38  ;;  %v4962_v37 = vld [vmem:[#allocation13 + $0x4c] ss:$12 sps:$4 sm:$0xff]   ;;  %v4966_v38 = vld [vmem:[#allocation13 + $0x48] ss:$12 sps:$4 sm:$0xff]  }
 0x791   :  { %3565 = vmatprep.subr.bf16.mxu1 %v4357_v0  ;;  %1663 = vmatprep.subr.bf16.mxu0 %v3876_v39  ;;  %v4969_v39 = vld [vmem:[#allocation13 + $0x50] ss:$12 sps:$4 sm:$0xff]  }
 0x794   :  { %1664 = vmatpush1.bf16.msra.mxu0 %v3874_v40  ;;  %3566 = vmatpush3.bf16.msra.mxu1 %v3877_v61  ;;  %v4972_v40 = vld [vmem:[#allocation13 + $0x34] ss:$12 sps:$4 sm:$0xff]   ;;  %v4976_v61 = vld [vmem:[#allocation13 + $0x30] ss:$12 sps:$4 sm:$0xff]  }
 0x795   :  { %1665 = vmatprep.subr.bf16.mxu0 %v3880_v63  ;;  %3567 = vmatprep.subr.bf16.mxu1 %v4357_v0  ;;  %v4982_v63 = vld [vmem:[#allocation13 + $0x1c] ss:$12 sps:$4 sm:$0xff]  }
 0x798   :  { %1666 = vmatpush1.bf16.msra.mxu0 %v3878_v62  ;;  %3568 = vmatpush3.bf16.msra.mxu1 %v3881_v2  ;;  %v4979_v62 = vld [vmem:[#allocation13 + $0x38] ss:$12 sps:$4 sm:$0xff]  }
 0x799   :  { %1667 = vmatprep.subr.bf16.mxu0 %v3884_v3  ;;  %3569 = vmatprep.subr.bf16.mxu1 %v4357_v0  ;;  %v4986_v2 = vld [vmem:[#allocation13 + $0x18] ss:$12 sps:$4 sm:$0xff]   ;;  %v4989_v3 = vld [vmem:[#allocation13 + $0x20] ss:$12 sps:$4 sm:$0xff]  }
 0x79c   :  { %1668 = vmatpush1.bf16.msra.mxu0 %v3882_v4  ;;  %3570 = vmatpush3.bf16.msra.mxu1 %v3885_v5  ;;  %v4992_v4 = vld [vmem:[#allocation13 + $0x4] ss:$12 sps:$4 sm:$0xff]   ;;  %v4996_v5 = vld [vmem:[#allocation13] ss:$12 sps:$4 sm:$0xff]  }
 0x79d   :  { %1669 = vmatprep.subr.bf16.mxu0 %v3888_v6  ;;  %3571 = vmatprep.subr.bf16.mxu1 %v4357_v0  ;;  %v4998_v6 = vld [vmem:[#allocation7 + $0x1] sm:$0x1] }
 0x7a0   :  { %1670 = vmatpush1.bf16.msra.mxu0 %v3886_v7  ;;  %3572 = vmatpush3.bf16.msra.mxu1 %v3889_v8  ;;  %v5001_v7 = vld [vmem:[#allocation13 + $0x8] ss:$12 sps:$4 sm:$0xff]   ;;  %v1774_v8 = vpack.c.bf16 %v4998_v6, %v4998_v6 }
 0x7a1   :  { %1903 = vmatprep.subr.bf16.mxu0 %v4917_v50  ;;  %3577 = vmatprep.subr.bf16.mxu1 %v4357_v0 }
 0x842   :  { %v1401_v10 = vpop.f32.mrf.mxu0  ;;  %v1442_v11 = vpop.f32.mrf.mxu1 }
 0x843   :  { %v1448_v12 = vadd.f32 %v1401_v10, %v1365_v9  ;;  %v1465_v52 = vadd.f32 %v4122_v27, %v1442_v11  ;;  %v1510_v9 = vld [vmem:[%s5354_s8] sm:$0x7] }
 0x844   :  { %v1403_v13 = vpop.f32.mrf.mxu0  ;;  %v3555_v14 = vpop.f32.mrf.mxu1  ;;  %v1515_v10 = vrot.slane %v1510_v9, %v194_v55  ;;  %v1523_v11 = vrot.slane %v1510_v9, %v202_v57 }
 0x845   :  { %v3113_v15 = vmul.f32 -1.442695, %v1448_v12  ;;  %v1458_v20 = vadd.f32 %v1456_v17, %v1403_v13  ;;  %v1519_v12 = vrot.slane %v1510_v9, %v198_v58 }
 0x846   :  { %v1405_v16 = vpop.f32.mrf.mxu0  ;;  %v1445_v26 = vpop.f32.mrf.mxu1 }
 0x847   :  { %4008 = vpow2.f32 %v3113_v15  ;;  %v3114_v21 = vmul.f32 -1.442695, %v1458_v20 }
 0x848   :  { %v1406_v18 = vpop.f32.mrf.mxu0  ;;  %v3556_v19 = vpop.f32.mrf.mxu1 }
 0x849   :  { %4010 = vpow2.f32 %v3114_v21 }
 0x854   :  { %v4009_v22 = vpop.eup %4008 }
 0x855   :  { %v1452_v23 = vadd.f32 1.0, %v4009_v22 }
 0x856   :  { %v4011_v24 = vpop.eup %4010 }
 0x857   :  { %4012 = vrcp.f32 %v1452_v23  ;;  %v1462_v25 = vadd.f32 1.0, %v4011_v24 }
 0x859   :  { %4014 = vrcp.f32 %v1462_v25 }
 0x864   :  { %v4013_v41 = vpop.eup %4012 }
 0x865   :  { %v1466_v42 = vmul.f32 %v4013_v41, %v1465_v52 }
 0x866   :  { %v4015_v45 = vpop.eup %4014 }
 0x867   :  { %v1469_v44 = vadd.f32 %v1467_v43, %v1466_v42  ;;  %v1471_v46 = vsub.f32 1.0, %v4015_v45  ;;  %v1473_v59 = vmul.f32 %v4015_v45, %v4903_v29  ;;  %v4936_v29 = vld [vmem:[#allocation13 + $0x98] ss:$12 sps:$4 sm:$0xff]  }
 0x869   :  { %4016 = vtanh.f32 %v1469_v44 }
 0x876   :  { %v4017_v56 = vpop.eup %4016 }
 0x877   :  { %v1472_v48 = vmul.f32 %v4017_v56, %v1471_v46 }
 0x879   :  { %v1474_v47 = vadd.f32 %v1473_v59, %v1472_v48  ;;  %v5058_v59 = vld [vmem:[%s5355_s9] sm:$0x1] }
 0x87b   :  { %1475 = vst [vmem:[#allocation3 + $0x7] sm:$0x1] %v1474_v47  ;;  %2789 = vst [vmem:[#allocation18] sm:$0x1] %v1474_v47 }
 0x882   :  { %v1476_v60 = vld [vmem:[#allocation3] sm:$0xff] }
 0x883   :  { %v1477_v30 = vpack.c.bf16 %v1476_v60, %v1476_v60 }
 0x885   :  { %1688 = vmatmul.mubr.bf16.vlgmr.msra.gmra.mxu0 %v1477_v30  ;;  %3574 = vmatmul.mubr.bf16.vlgmr.msra.gmra.mxu1 %v1477_v30 }
 0x886   :  { %1904 = vmatpush1.bf16.msra.mxu0 %v4926_v49  ;;  %3578 = vmatpush3.bf16.msra.mxu1 %v4928_v53 }
 0x887   :  { %1905 = vmatprep.subr.bf16.mxu0 %v4930_v51  ;;  %3579 = vmatprep.subr.bf16.mxu1 %v4357_v0 }
 0x888   :  { %1935 = vmatprep.mubr.bf16.mxu0 %v4358_v1  ;;  %3593 = vmatprep.mubr.msk.bf16.mxu1 %vm4359_vm0, %v4357_v0 }
 0x88a   :  { %1906 = vmatpush1.bf16.msra.mxu0 %v4933_v28  ;;  %3580 = vmatpush3.bf16.msra.mxu1 %v4936_v29 }
 0x88b   :  { %1907 = vmatprep.subr.bf16.mxu0 %v4939_v31  ;;  %3581 = vmatprep.subr.bf16.mxu1 %v4357_v0 }
 0x88e   :  { %1908 = vmatpush1.bf16.msra.mxu0 %v4946_v32  ;;  %3582 = vmatpush3.bf16.msra.mxu1 %v4949_v33 }
 0x88f   :  { %1909 = vmatprep.subr.bf16.mxu0 %v4952_v34  ;;  %3583 = vmatprep.subr.bf16.mxu1 %v4357_v0 }
 0x892   :  { %1910 = vmatpush1.bf16.msra.mxu0 %v4956_v35  ;;  %3584 = vmatpush3.bf16.msra.mxu1 %v4959_v36 }
 0x893   :  { %1911 = vmatprep.subr.bf16.mxu0 %v4962_v37  ;;  %3585 = vmatprep.subr.bf16.mxu1 %v4357_v0 }
 0x896   :  { %1912 = vmatpush1.bf16.msra.mxu0 %v4966_v38  ;;  %3586 = vmatpush3.bf16.msra.mxu1 %v4969_v39 }
 0x897   :  { %1913 = vmatprep.subr.bf16.mxu0 %v4972_v40  ;;  %3587 = vmatprep.subr.bf16.mxu1 %v4357_v0 }
 0x89a   :  { %1914 = vmatpush1.bf16.msra.mxu0 %v4976_v61  ;;  %3588 = vmatpush3.bf16.msra.mxu1 %v4979_v62 }
 0x89b   :  { %1915 = vmatprep.subr.bf16.mxu0 %v4982_v63  ;;  %3589 = vmatprep.subr.bf16.mxu1 %v4357_v0 }
 0x89e   :  { %1916 = vmatpush1.bf16.msra.mxu0 %v4986_v2  ;;  %3590 = vmatpush3.bf16.msra.mxu1 %v4989_v3 }
 0x89f   :  { %1917 = vmatprep.subr.bf16.mxu0 %v4992_v4  ;;  %3591 = vmatprep.subr.bf16.mxu1 %v4357_v0 }
 0x8a2   :  { %1918 = vmatpush1.bf16.msra.mxu0 %v4996_v5  ;;  %3592 = vmatpush3.bf16.msra.mxu1 %v5001_v7 }
 0x8a3   :  { %2014 = vmatprep.subr.bf16.mxu0 %v4917_v50  ;;  %3597 = vmatprep.subr.bf16.mxu1 %v4357_v0 }
 0x8a5   :  { %1936 = vmatmul.mubr.bf16.vlgmr.msra.gmra.mxu0 %v1774_v8  ;;  %3594 = vmatmul.mubr.bf16.vlgmr.msra.gmra.mxu1 %v1774_v8 }
 0x8a6   :  { %2015 = vmatpush1.bf16.msra.mxu0 %v4926_v49  ;;  %3598 = vmatpush3.bf16.msra.mxu1 %v4928_v53 }
 0x8a7   :  { %2016 = vmatprep.subr.bf16.mxu0 %v4930_v51  ;;  %3599 = vmatprep.subr.bf16.mxu1 %v4357_v0 }
 0x8a8   :  { %2046 = vmatprep.mubr.bf16.mxu0 %v4358_v1  ;;  %3613 = vmatprep.mubr.msk.bf16.mxu1 %vm4359_vm0, %v4357_v0 }
 0x8aa   :  { %2017 = vmatpush1.bf16.msra.mxu0 %v4933_v28  ;;  %3600 = vmatpush3.bf16.msra.mxu1 %v4936_v29 }
 0x8ab   :  { %2018 = vmatprep.subr.bf16.mxu0 %v4939_v31  ;;  %3601 = vmatprep.subr.bf16.mxu1 %v4357_v0 }
 0x8ae   :  { %2019 = vmatpush1.bf16.msra.mxu0 %v4946_v32  ;;  %3602 = vmatpush3.bf16.msra.mxu1 %v4949_v33 }
 0x8af   :  { %2020 = vmatprep.subr.bf16.mxu0 %v4952_v34  ;;  %3603 = vmatprep.subr.bf16.mxu1 %v4357_v0 }
 0x8b2   :  { %2021 = vmatpush1.bf16.msra.mxu0 %v4956_v35  ;;  %3604 = vmatpush3.bf16.msra.mxu1 %v4959_v36 }
 0x8b3   :  { %2022 = vmatprep.subr.bf16.mxu0 %v4962_v37  ;;  %3605 = vmatprep.subr.bf16.mxu1 %v4357_v0 }
 0x8b6   :  { %2023 = vmatpush1.bf16.msra.mxu0 %v4966_v38  ;;  %3606 = vmatpush3.bf16.msra.mxu1 %v4969_v39 }
 0x8b7   :  { %2024 = vmatprep.subr.bf16.mxu0 %v4972_v40  ;;  %3607 = vmatprep.subr.bf16.mxu1 %v4357_v0 }
 0x8ba   :  { %2025 = vmatpush1.bf16.msra.mxu0 %v4976_v61  ;;  %3608 = vmatpush3.bf16.msra.mxu1 %v4979_v62 }
 0x8bb   :  { %2026 = vmatprep.subr.bf16.mxu0 %v4982_v63  ;;  %3609 = vmatprep.subr.bf16.mxu1 %v4357_v0 }
 0x8be   :  { %2027 = vmatpush1.bf16.msra.mxu0 %v4986_v2  ;;  %3610 = vmatpush3.bf16.msra.mxu1 %v4989_v3 }
 0x8bf   :  { %2028 = vmatprep.subr.bf16.mxu0 %v4992_v4  ;;  %3611 = vmatprep.subr.bf16.mxu1 %v4357_v0 }
 0x8c2   :  { %2029 = vmatpush1.bf16.msra.mxu0 %v4996_v5  ;;  %3612 = vmatpush3.bf16.msra.mxu1 %v5001_v7 }
 0x8c3   :  { %2125 = vmatprep.subr.bf16.mxu0 %v4917_v50  ;;  %3617 = vmatprep.subr.bf16.mxu1 %v4357_v0 }
 0x945   :  { %v1689_v13 = vpop.f32.mrf.mxu0  ;;  %v1730_v14 = vpop.f32.mrf.mxu1 }
 0x946   :  { %v1690_v15 = vadd.f32 %v1689_v13, %v1515_v10  ;;  %v1731_v16 = vadd.f32 %v1730_v14, %v1523_v11 }
 0x947   :  { %v1691_v26 = vpop.f32.mrf.mxu0  ;;  %v3575_v17 = vpop.f32.mrf.mxu1 }
 0x948   :  { %1736 = vst [vmem:[#allocation2] sm:$0xff] %v1690_v15  ;;  %1738 = vst [vmem:[#allocation2 + $0x10] sm:$0xff] %v1731_v16  ;;  %v1692_v18 = vadd.f32 %v1691_v26, %v1519_v12 }
 0x949   :  { %v1693_v19 = vpop.f32.mrf.mxu0  ;;  %v1733_v20 = vpop.f32.mrf.mxu1 }
 0x94a   :  { %1737 = vst [vmem:[#allocation2 + $0x8] sm:$0xff] %v1692_v18 }
 0x94b   :  { %v1694_v21 = vpop.f32.mrf.mxu0  ;;  %v3576_v55 = vpop.f32.mrf.mxu1 }
 0x951   :  { %v1773_v22 = vld [vmem:[#allocation2] ss:$8 sm:$0x7] }
 0x952   :  { %v1992_v41 = vrot.slane %v1773_v22, 1  ;;  %v2003_v8 = vrot.slane %v1773_v22, 2 }
 0x965   :  { %v1937_v23 = vpop.f32.mrf.mxu0  ;;  %v1978_v57 = vpop.f32.mrf.mxu1 }
 0x966   :  { %v1984_v24 = vadd.f32 %v1937_v23, %v1773_v22  ;;  %v2001_v60 = vadd.f32 %v1978_v57, %v5058_v59 }
 0x967   :  { %v1939_v54 = vpop.f32.mrf.mxu0  ;;  %v3595_v58 = vpop.f32.mrf.mxu1 }
 0x968   :  { %v3163_v25 = vmul.f32 -1.442695, %v1984_v24  ;;  %v1994_v44 = vadd.f32 %v1992_v41, %v1939_v54 }
 0x969   :  { %v1941_v27 = vpop.f32.mrf.mxu0  ;;  %v1981_v52 = vpop.f32.mrf.mxu1 }
 0x96a   :  { %4018 = vpow2.f32 %v3163_v25  ;;  %v3164_v45 = vmul.f32 -1.442695, %v1994_v44 }
 0x96b   :  { %v1942_v42 = vpop.f32.mrf.mxu0  ;;  %v3596_v43 = vpop.f32.mrf.mxu1 }
 0x96c   :  { %4020 = vpow2.f32 %v3164_v45 }
 0x977   :  { %v4019_v46 = vpop.eup %4018 }
 0x978   :  { %v1988_v56 = vadd.f32 1.0, %v4019_v46 }
 0x979   :  { %v4021_v48 = vpop.eup %4020 }
 0x97a   :  { %4022 = vrcp.f32 %v1988_v56  ;;  %v1998_v47 = vadd.f32 1.0, %v4021_v48 }
 0x97c   :  { %4024 = vrcp.f32 %v1998_v47 }
 0x987   :  { %v4023_v30 = vpop.eup %4022 }
 0x988   :  { %v2002_v9 = vmul.f32 %v4023_v30, %v2001_v60 }
 0x989   :  { %v4025_v11 = vpop.eup %4024 }
 0x98a   :  { %v2005_v10 = vadd.f32 %v2003_v8, %v2002_v9  ;;  %v2007_v12 = vsub.f32 1.0, %v4025_v11  ;;  %v2009_v15 = vmul.f32 %v4025_v11, %v4998_v6  ;;  %v2012_v6 = vld [vmem:[#allocation2 + $0x1] ss:$8 sm:$0x7] }
 0x98b   :  { %v2103_v57 = vrot.slane %v2012_v6, 1  ;;  %v2114_v45 = vrot.slane %v2012_v6, 2  ;;  %v2123_v11 = vld [vmem:[#allocation2 + $0x2] ss:$8 sm:$0x7] }
 0x98c   :  { %4026 = vtanh.f32 %v2005_v10 }
 0x999   :  { %v4027_v13 = vpop.eup %4026 }
 0x99a   :  { %v2008_v14 = vmul.f32 %v4027_v13, %v2007_v12 }
 0x99c   :  { %v5062_v16 = vadd.f32 %v2009_v15, %v2008_v14 }
 0x99e   :  { %2011 = vst [vmem:[#allocation3] sm:$0x1] %v5062_v16  ;;  %v2013_v26 = vpack.c.bf16 %v5062_v16, %v5062_v16 }
 0x9a0   :  { %2047 = vmatmul.mubr.bf16.vlgmr.msra.gmra.mxu0 %v2013_v26  ;;  %3614 = vmatmul.mubr.bf16.vlgmr.msra.gmra.mxu1 %v2013_v26 }
 0x9a1   :  { %2126 = vmatpush1.bf16.msra.mxu0 %v4926_v49  ;;  %3618 = vmatpush3.bf16.msra.mxu1 %v4928_v53 }
 0x9a2   :  { %2127 = vmatprep.subr.bf16.mxu0 %v4930_v51  ;;  %3619 = vmatprep.subr.bf16.mxu1 %v4357_v0 }
 0x9a3   :  { %2157 = vmatprep.mubr.bf16.mxu0 %v4358_v1  ;;  %3633 = vmatprep.mubr.msk.bf16.mxu1 %vm4359_vm0, %v4357_v0 }
 0x9a5   :  { %2128 = vmatpush1.bf16.msra.mxu0 %v4933_v28  ;;  %3620 = vmatpush3.bf16.msra.mxu1 %v4936_v29 }
 0x9a6   :  { %2129 = vmatprep.subr.bf16.mxu0 %v4939_v31  ;;  %3621 = vmatprep.subr.bf16.mxu1 %v4357_v0 }
 0x9a9   :  { %2130 = vmatpush1.bf16.msra.mxu0 %v4946_v32  ;;  %3622 = vmatpush3.bf16.msra.mxu1 %v4949_v33 }
 0x9aa   :  { %2131 = vmatprep.subr.bf16.mxu0 %v4952_v34  ;;  %3623 = vmatprep.subr.bf16.mxu1 %v4357_v0 }
 0x9ad   :  { %2132 = vmatpush1.bf16.msra.mxu0 %v4956_v35  ;;  %3624 = vmatpush3.bf16.msra.mxu1 %v4959_v36 }
 0x9ae   :  { %2133 = vmatprep.subr.bf16.mxu0 %v4962_v37  ;;  %3625 = vmatprep.subr.bf16.mxu1 %v4357_v0 }
 0x9b1   :  { %2134 = vmatpush1.bf16.msra.mxu0 %v4966_v38  ;;  %3626 = vmatpush3.bf16.msra.mxu1 %v4969_v39 }
 0x9b2   :  { %2135 = vmatprep.subr.bf16.mxu0 %v4972_v40  ;;  %3627 = vmatprep.subr.bf16.mxu1 %v4357_v0 }
 0x9b5   :  { %2136 = vmatpush1.bf16.msra.mxu0 %v4976_v61  ;;  %3628 = vmatpush3.bf16.msra.mxu1 %v4979_v62 }
 0x9b6   :  { %2137 = vmatprep.subr.bf16.mxu0 %v4982_v63  ;;  %3629 = vmatprep.subr.bf16.mxu1 %v4357_v0 }
 0x9b9   :  { %2138 = vmatpush1.bf16.msra.mxu0 %v4986_v2  ;;  %3630 = vmatpush3.bf16.msra.mxu1 %v4989_v3 }
 0x9ba   :  { %2139 = vmatprep.subr.bf16.mxu0 %v4992_v4  ;;  %3631 = vmatprep.subr.bf16.mxu1 %v4357_v0 }
 0x9bd   :  { %2140 = vmatpush1.bf16.msra.mxu0 %v4996_v5  ;;  %3632 = vmatpush3.bf16.msra.mxu1 %v5001_v7 }
 0x9be   :  { %2236 = vmatprep.subr.bf16.mxu0 %v4917_v50  ;;  %3637 = vmatprep.subr.bf16.mxu1 %v4357_v0 }
 0xa60   :  { %v2048_v17 = vpop.f32.mrf.mxu0  ;;  %v2089_v18 = vpop.f32.mrf.mxu1 }
 0xa61   :  { %v2095_v19 = vadd.f32 %v2048_v17, %v2012_v6  ;;  %v2112_v43 = vadd.f32 %v2089_v18, %v5058_v59  ;;  %v2214_v18 = vrot.slane %v2123_v11, 1 }
 0xa62   :  { %v2050_v20 = vpop.f32.mrf.mxu0  ;;  %v3615_v21 = vpop.f32.mrf.mxu1 }
 0xa63   :  { %v3165_v55 = vmul.f32 -1.442695, %v2095_v19  ;;  %v2105_v58 = vadd.f32 %v2103_v57, %v2050_v20 }
 0xa64   :  { %v2052_v22 = vpop.f32.mrf.mxu0  ;;  %v2092_v23 = vpop.f32.mrf.mxu1 }
 0xa65   :  { %4028 = vpow2.f32 %v3165_v55  ;;  %v3166_v25 = vmul.f32 -1.442695, %v2105_v58 }
 0xa66   :  { %v2053_v24 = vpop.f32.mrf.mxu0  ;;  %v3616_v54 = vpop.f32.mrf.mxu1 }
 0xa67   :  { %4030 = vpow2.f32 %v3166_v25  ;;  %v2225_v25 = vrot.slane %v2123_v11, 2 }
 0xa72   :  { %v4029_v27 = vpop.eup %4028 }
 0xa73   :  { %v2099_v52 = vadd.f32 1.0, %v4029_v27 }
 0xa74   :  { %v4031_v41 = vpop.eup %4030 }
 0xa75   :  { %4032 = vrcp.f32 %v2099_v52  ;;  %v2109_v42 = vadd.f32 1.0, %v4031_v41 }
 0xa77   :  { %4034 = vrcp.f32 %v2109_v42 }
 0xa82   :  { %v4033_v44 = vpop.eup %4032 }
 0xa83   :  { %v2113_v46 = vmul.f32 %v4033_v44, %v2112_v43 }
 0xa84   :  { %v4035_v48 = vpop.eup %4034 }
 0xa85   :  { %v2116_v56 = vadd.f32 %v2114_v45, %v2113_v46  ;;  %v2118_v47 = vsub.f32 1.0, %v4035_v48  ;;  %v2120_v8 = vmul.f32 %v4035_v48, %v5062_v16  ;;  %v2234_v48 = vld [vmem:[#allocation2 + $0x3] ss:$8 sm:$0x7] }
 0xa87   :  { %4036 = vtanh.f32 %v2116_v56 }
 0xa94   :  { %v4037_v60 = vpop.eup %4036 }
 0xa95   :  { %v2119_v30 = vmul.f32 %v4037_v60, %v2118_v47 }
 0xa97   :  { %v5104_v9 = vadd.f32 %v2120_v8, %v2119_v30 }
 0xa99   :  { %2122 = vst [vmem:[#allocation3 + $0x1] sm:$0x1] %v5104_v9  ;;  %v2124_v10 = vpack.c.bf16 %v5104_v9, %v5104_v9 }
 0xa9b   :  { %2158 = vmatmul.mubr.bf16.vlgmr.msra.gmra.mxu0 %v2124_v10  ;;  %3634 = vmatmul.mubr.bf16.vlgmr.msra.gmra.mxu1 %v2124_v10 }
 0xa9c   :  { %2237 = vmatpush1.bf16.msra.mxu0 %v4926_v49  ;;  %3638 = vmatpush3.bf16.msra.mxu1 %v4928_v53 }
 0xa9d   :  { %2238 = vmatprep.subr.bf16.mxu0 %v4930_v51  ;;  %3639 = vmatprep.subr.bf16.mxu1 %v4357_v0 }
 0xa9e   :  { %2268 = vmatprep.mubr.bf16.mxu0 %v4358_v1  ;;  %3653 = vmatprep.mubr.msk.bf16.mxu1 %vm4359_vm0, %v4357_v0 }
 0xaa0   :  { %2239 = vmatpush1.bf16.msra.mxu0 %v4933_v28  ;;  %3640 = vmatpush3.bf16.msra.mxu1 %v4936_v29 }
 0xaa1   :  { %2240 = vmatprep.subr.bf16.mxu0 %v4939_v31  ;;  %3641 = vmatprep.subr.bf16.mxu1 %v4357_v0 }
 0xaa4   :  { %2241 = vmatpush1.bf16.msra.mxu0 %v4946_v32  ;;  %3642 = vmatpush3.bf16.msra.mxu1 %v4949_v33 }
 0xaa5   :  { %2242 = vmatprep.subr.bf16.mxu0 %v4952_v34  ;;  %3643 = vmatprep.subr.bf16.mxu1 %v4357_v0 }
 0xaa8   :  { %2243 = vmatpush1.bf16.msra.mxu0 %v4956_v35  ;;  %3644 = vmatpush3.bf16.msra.mxu1 %v4959_v36 }
 0xaa9   :  { %2244 = vmatprep.subr.bf16.mxu0 %v4962_v37  ;;  %3645 = vmatprep.subr.bf16.mxu1 %v4357_v0 }
 0xaac   :  { %2245 = vmatpush1.bf16.msra.mxu0 %v4966_v38  ;;  %3646 = vmatpush3.bf16.msra.mxu1 %v4969_v39 }
 0xaad   :  { %2246 = vmatprep.subr.bf16.mxu0 %v4972_v40  ;;  %3647 = vmatprep.subr.bf16.mxu1 %v4357_v0 }
 0xab0   :  { %2247 = vmatpush1.bf16.msra.mxu0 %v4976_v61  ;;  %3648 = vmatpush3.bf16.msra.mxu1 %v4979_v62 }
 0xab1   :  { %2248 = vmatprep.subr.bf16.mxu0 %v4982_v63  ;;  %3649 = vmatprep.subr.bf16.mxu1 %v4357_v0 }
 0xab4   :  { %2249 = vmatpush1.bf16.msra.mxu0 %v4986_v2  ;;  %3650 = vmatpush3.bf16.msra.mxu1 %v4989_v3 }
 0xab5   :  { %2250 = vmatprep.subr.bf16.mxu0 %v4992_v4  ;;  %3651 = vmatprep.subr.bf16.mxu1 %v4357_v0 }
 0xab8   :  { %2251 = vmatpush1.bf16.msra.mxu0 %v4996_v5  ;;  %3652 = vmatpush3.bf16.msra.mxu1 %v5001_v7 }
 0xab9   :  { %2347 = vmatprep.subr.bf16.mxu0 %v4917_v50  ;;  %3657 = vmatprep.subr.bf16.mxu1 %v4357_v0 }
 0xb5b   :  { %v2159_v12 = vpop.f32.mrf.mxu0  ;;  %v2200_v13 = vpop.f32.mrf.mxu1 }
 0xb5c   :  { %v2206_v14 = vadd.f32 %v2159_v12, %v2123_v11  ;;  %v2223_v54 = vadd.f32 %v2200_v13, %v5058_v59  ;;  %v2325_v13 = vrot.slane %v2234_v48, 1 }
 0xb5d   :  { %v2161_v15 = vpop.f32.mrf.mxu0  ;;  %v3635_v16 = vpop.f32.mrf.mxu1 }
 0xb5e   :  { %v3167_v26 = vmul.f32 -1.442695, %v2206_v14  ;;  %v2216_v21 = vadd.f32 %v2214_v18, %v2161_v15 }
 0xb5f   :  { %v2163_v6 = vpop.f32.mrf.mxu0  ;;  %v2203_v17 = vpop.f32.mrf.mxu1 }
 0xb60   :  { %4038 = vpow2.f32 %v3167_v26  ;;  %v3168_v55 = vmul.f32 -1.442695, %v2216_v21 }
 0xb61   :  { %v2164_v19 = vpop.f32.mrf.mxu0  ;;  %v3636_v20 = vpop.f32.mrf.mxu1 }
 0xb62   :  { %4040 = vpow2.f32 %v3168_v55  ;;  %v2336_v55 = vrot.slane %v2234_v48, 2 }
 0xb6d   :  { %v4039_v22 = vpop.eup %4038 }
 0xb6e   :  { %v2210_v23 = vadd.f32 1.0, %v4039_v22 }
 0xb6f   :  { %v4041_v57 = vpop.eup %4040 }
 0xb70   :  { %4042 = vrcp.f32 %v2210_v23  ;;  %v2220_v24 = vadd.f32 1.0, %v4041_v57 }
 0xb72   :  { %4044 = vrcp.f32 %v2220_v24 }
 0xb7d   :  { %v4043_v58 = vpop.eup %4042 }
 0xb7e   :  { %v2224_v27 = vmul.f32 %v4043_v58, %v2223_v54 }
 0xb7f   :  { %v4045_v41 = vpop.eup %4044 }
 0xb80   :  { %v2227_v52 = vadd.f32 %v2225_v25, %v2224_v27  ;;  %v2229_v42 = vsub.f32 1.0, %v4045_v41  ;;  %v2231_v45 = vmul.f32 %v4045_v41, %v5104_v9  ;;  %v2345_v41 = vld [vmem:[#allocation2 + $0x4] ss:$8 sm:$0x7] }
 0xb82   :  { %4046 = vtanh.f32 %v2227_v52 }
 0xb8f   :  { %v4047_v43 = vpop.eup %4046 }
 0xb90   :  { %v2230_v44 = vmul.f32 %v4047_v43, %v2229_v42 }
 0xb92   :  { %v5146_v46 = vadd.f32 %v2231_v45, %v2230_v44 }
 0xb94   :  { %2233 = vst [vmem:[#allocation3 + $0x2] sm:$0x1] %v5146_v46  ;;  %v2235_v56 = vpack.c.bf16 %v5146_v46, %v5146_v46 }
 0xb96   :  { %2269 = vmatmul.mubr.bf16.vlgmr.msra.gmra.mxu0 %v2235_v56  ;;  %3654 = vmatmul.mubr.bf16.vlgmr.msra.gmra.mxu1 %v2235_v56 }
 0xb97   :  { %2348 = vmatpush1.bf16.msra.mxu0 %v4926_v49  ;;  %3658 = vmatpush3.bf16.msra.mxu1 %v4928_v53 }
 0xb98   :  { %2349 = vmatprep.subr.bf16.mxu0 %v4930_v51  ;;  %3659 = vmatprep.subr.bf16.mxu1 %v4357_v0 }
 0xb99   :  { %2379 = vmatprep.mubr.bf16.mxu0 %v4358_v1  ;;  %3673 = vmatprep.mubr.msk.bf16.mxu1 %vm4359_vm0, %v4357_v0 }
 0xb9b   :  { %2350 = vmatpush1.bf16.msra.mxu0 %v4933_v28  ;;  %3660 = vmatpush3.bf16.msra.mxu1 %v4936_v29 }
 0xb9c   :  { %2351 = vmatprep.subr.bf16.mxu0 %v4939_v31  ;;  %3661 = vmatprep.subr.bf16.mxu1 %v4357_v0 }
 0xb9f   :  { %2352 = vmatpush1.bf16.msra.mxu0 %v4946_v32  ;;  %3662 = vmatpush3.bf16.msra.mxu1 %v4949_v33 }
 0xba0   :  { %2353 = vmatprep.subr.bf16.mxu0 %v4952_v34  ;;  %3663 = vmatprep.subr.bf16.mxu1 %v4357_v0 }
 0xba3   :  { %2354 = vmatpush1.bf16.msra.mxu0 %v4956_v35  ;;  %3664 = vmatpush3.bf16.msra.mxu1 %v4959_v36 }
 0xba4   :  { %2355 = vmatprep.subr.bf16.mxu0 %v4962_v37  ;;  %3665 = vmatprep.subr.bf16.mxu1 %v4357_v0 }
 0xba7   :  { %2356 = vmatpush1.bf16.msra.mxu0 %v4966_v38  ;;  %3666 = vmatpush3.bf16.msra.mxu1 %v4969_v39 }
 0xba8   :  { %2357 = vmatprep.subr.bf16.mxu0 %v4972_v40  ;;  %3667 = vmatprep.subr.bf16.mxu1 %v4357_v0 }
 0xbab   :  { %2358 = vmatpush1.bf16.msra.mxu0 %v4976_v61  ;;  %3668 = vmatpush3.bf16.msra.mxu1 %v4979_v62 }
 0xbac   :  { %2359 = vmatprep.subr.bf16.mxu0 %v4982_v63  ;;  %3669 = vmatprep.subr.bf16.mxu1 %v4357_v0 }
 0xbaf   :  { %2360 = vmatpush1.bf16.msra.mxu0 %v4986_v2  ;;  %3670 = vmatpush3.bf16.msra.mxu1 %v4989_v3 }
 0xbb0   :  { %2361 = vmatprep.subr.bf16.mxu0 %v4992_v4  ;;  %3671 = vmatprep.subr.bf16.mxu1 %v4357_v0 }
 0xbb3   :  { %2362 = vmatpush1.bf16.msra.mxu0 %v4996_v5  ;;  %3672 = vmatpush3.bf16.msra.mxu1 %v5001_v7 }
 0xbb4   :  { %2458 = vmatprep.subr.bf16.mxu0 %v4917_v50  ;;  %3677 = vmatprep.subr.bf16.mxu1 %v4357_v0 }
 0xc56   :  { %v2270_v47 = vpop.f32.mrf.mxu0  ;;  %v2311_v60 = vpop.f32.mrf.mxu1 }
 0xc57   :  { %v2317_v30 = vadd.f32 %v2270_v47, %v2234_v48  ;;  %v2334_v20 = vadd.f32 %v2311_v60, %v5058_v59  ;;  %v2436_v60 = vrot.slane %v2345_v41, 1 }
 0xc58   :  { %v2272_v8 = vpop.f32.mrf.mxu0  ;;  %v3655_v9 = vpop.f32.mrf.mxu1 }
 0xc59   :  { %v3169_v10 = vmul.f32 -1.442695, %v2317_v30  ;;  %v2327_v16 = vadd.f32 %v2325_v13, %v2272_v8 }
 0xc5a   :  { %v2274_v11 = vpop.f32.mrf.mxu0  ;;  %v2314_v12 = vpop.f32.mrf.mxu1 }
 0xc5b   :  { %4048 = vpow2.f32 %v3169_v10  ;;  %v3170_v26 = vmul.f32 -1.442695, %v2327_v16  ;;  %v2447_v16 = vrot.slane %v2345_v41, 2 }
 0xc5c   :  { %v2275_v14 = vpop.f32.mrf.mxu0  ;;  %v3656_v15 = vpop.f32.mrf.mxu1 }
 0xc5d   :  { %4050 = vpow2.f32 %v3170_v26 }
 0xc68   :  { %v4049_v6 = vpop.eup %4048 }
 0xc69   :  { %v2321_v17 = vadd.f32 1.0, %v4049_v6 }
 0xc6a   :  { %v4051_v18 = vpop.eup %4050 }
 0xc6b   :  { %4052 = vrcp.f32 %v2321_v17  ;;  %v2331_v19 = vadd.f32 1.0, %v4051_v18 }
 0xc6d   :  { %4054 = vrcp.f32 %v2331_v19 }
 0xc78   :  { %v4053_v21 = vpop.eup %4052 }
 0xc79   :  { %v2335_v22 = vmul.f32 %v4053_v21, %v2334_v20 }
 0xc7a   :  { %v4055_v57 = vpop.eup %4054 }
 0xc7b   :  { %v2338_v23 = vadd.f32 %v2336_v55, %v2335_v22  ;;  %v2340_v24 = vsub.f32 1.0, %v4055_v57  ;;  %v2342_v25 = vmul.f32 %v4055_v57, %v5146_v46 }
 0xc7d   :  { %4056 = vtanh.f32 %v2338_v23 }
 0xc8a   :  { %v4057_v54 = vpop.eup %4056 }
 0xc8b   :  { %v2341_v58 = vmul.f32 %v4057_v54, %v2340_v24 }
 0xc8d   :  { %v5188_v27 = vadd.f32 %v2342_v25, %v2341_v58 }
 0xc8f   :  { %2344 = vst [vmem:[#allocation3 + $0x3] sm:$0x1] %v5188_v27  ;;  %v2346_v52 = vpack.c.bf16 %v5188_v27, %v5188_v27 }
 0xc91   :  { %2380 = vmatmul.mubr.bf16.vlgmr.msra.gmra.mxu0 %v2346_v52  ;;  %3674 = vmatmul.mubr.bf16.vlgmr.msra.gmra.mxu1 %v2346_v52 }
 0xc92   :  { %2459 = vmatpush1.bf16.msra.mxu0 %v4926_v49  ;;  %3678 = vmatpush3.bf16.msra.mxu1 %v4928_v53 }
 0xc93   :  { %2460 = vmatprep.subr.bf16.mxu0 %v4930_v51  ;;  %3679 = vmatprep.subr.bf16.mxu1 %v4357_v0 }
 0xc94   :  { %2490 = vmatprep.mubr.bf16.mxu0 %v4358_v1  ;;  %3693 = vmatprep.mubr.msk.bf16.mxu1 %vm4359_vm0, %v4357_v0 }
 0xc96   :  { %2461 = vmatpush1.bf16.msra.mxu0 %v4933_v28  ;;  %3680 = vmatpush3.bf16.msra.mxu1 %v4936_v29 }
 0xc97   :  { %2462 = vmatprep.subr.bf16.mxu0 %v4939_v31  ;;  %3681 = vmatprep.subr.bf16.mxu1 %v4357_v0 }
 0xc9a   :  { %2463 = vmatpush1.bf16.msra.mxu0 %v4946_v32  ;;  %3682 = vmatpush3.bf16.msra.mxu1 %v4949_v33 }
 0xc9b   :  { %2464 = vmatprep.subr.bf16.mxu0 %v4952_v34  ;;  %3683 = vmatprep.subr.bf16.mxu1 %v4357_v0 }
 0xc9e   :  { %2465 = vmatpush1.bf16.msra.mxu0 %v4956_v35  ;;  %3684 = vmatpush3.bf16.msra.mxu1 %v4959_v36 }
 0xc9f   :  { %2466 = vmatprep.subr.bf16.mxu0 %v4962_v37  ;;  %3685 = vmatprep.subr.bf16.mxu1 %v4357_v0 }
 0xca2   :  { %2467 = vmatpush1.bf16.msra.mxu0 %v4966_v38  ;;  %3686 = vmatpush3.bf16.msra.mxu1 %v4969_v39 }
 0xca3   :  { %2468 = vmatprep.subr.bf16.mxu0 %v4972_v40  ;;  %3687 = vmatprep.subr.bf16.mxu1 %v4357_v0 }
 0xca6   :  { %2469 = vmatpush1.bf16.msra.mxu0 %v4976_v61  ;;  %3688 = vmatpush3.bf16.msra.mxu1 %v4979_v62 }
 0xca7   :  { %2470 = vmatprep.subr.bf16.mxu0 %v4982_v63  ;;  %3689 = vmatprep.subr.bf16.mxu1 %v4357_v0 }
 0xcaa   :  { %2471 = vmatpush1.bf16.msra.mxu0 %v4986_v2  ;;  %3690 = vmatpush3.bf16.msra.mxu1 %v4989_v3 }
 0xcab   :  { %2472 = vmatprep.subr.bf16.mxu0 %v4992_v4  ;;  %3691 = vmatprep.subr.bf16.mxu1 %v4357_v0 }
 0xcae   :  { %2473 = vmatpush1.bf16.msra.mxu0 %v4996_v5  ;;  %3692 = vmatpush3.bf16.msra.mxu1 %v5001_v7 }
 0xcaf   :  { %2569 = vmatprep.subr.bf16.mxu0 %v4917_v50  ;;  %3697 = vmatprep.subr.bf16.mxu1 %v4357_v0 }
 0xd51   :  { %v2381_v42 = vpop.f32.mrf.mxu0  ;;  %v2422_v43 = vpop.f32.mrf.mxu1 }
 0xd52   :  { %v2428_v44 = vadd.f32 %v2381_v42, %v2345_v41  ;;  %v2445_v14 = vadd.f32 %v2422_v43, %v5058_v59 }
 0xd53   :  { %v2383_v45 = vpop.f32.mrf.mxu0  ;;  %v3675_v46 = vpop.f32.mrf.mxu1 }
 0xd54   :  { %v3171_v56 = vmul.f32 -1.442695, %v2428_v44  ;;  %v2438_v9 = vadd.f32 %v2436_v60, %v2383_v45 }
 0xd55   :  { %v2385_v48 = vpop.f32.mrf.mxu0  ;;  %v2425_v47 = vpop.f32.mrf.mxu1 }
 0xd56   :  { %4058 = vpow2.f32 %v3171_v56  ;;  %v3172_v10 = vmul.f32 -1.442695, %v2438_v9 }
 0xd57   :  { %v2386_v30 = vpop.f32.mrf.mxu0  ;;  %v3676_v8 = vpop.f32.mrf.mxu1 }
 0xd58   :  { %4060 = vpow2.f32 %v3172_v10 }
 0xd63   :  { %v4059_v11 = vpop.eup %4058 }
 0xd64   :  { %v2432_v50 = vadd.f32 1.0, %v4059_v11 }
 0xd65   :  { %v4061_v12 = vpop.eup %4060 }
 0xd66   :  { %4062 = vrcp.f32 %v2432_v50  ;;  %v2442_v13 = vadd.f32 1.0, %v4061_v12 }
 0xd68   :  { %4064 = vrcp.f32 %v2442_v13  ;;  %v4124_v13 = vld [vmem:[#allocation13 + $0xa8] ss:$12 sps:$4 sm:$0xff]  }
 0xd73   :  { %v4063_v15 = vpop.eup %4062 }
 0xd74   :  { %v2446_v26 = vmul.f32 %v4063_v15, %v2445_v14  ;;  %v4125_v14 = vld [vmem:[#allocation13 + $0xb0] ss:$12 sps:$4 sm:$0xff]   ;;  %v4126_v15 = vld [vmem:[#allocation13 + $0x94] ss:$12 sps:$4 sm:$0xff]  }
 0xd75   :  { %v4065_v17 = vpop.eup %4064 }
 0xd76   :  { %v2449_v6 = vadd.f32 %v2447_v16, %v2446_v26  ;;  %v2451_v18 = vsub.f32 1.0, %v4065_v17  ;;  %v2453_v21 = vmul.f32 %v4065_v17, %v5188_v27  ;;  %v4127_v16 = vld [vmem:[#allocation13 + $0x90] ss:$12 sps:$4 sm:$0xff]   ;;  %v4128_v26 = vld [vmem:[#allocation13 + $0x98] ss:$12 sps:$4 sm:$0xff]  }
 0xd78   :  { %4066 = vtanh.f32 %v2449_v6  ;;  %v4129_v6 = vld [vmem:[#allocation13 + $0x7c] ss:$12 sps:$4 sm:$0xff]  }
 0xd85   :  { %v4067_v19 = vpop.eup %4066 }
 0xd86   :  { %v2452_v20 = vmul.f32 %v4067_v19, %v2451_v18 }
 0xd88   :  { %v5230_v55 = vadd.f32 %v2453_v21, %v2452_v20 }
 0xd8a   :  { %2455 = vst [vmem:[#allocation3 + $0x4] sm:$0x1] %v5230_v55  ;;  %v2457_v22 = vpack.c.bf16 %v5230_v55, %v5230_v55 }
 0xd8c   :  { %2491 = vmatmul.mubr.bf16.vlgmr.msra.gmra.mxu0 %v2457_v22  ;;  %3694 = vmatmul.mubr.bf16.vlgmr.msra.gmra.mxu1 %v2457_v22 }
 0xd8d   :  { %2570 = vmatpush1.bf16.msra.mxu0 %v4926_v49  ;;  %3698 = vmatpush3.bf16.msra.mxu1 %v4928_v53  ;;  %v4123_v49 = vld [vmem:[#allocation13 + $0xac] ss:$12 sps:$4 sm:$0xff]  }
 0xd8e   :  { %2571 = vmatprep.subr.bf16.mxu0 %v4930_v51  ;;  %3699 = vmatprep.subr.bf16.mxu1 %v4357_v0  ;;  %v2456_v53 = vld [vmem:[#allocation2 + $0x5] ss:$8 sm:$0x7] }
 0xd8f   :  { %2601 = vmatprep.mubr.bf16.mxu0 %v4358_v1  ;;  %3713 = vmatprep.mubr.msk.bf16.mxu1 %vm4359_vm0, %v4357_v0  ;;  %v2547_v58 = vrot.slane %v2456_v53, 1  ;;  %v2558_v48 = vrot.slane %v2456_v53, 2 }
 0xd91   :  { %2572 = vmatpush1.bf16.msra.mxu0 %v4933_v28  ;;  %3700 = vmatpush3.bf16.msra.mxu1 %v4936_v29 }
 0xd92   :  { %2573 = vmatprep.subr.bf16.mxu0 %v4939_v31  ;;  %3701 = vmatprep.subr.bf16.mxu1 %v4357_v0 }
 0xd95   :  { %2574 = vmatpush1.bf16.msra.mxu0 %v4946_v32  ;;  %3702 = vmatpush3.bf16.msra.mxu1 %v4949_v33 }
 0xd96   :  { %2575 = vmatprep.subr.bf16.mxu0 %v4952_v34  ;;  %3703 = vmatprep.subr.bf16.mxu1 %v4357_v0 }
 0xd99   :  { %2576 = vmatpush1.bf16.msra.mxu0 %v4956_v35  ;;  %3704 = vmatpush3.bf16.msra.mxu1 %v4959_v36 }
 0xd9a   :  { %2577 = vmatprep.subr.bf16.mxu0 %v4962_v37  ;;  %3705 = vmatprep.subr.bf16.mxu1 %v4357_v0 }
 0xd9d   :  { %2578 = vmatpush1.bf16.msra.mxu0 %v4966_v38  ;;  %3706 = vmatpush3.bf16.msra.mxu1 %v4969_v39 }
 0xd9e   :  { %2579 = vmatprep.subr.bf16.mxu0 %v4972_v40  ;;  %3707 = vmatprep.subr.bf16.mxu1 %v4357_v0 }
 0xda1   :  { %2580 = vmatpush1.bf16.msra.mxu0 %v4976_v61  ;;  %3708 = vmatpush3.bf16.msra.mxu1 %v4979_v62 }
 0xda2   :  { %2581 = vmatprep.subr.bf16.mxu0 %v4982_v63  ;;  %3709 = vmatprep.subr.bf16.mxu1 %v4357_v0 }
 0xda5   :  { %2582 = vmatpush1.bf16.msra.mxu0 %v4986_v2  ;;  %3710 = vmatpush3.bf16.msra.mxu1 %v4989_v3 }
 0xda6   :  { %2583 = vmatprep.subr.bf16.mxu0 %v4992_v4  ;;  %3711 = vmatprep.subr.bf16.mxu1 %v4357_v0 }
 0xda9   :  { %2584 = vmatpush1.bf16.msra.mxu0 %v4996_v5  ;;  %3712 = vmatpush3.bf16.msra.mxu1 %v5001_v7 }
 0xdaa   :  { %2680 = vmatprep.subr.bf16.mxu0 %v4123_v49  ;;  %3717 = vmatprep.subr.bf16.mxu1 %v4357_v0 }
 0xe4c   :  { %v2492_v51 = vpop.f32.mrf.mxu0  ;;  %v2533_v28 = vpop.f32.mrf.mxu1 }
 0xe4d   :  { %v2539_v29 = vadd.f32 %v2492_v51, %v2456_v53  ;;  %v2556_v46 = vadd.f32 %v2533_v28, %v5058_v59 }
 0xe4e   :  { %v2494_v31 = vpop.f32.mrf.mxu0  ;;  %v3695_v23 = vpop.f32.mrf.mxu1 }
 0xe4f   :  { %v3173_v57 = vmul.f32 -1.442695, %v2539_v29  ;;  %v2549_v52 = vadd.f32 %v2547_v58, %v2494_v31  ;;  %v3923_v31 = vld [vmem:[#allocation15 + $0x30] sm:$0xff]   ;;  %v3924_v23 = vld [vmem:[#allocation15 + $0x28] sm:$0xff]  }
 0xe50   :  { %v2496_v24 = vpop.f32.mrf.mxu0  ;;  %v2536_v54 = vpop.f32.mrf.mxu1  ;;  %v3928_v58 = vld [vmem:[#allocation15 + $0x8] sm:$0xff]  }
 0xe51   :  { %4068 = vpow2.f32 %v3173_v57  ;;  %v3174_v41 = vmul.f32 -1.442695, %v2549_v52  ;;  %v3925_v57 = vld [vmem:[#allocation15 + $0x20] sm:$0xff]   ;;  %v3926_v24 = vld [vmem:[#allocation15 + $0x18] sm:$0xff]   ;;  %v3927_v54 = vld [vmem:[#allocation15 + $0x10] sm:$0xff]  }
 0xe52   :  { %v2497_v25 = vpop.f32.mrf.mxu0  ;;  %v3696_v27 = vpop.f32.mrf.mxu1  ;;  %v3931_v52 = vld [vmem:[#allocation16 + $0x30] sm:$0xff]  }
 0xe53   :  { %4070 = vpow2.f32 %v3174_v41  ;;  %v3929_v25 = vld [vmem:[#allocation15] sm:$0xff]   ;;  %v3930_v27 = vld [vmem:[#allocation16 + $0x38] sm:$0xff]   ;;  %v3932_v41 = vld [vmem:[#allocation16 + $0x28] sm:$0xff]  }
 0xe5e   :  { %v4069_v42 = vpop.eup %4068 }
 0xe5f   :  { %v2543_v43 = vadd.f32 1.0, %v4069_v42  ;;  %v3933_v42 = vld [vmem:[#allocation16 + $0x20] sm:$0xff]  }
 0xe60   :  { %v4071_v44 = vpop.eup %4070 }
 0xe61   :  { %4072 = vrcp.f32 %v2543_v43  ;;  %v2553_v45 = vadd.f32 1.0, %v4071_v44  ;;  %v3934_v43 = vld [vmem:[#allocation16 + $0x18] sm:$0xff]   ;;  %v3935_v44 = vld [vmem:[#allocation16 + $0x10] sm:$0xff]  }
 0xe63   :  { %4074 = vrcp.f32 %v2553_v45  ;;  %v2678_v45 = vld [vmem:[#allocation2 + $0x7] ss:$8 sm:$0x7] }
 0xe6e   :  { %v4073_v56 = vpop.eup %4072 }
 0xe6f   :  { %v2557_v47 = vmul.f32 %v4073_v56, %v2556_v46 }
 0xe70   :  { %v4075_v30 = vpop.eup %4074 }
 0xe71   :  { %v2560_v60 = vadd.f32 %v2558_v48, %v2557_v47  ;;  %v2562_v8 = vsub.f32 1.0, %v4075_v30  ;;  %v2564_v11 = vmul.f32 %v4075_v30, %v5230_v55 }
 0xe73   :  { %4076 = vtanh.f32 %v2560_v60 }
 0xe80   :  { %v4077_v9 = vpop.eup %4076 }
 0xe81   :  { %v2563_v10 = vmul.f32 %v4077_v9, %v2562_v8 }
 0xe83   :  { %v5271_v50 = vadd.f32 %v2564_v11, %v2563_v10  ;;  %v2769_v10 = vrot.slane %v2678_v45, 1 }
 0xe85   :  { %2566 = vst [vmem:[#allocation3 + $0x5] sm:$0x1] %v5271_v50  ;;  %v2568_v12 = vpack.c.bf16 %v5271_v50, %v5271_v50 }
 0xe87   :  { %2602 = vmatmul.mubr.bf16.vlgmr.msra.gmra.mxu0 %v2568_v12  ;;  %3714 = vmatmul.mubr.bf16.vlgmr.msra.gmra.mxu1 %v2568_v12 }
 0xe88   :  { %2681 = vmatpush1.bf16.msra.mxu0 %v4124_v13  ;;  %3718 = vmatpush3.bf16.msra.mxu1 %v4125_v14 }
 0xe89   :  { %2682 = vmatprep.subr.bf16.mxu0 %v4126_v15  ;;  %3719 = vmatprep.subr.bf16.mxu1 %v4357_v0 }
 0xe8a   :  { %2712 = vmatprep.mubr.bf16.mxu0 %v4358_v1  ;;  %3733 = vmatprep.mubr.msk.bf16.mxu1 %vm4359_vm0, %v4357_v0  ;;  %v2567_v1 = vld [vmem:[#allocation2 + $0x6] ss:$8 sm:$0x7] }
 0xe8b   :  { %v2669_v19 = vrot.slane %v2567_v1, 2 }
 0xe8c   :  { %2683 = vmatpush1.bf16.msra.mxu0 %v4127_v16  ;;  %3720 = vmatpush3.bf16.msra.mxu1 %v4128_v26 }
 0xe8d   :  { %2684 = vmatprep.subr.bf16.mxu0 %v4129_v6  ;;  %3721 = vmatprep.subr.bf16.mxu1 %v4357_v0  ;;  %v4130_v6 = vld [vmem:[%s5355_s9] sm:$0x1] }
 0xe90   :  { %2685 = vmatpush1.bf16.msra.mxu0 %v4946_v32  ;;  %3722 = vmatpush3.bf16.msra.mxu1 %v4949_v33 }
 0xe91   :  { %2686 = vmatprep.subr.bf16.mxu0 %v4952_v34  ;;  %3723 = vmatprep.subr.bf16.mxu1 %v4357_v0 }
 0xe94   :  { %2687 = vmatpush1.bf16.msra.mxu0 %v4956_v35  ;;  %3724 = vmatpush3.bf16.msra.mxu1 %v4959_v36 }
 0xe95   :  { %2688 = vmatprep.subr.bf16.mxu0 %v4962_v37  ;;  %3725 = vmatprep.subr.bf16.mxu1 %v4357_v0 }
 0xe98   :  { %2689 = vmatpush1.bf16.msra.mxu0 %v4966_v38  ;;  %3726 = vmatpush3.bf16.msra.mxu1 %v4969_v39 }
 0xe99   :  { %2690 = vmatprep.subr.bf16.mxu0 %v4972_v40  ;;  %3727 = vmatprep.subr.bf16.mxu1 %v4357_v0  ;;  %v2658_v40 = vrot.slane %v2567_v1, 1 }
 0xe9c   :  { %2691 = vmatpush1.bf16.msra.mxu0 %v4976_v61  ;;  %3728 = vmatpush3.bf16.msra.mxu1 %v4979_v62 }
 0xe9d   :  { %2692 = vmatprep.subr.bf16.mxu0 %v4982_v63  ;;  %3729 = vmatprep.subr.bf16.mxu1 %v4357_v0 }
 0xea0   :  { %2693 = vmatpush1.bf16.msra.mxu0 %v4986_v2  ;;  %3730 = vmatpush3.bf16.msra.mxu1 %v4989_v3 }
 0xea1   :  { %2694 = vmatprep.subr.bf16.mxu0 %v4992_v4  ;;  %3731 = vmatprep.subr.bf16.mxu1 %v4357_v0 }
 0xea4   :  { %2695 = vmatpush1.bf16.msra.mxu0 %v4996_v5  ;;  %3732 = vmatpush3.bf16.msra.mxu1 %v5001_v7 }
 0xea5   :  { %3737 = vmatprep.subr.bf16.mxu0 %v4357_v0  ;;  %3757 = vmatprep.subr.bf16.mxu1 %v4357_v0 }
 0xf47   :  { %v2603_v32 = vpop.f32.mrf.mxu0  ;;  %v2644_v33 = vpop.f32.mrf.mxu1 }
 0xf48   :  { %v2650_v34 = vadd.f32 %v2603_v32, %v2567_v1  ;;  %v2667_v17 = vadd.f32 %v2644_v33, %v5058_v59  ;;  %v3922_v59 = vld [vmem:[#allocation15 + $0x38] sm:$0xff]   ;;  %v2780_v33 = vrot.slane %v2678_v45, 2 }
 0xf49   :  { %v2605_v35 = vpop.f32.mrf.mxu0  ;;  %v3715_v36 = vpop.f32.mrf.mxu1 }
 0xf4a   :  { %v3175_v37 = vmul.f32 -1.442695, %v2650_v34  ;;  %v2660_v63 = vadd.f32 %v2658_v40, %v2605_v35 }
 0xf4b   :  { %v2607_v38 = vpop.f32.mrf.mxu0  ;;  %v2647_v39 = vpop.f32.mrf.mxu1 }
 0xf4c   :  { %4078 = vpow2.f32 %v3175_v37  ;;  %v3176_v2 = vmul.f32 -1.442695, %v2660_v63 }
 0xf4d   :  { %v2608_v61 = vpop.f32.mrf.mxu0  ;;  %v3716_v62 = vpop.f32.mrf.mxu1 }
 0xf4e   :  { %4080 = vpow2.f32 %v3176_v2  ;;  %v3936_v2 = vld [vmem:[#allocation16 + $0x8] sm:$0xff]  }
 0xf59   :  { %v4079_v3 = vpop.eup %4078 }
 0xf5a   :  { %v2654_v4 = vadd.f32 1.0, %v4079_v3  ;;  %v3937_v3 = vld [vmem:[#allocation16] sm:$0xff]  }
 0xf5b   :  { %v4081_v5 = vpop.eup %4080 }
 0xf5c   :  { %4082 = vrcp.f32 %v2654_v4  ;;  %v2664_v7 = vadd.f32 1.0, %v4081_v5  ;;  %v3179_v4 = vld [vmem:[%s5357_s11] ss:$0 sm:$0xff] }
 0xf5e   :  { %4084 = vrcp.f32 %v2664_v7 }
 0xf69   :  { %v4083_v18 = vpop.eup %4082 }
 0xf6a   :  { %v2668_v20 = vmul.f32 %v4083_v18, %v2667_v17 }
 0xf6b   :  { %v4085_v55 = vpop.eup %4084 }
 0xf6c   :  { %v2671_v21 = vadd.f32 %v2669_v19, %v2668_v20  ;;  %v2673_v22 = vsub.f32 1.0, %v4085_v55  ;;  %v2675_v51 = vmul.f32 %v4085_v55, %v5271_v50 }
 0xf6e   :  { %4086 = vtanh.f32 %v2671_v21 }
 0xf7b   :  { %v4087_v49 = vpop.eup %4086 }
 0xf7c   :  { %v2674_v53 = vmul.f32 %v4087_v49, %v2673_v22 }
 0xf7e   :  { %v5307_v28 = vadd.f32 %v2675_v51, %v2674_v53 }
 0xf80   :  { %2677 = vst [vmem:[#allocation3 + $0x6] sm:$0x1] %v5307_v28  ;;  %v2679_v29 = vpack.c.bf16 %v5307_v28, %v5307_v28 }
 0xf82   :  { %2713 = vmatmul.mubr.bf16.vlgmr.msra.gmra.mxu0 %v2679_v29  ;;  %3734 = vmatmul.mubr.bf16.vlgmr.msra.gmra.mxu1 %v2679_v29 }
 0xf83   :  { %3753 = vmatprep.mubr.msk.bf16.mxu0 %vm4359_vm0, %v4357_v0  ;;  %3773 = vmatprep.mubr.msk.bf16.mxu1 %vm4359_vm0, %v4357_v0 }
 0xf84   :  { %3738 = vmatpush3.bf16.msra.mxu0 %v3922_v59  ;;  %3758 = vmatpush3.bf16.msra.mxu1 %v3930_v27 }
 0xf85   :  { %3739 = vmatprep.subr.bf16.mxu0 %v4357_v0  ;;  %3759 = vmatprep.subr.bf16.mxu1 %v4357_v0 }
 0xf88   :  { %3740 = vmatpush3.bf16.msra.mxu0 %v3923_v31  ;;  %3760 = vmatpush3.bf16.msra.mxu1 %v3931_v52 }
 0xf89   :  { %3741 = vmatprep.subr.bf16.mxu0 %v4357_v0  ;;  %3761 = vmatprep.subr.bf16.mxu1 %v4357_v0 }
 0xf8c   :  { %3742 = vmatpush3.bf16.msra.mxu0 %v3924_v23  ;;  %3762 = vmatpush3.bf16.msra.mxu1 %v3932_v41 }
 0xf8d   :  { %3743 = vmatprep.subr.bf16.mxu0 %v4357_v0  ;;  %3763 = vmatprep.subr.bf16.mxu1 %v4357_v0 }
 0xf90   :  { %3744 = vmatpush3.bf16.msra.mxu0 %v3925_v57  ;;  %3764 = vmatpush3.bf16.msra.mxu1 %v3933_v42 }
 0xf91   :  { %3745 = vmatprep.subr.bf16.mxu0 %v4357_v0  ;;  %3765 = vmatprep.subr.bf16.mxu1 %v4357_v0 }
 0xf94   :  { %3746 = vmatpush3.bf16.msra.mxu0 %v3926_v24  ;;  %3766 = vmatpush3.bf16.msra.mxu1 %v3934_v43 }
 0xf95   :  { %3747 = vmatprep.subr.bf16.mxu0 %v4357_v0  ;;  %3767 = vmatprep.subr.bf16.mxu1 %v4357_v0 }
 0xf98   :  { %3748 = vmatpush3.bf16.msra.mxu0 %v3927_v54  ;;  %3768 = vmatpush3.bf16.msra.mxu1 %v3935_v44 }
 0xf99   :  { %3749 = vmatprep.subr.bf16.mxu0 %v4357_v0  ;;  %3769 = vmatprep.subr.bf16.mxu1 %v4357_v0 }
 0xf9c   :  { %3750 = vmatpush3.bf16.msra.mxu0 %v3928_v58  ;;  %3770 = vmatpush3.bf16.msra.mxu1 %v3936_v2 }
 0xf9d   :  { %3751 = vmatprep.subr.bf16.mxu0 %v4357_v0  ;;  %3771 = vmatprep.subr.bf16.mxu1 %v4357_v0 }
 0xfa0   :  { %3752 = vmatpush3.bf16.msra.mxu0 %v3929_v25  ;;  %3772 = vmatpush3.bf16.msra.mxu1 %v3937_v3 }
0x1042   :  { %v2714_v46 = vpop.f32.mrf.mxu0  ;;  %v2755_v56 = vpop.f32.mrf.mxu1 }
0x1043   :  { %v2761_v48 = vadd.f32 %v2714_v46, %v2678_v45  ;;  %v2778_v1 = vadd.f32 %v4130_v6, %v2755_v56 }
0x1044   :  { %v2716_v47 = vpop.f32.mrf.mxu0  ;;  %v3735_v60 = vpop.f32.mrf.mxu1 }
0x1045   :  { %v3177_v30 = vmul.f32 -1.442695, %v2761_v48  ;;  %v2771_v12 = vadd.f32 %v2769_v10, %v2716_v47 }
0x1046   :  { %v2718_v8 = vpop.f32.mrf.mxu0  ;;  %v2758_v9 = vpop.f32.mrf.mxu1 }
0x1047   :  { %4088 = vpow2.f32 %v3177_v30  ;;  %v3178_v13 = vmul.f32 -1.442695, %v2771_v12 }
0x1048   :  { %v2719_v11 = vpop.f32.mrf.mxu0  ;;  %v3736_v50 = vpop.f32.mrf.mxu1 }
0x1049   :  { %4090 = vpow2.f32 %v3178_v13 }
0x1054   :  { %v4089_v14 = vpop.eup %4088 }
0x1055   :  { %v2765_v15 = vadd.f32 1.0, %v4089_v14 }
0x1056   :  { %v4091_v16 = vpop.eup %4090 }
0x1057   :  { %4092 = vrcp.f32 %v2765_v15  ;;  %v2775_v26 = vadd.f32 1.0, %v4091_v16 }
0x1059   :  { %4094 = vrcp.f32 %v2775_v26 }
0x1064   :  { %v4093_v32 = vpop.eup %4092 }
0x1065   :  { %v2779_v34 = vmul.f32 %v4093_v32, %v2778_v1 }
0x1066   :  { %v4095_v36 = vpop.eup %4094 }
0x1067   :  { %v2782_v35 = vadd.f32 %v2780_v33, %v2779_v34  ;;  %v2784_v37 = vsub.f32 1.0, %v4095_v36  ;;  %v2786_v40 = vmul.f32 %v4095_v36, %v5307_v28 }
0x1069   :  { %4096 = vtanh.f32 %v2782_v35 }
0x1076   :  { %v4097_v38 = vpop.eup %4096 }
0x1077   :  { %v2785_v39 = vmul.f32 %v4097_v38, %v2784_v37 }
0x1079   :  { %v2787_v61 = vadd.f32 %v2786_v40, %v2785_v39 }
0x107b   :  { %2788 = vst [vmem:[#allocation3 + $0x7] sm:$0x1] %v2787_v61  ;;  %2790 = vst [vmem:[#allocation18 + $0x1] sm:$0x1] %v2787_v61 }
0x1082   :  { %v2791_v62 = vld [vmem:[#allocation3] sm:$0xff] }
0x1083   :  { %v2792_v63 = vpack.c.bf16 %v2791_v62, %v2791_v62 }
0x1085   :  { %3754 = vmatmul.mubr.bf16.vlgmr.msra.gmra.mxu0 %v2792_v63 }
0x1145   :  { %v2898_v5 = vpop.f32.mrf.mxu0 }
0x1146   :  { %v2899_v7 = vadd.f32 %v3179_v4, %v2898_v5 }
0x1147   :  { %v3755_v17 = vpop.f32.mrf.mxu0 }
0x1148   :  { %v2904_v18 = vmax.f32 %v2899_v7, 0.0 }
0x1149   :  { %v2901_v19 = vpop.f32.mrf.mxu0 }
0x114a   :  { %v2905_v20 = vpack.c.bf16 %v2904_v18, %v2904_v18 }
0x114b   :  { %v3756_v21 = vpop.f32.mrf.mxu0 }
0x114c   :  { %3774 = vmatmul.mubr.bf16.vlgmr.msra.gmra.mxu1 %v2905_v20 }
0x114d   :  { %4302 = shalt.err (!%p4299_p2)
}
0x114e   :  { %3027 = dma.vmem_to_hbm [thread:$0]  %s3025_s17, 32, %s5360_s14, [#allocation6]   ;;  %v3188_v0 = vld [vmem:[%s5359_s13] ss:$0 sm:$0xff] }
0x114f   :  { %s4361_s21 = smov [#allocation19]  }
0x1150   :  { %s3034_s3 = sshll.u32 %s4361_s21, 4  ;;  %s3035_s3 = int_to_ptr.vmem [resolvable:$true] %s3034_s3 }
0x1151   :  { %s4311_s22 = scalar_lea.vmem %s3035_s3, 128  ;;  %p4316_p4 = scmp.lt.s32.totalorder %s3035_s3, %s3035_s3 }
0x1152   :  { %p4312_p3 = scmp.ne.s32.totalorder %s3035_s3, %s4311_s22  ;;  %p4317_p5 = scmp.lt.s32.totalorder %s4311_s22, %s4311_s22 }
0x1154   :  { %p4318_p6 = por %p4317_p5, %p4316_p4 }
0x1156   :  { %p4319_p7 = pnand %p4318_p6, %p4312_p3 }
0x120c   :  { %v3011_v55 = vpop.f32.mrf.mxu1 }
0x120d   :  { %v3012_v22 = vadd.f32 %v3188_v0, %v3011_v55 }
0x120e   :  { %v3775_v49 = vpop.f32.mrf.mxu1 }
0x120f   :  { %3017 = vst [vmem:[#allocation19] sm:$0xff] %v3012_v22 }
0x1210   :  { %v3014_v53 = vpop.f32.mrf.mxu1 }
0x1211   :  { %4322 = shalt.err (!%p4319_p7)
}
0x1212   :  { %3037 = dma.vmem_to_hbm [thread:$0]  %s3035_s3, 128, %s5361_s15, [#allocation20]   ;;  %v3776_v51 = vpop.f32.mrf.mxu1 }
0x1213   :  { %4341 = dma.done.wait [#allocation6], 32  }
0x1214   :  { %4342 = vsyncadd [#allocation6], 4294967264 }
0x1215   :  { %4343 = dma.done.wait [#allocation20], 128  }
0x1216   :  { %4344 = vsyncadd [#allocation20], 4294967168 }
0x1217   :  { %3044 = vsyncpa [#allocation5], 1 }
0x1218   :  { %3045 = vsyncpa [#allocation8], 1 }
0x1219   :  { %3046 = vsyncpa [#allocation11], 1 }
0x121a   :  { %3047 = vsyncpa [#allocation14], 1 }
0x121b   :  { %3048 = vsyncpa [#allocation17], 1 }
0x121c   :  { %3049 = vsyncpa [#allocation6], 1 }
0x121d   :  { %3050 = vsyncpa [#allocation20], 1 }

</bundles_post_ra>
